<compile_context>
chip_gen: v6e
topology: v6e:2x2x1
jax: 0.10.0
libtpu: 0.0.40
codegen_flags: <defaults>
</compile_context>

<pallas_src>
import numpy as np
import jax
import jax.numpy as jnp
from jax.experimental import pallas as pl
from jax.experimental.pallas import tpu as pltpu


# ----------------------- Kernel 1: fused conditioning MLPs -------------------

def _cond_mlp_kernel(y_ref, w1_ref, b1_ref, w2_ref, b2_ref, o_ref):
    # y: (B, 256); w1: (256, 8*256) (8 first layers concatenated);
    # w2: (8*256, Ctot) block-diagonal; output = all 8 gamma/beta vectors.
    h = jnp.dot(y_ref[...], w1_ref[...], preferred_element_type=jnp.float32) + b1_ref[...]
    h = jnp.maximum(h, 0.0)
    o_ref[...] = jnp.dot(h, w2_ref[...], preferred_element_type=jnp.float32) + b2_ref[...]


def cond_mlps(y, w1_cat, b1_cat, w2_bd, b2_cat):
    B = y.shape[0]
    ctot = w2_bd.shape[1]
    return pl.pallas_call(
        _cond_mlp_kernel,
        out_shape=jax.ShapeDtypeStruct((B, ctot), jnp.float32),
    )(y, w1_cat, b1_cat, w2_bd, b2_cat)


# ------------------- Kernel 2: fully-fused G_Block main path -----------------

def _lrelu(v):
    return jnp.where(v >= 0.0, v, 0.2 * v)


def _conv3x3_flat(h, w_mat, Wp):
    # h:     (C, Np)  flattened zero-padded image (all padding positions == 0)
    # w_mat: (Cout, 9*C), K ordered tap-major (k = 3*ky + kx), channel-minor.
    # Returns (Cout, Np); only interior columns are meaningful.
    C, Np = h.shape
    M = Wp + 1                                        # max |tap shift|
    z = jnp.zeros((C, M), h.dtype)
    h_m = jnp.concatenate([z, h, z], axis=1)          # (C, Np + 2M): safety margin
    taps = jnp.concatenate(
        [h_m[:, ky * Wp + kx: ky * Wp + kx + Np]      # static lane-shifted views
         for ky in range(3) for kx in range(3)],
        axis=0)                                       # (9*C, Np)
    return jnp.dot(w_mat, taps, preferred_element_type=jnp.float32)


def _make_g_block_kernel(Wp, learnable_sc):
    def kernel(x_ref, mask_ref, g0, b0, g1, b1, w1_ref, c1b,
               g2, b2, g3, b3, w2_ref, c2b, *rest):
        if learnable_sc:
            wsc_ref, bsc_ref, gamma_ref, o_ref = rest
        else:
            gamma_ref, o_ref = rest

        x = x_ref[...]                    # (Cin, Np) zero-padded, flattened (+ lane pad)
        mask = mask_ref[...]              # (1, Np): 1 at interior, 0 at padding/tail

        # --- stage 1: affine0 -> lrelu -> affine1 -> lrelu, re-zero the halo ---
        h = _lrelu(g0[...] * x + b0[...])
        h = _lrelu(g1[...] * h + b1[...]) * mask

        # --- c1: 3x3 conv as one K = 9*Cin matmul ---
        h = _conv3x3_flat(h, w1_ref[...], Wp) + c1b[...]          # (Cout, Np)

        # --- stage 2: affine2 -> lrelu -> affine3 -> lrelu, re-zero the halo ---
        h = _lrelu(g2[...] * h + b2[...])
        h = _lrelu(g3[...] * h + b3[...]) * mask

        # --- c2: second 3x3 conv ---
        res = _conv3x3_flat(h, w2_ref[...], Wp) + c2b[...]        # (Cout, Np)

        # --- shortcut (1x1 conv or identity) + gamma combine ---
        if learnable_sc:
            sc = jnp.dot(wsc_ref[...], x, preferred_element_type=jnp.float32) + bsc_ref[...]
        else:
            sc = x
        o_ref[...] = sc + gamma_ref[0] * res
    return kernel


# ------------------------- one-time parameter folding ------------------------

def fold_params(params):
    """Fold constants to kernel-ready layouts ONCE (not in the jitted hot path)."""
    Cout, Cin = params["c1_w"].shape[0], params["c1_w"].shape[1]
    mlps = [params["aff0_g"], params["aff0_b"], params["aff1_g"], params["aff1_b"],
            params["aff2_g"], params["aff2_b"], params["aff3_g"], params["aff3_b"]]
    out_dims = [Cin] * 4 + [Cout] * 4
    hid = mlps[0][0].shape[1]                                         # 256
    ctot = int(sum(out_dims))

    w1_cat = jnp.concatenate([p[0] for p in mlps], axis=1)            # (256, 2048)
    b1_cat = jnp.concatenate([p[1] for p in mlps], axis=0).reshape(1, -1)
    w2_bd = jnp.zeros((8 * hid, ctot), jnp.float32)                   # block-diagonal
    off = 0
    for i, (p, d) in enumerate(zip(mlps, out_dims)):
        w2_bd = w2_bd.at[i * hid:(i + 1) * hid, off:off + d].set(p[2])
        off += d
    b2_cat = jnp.concatenate([p[3] for p in mlps], axis=0).reshape(1, -1)

    return {
        "w1_cat": w1_cat, "b1_cat": b1_cat, "w2_bd": w2_bd, "b2_cat": b2_cat,
        # conv weights as (Cout, 9*C), tap-major / channel-minor
        "c1_mat": jnp.transpose(params["c1_w"], (0, 2, 3, 1)).reshape(Cout, 9 * Cin),
        "c1_b": params["c1_b"].reshape(Cout, 1),
        "c2_mat": jnp.transpose(params["c2_w"], (0, 2, 3, 1)).reshape(Cout, 9 * Cout),
        "c2_b": params["c2_b"].reshape(Cout, 1),
        "gamma": params["gamma"],
        "sc_w": None if params["c_sc_w"] is None else params["c_sc_w"][:, :, 0, 0],
        "sc_b": None if params["c_sc_b"] is None else params["c_sc_b"].reshape(Cout, 1),
    }


# ------------------------------ G_Block forward ------------------------------

@jax.jit
def g_block_forward(folded, x_nchw, y):
    B, Cin, H, W = x_nchw.shape
    Cout = folded["c1_mat"].shape[0]
    Hp, Wp = H + 2, W + 2
    Np = Hp * Wp
    Np_pad = ((Np + 127) // 128) * 128          # lane-dense (multiple of 128)
    learnable_sc = folded["sc_w"] is not None

    # ---- all 8 conditioning MLPs in a single pallas_call ----
    cond = cond_mlps(y, folded["w1_cat"], folded["b1_cat"],
                     folded["w2_bd"], folded["b2_cat"])               # (B, Ctot)

    out_dims = [Cin] * 4 + [Cout] * 4
    offs = np.cumsum([0] + out_dims)

    def take(i):
        return cond[:, int(offs[i]):int(offs[i + 1])].reshape(B, out_dims[i], 1)

    g0, be0, g1, be1, g2, be2, g3, be3 = (take(i) for i in range(8))

    # ---- pad + flatten x once; extra zero lanes up to Np_pad (fused under jit) ----
    xp = jnp.pad(x_nchw, ((0, 0), (0, 0), (1, 1), (1, 1))).reshape(B, Cin, Np)
    xp = jnp.pad(xp, ((0, 0), (0, 0), (0, Np_pad - Np)))

    # interior mask over the flattened padded grid (trace-time constant)
    rr, cc = np.divmod(np.arange(Np_pad), Wp)
    mask = jnp.asarray(((rr >= 1) & (rr <= H) & (cc >= 1) & (cc <= W))
                       .astype(np.float32)).reshape(1, Np_pad)

    vec = lambda C: pl.BlockSpec((None, C, 1), lambda b: (b, 0, 0))
    full = lambda shape: pl.BlockSpec(shape, lambda b, s=shape: (0,) * len(s))

    in_specs = [
        pl.BlockSpec((None, Cin, Np_pad), lambda b: (b, 0, 0)),   # padded x
        full((1, Np_pad)),                                        # interior mask
        vec(Cin), vec(Cin), vec(Cin), vec(Cin),                   # g0 b0 g1 b1
        full((Cout, 9 * Cin)), full((Cout, 1)),                   # w1, c1 bias
        vec(Cout), vec(Cout), vec(Cout), vec(Cout),               # g2 b2 g3 b3
        full((Cout, 9 * Cout)), full((Cout, 1)),                  # w2, c2 bias
    ]
    args = [xp, mask, g0, be0, g1, be1, folded["c1_mat"], folded["c1_b"],
            g2, be2, g3, be3, folded["c2_mat"], folded["c2_b"]]
    if learnable_sc:
        in_specs += [full((Cout, Cin)), full((Cout, 1))]
        args += [folded["sc_w"], folded["sc_b"]]
    in_specs.append(pl.BlockSpec(memory_space=pltpu.MemorySpace.SMEM))  # gamma
    args.append(folded["gamma"])

    out_flat = pl.pallas_call(
        _make_g_block_kernel(Wp, learnable_sc),
        grid=(B,),
        in_specs=in_specs,
        out_specs=pl.BlockSpec((None, Cout, Np_pad), lambda b: (b, 0, 0)),
        out_shape=jax.ShapeDtypeStruct((B, Cout, Np_pad), jnp.float32),
        compiler_params=pltpu.CompilerParams(dimension_semantics=("parallel",)),
    )(*args)

    # drop the lane padding + halo columns and restore NCHW
    out = out_flat[:, :, :Np].reshape(B, Cout, Hp, Wp)[:, :, 1:H + 1, 1:W + 1]
    return out


# ----------------------------- plain-JAX reference ---------------------------

def g_block_reference(params, x, y):
    def mlp(p):
        w1, b1, w2, b2 = p
        return jnp.maximum(y @ w1 + b1, 0.0) @ w2 + b2

    def aff(h, g, b):
        return g[:, :, None, None] * h + b[:, :, None, None]

    def lrelu(h):
        return jnp.where(h >= 0.0, h, 0.2 * h)

    def conv(h, w, b, pad):
        o = jax.lax.conv_general_dilated(h, w, (1, 1), [(pad, pad), (pad, pad)],
                                         dimension_numbers=("NCHW", "OIHW", "NCHW"))
        return o + b[None, :, None, None]

    h = lrelu(aff(x, mlp(params["aff0_g"]), mlp(params["aff0_b"])))
    h = lrelu(aff(h, mlp(params["aff1_g"]), mlp(params["aff1_b"])))
    h = conv(h, params["c1_w"], params["c1_b"], 1)
    h = lrelu(aff(h, mlp(params["aff2_g"]), mlp(params["aff2_b"])))
    h = lrelu(aff(h, mlp(params["aff3_g"]), mlp(params["aff3_b"])))
    res = conv(h, params["c2_w"], params["c2_b"], 1)
    sc = conv(x, params["c_sc_w"], params["c_sc_b"], 0) if params["c_sc_w"] is not None else x
    return sc + params["gamma"][0] * res


# ---------------------------- deterministic params ---------------------------

def _affine_params(key, num_features):
    k1, k2, k3, k4 = jax.random.split(key, 4)
    # NOTE: torch init zeros linear2 of fc_gamma/fc_beta; random values are used
    # here so the residual path is actually exercised numerically.
    w1 = 0.05 * jax.random.normal(k1, (256, 256), jnp.float32)
    b1 = 0.05 * jax.random.normal(k2, (256,), jnp.float32)
    w2 = 0.05 * jax.random.normal(k3, (256, num_features), jnp.float32)
    b2 = 0.05 * jax.random.normal(k4, (num_features,), jnp.float32)
    return (w1, b1, w2, b2)


def init_params(key, in_ch, out_ch):
    ks = jax.random.split(key, 16)
    params = {
        "aff0_g": _affine_params(ks[0], in_ch),  "aff0_b": _affine_params(ks[1], in_ch),
        "aff1_g": _affine_params(ks[2], in_ch),  "aff1_b": _affine_params(ks[3], in_ch),
        "aff2_g": _affine_params(ks[4], out_ch), "aff2_b": _affine_params(ks[5], out_ch),
        "aff3_g": _affine_params(ks[6], out_ch), "aff3_b": _affine_params(ks[7], out_ch),
        "c1_w": 0.1 * jax.random.normal(ks[8], (out_ch, in_ch, 3, 3), jnp.float32),
        "c1_b": 0.1 * jax.random.normal(ks[9], (out_ch,), jnp.float32),
        "c2_w": 0.1 * jax.random.normal(ks[10], (out_ch, out_ch, 3, 3), jnp.float32),
        "c2_b": 0.1 * jax.random.normal(ks[11], (out_ch,), jnp.float32),
        # torch inits gamma to 0 (residual disabled); use 0.5 to exercise it.
        "gamma": jnp.array([0.5], jnp.float32),
    }
    if in_ch != out_ch:   # learnable shortcut
        params["c_sc_w"] = 0.1 * jax.random.normal(ks[12], (out_ch, in_ch, 1, 1), jnp.float32)
        params["c_sc_b"] = 0.1 * jax.random.normal(ks[13], (out_ch,), jnp.float32)
    else:
        params["c_sc_w"] = None
        params["c_sc_b"] = None
    return params


# ------------------------------------ main -----------------------------------

if __name__ == "__main__":
    key = jax.random.PRNGKey(0)
    kx, kyv, kp = jax.random.split(key, 3)

    B, Cin, Cout, H, W = 2, 4, 8, 16, 16
    x = jax.random.normal(kx, (B, Cin, H, W), jnp.float32)    # NCHW like PyTorch
    y = jax.random.normal(kyv, (B, 256), jnp.float32)         # text-conditioning vector
    params = init_params(kp, Cin, Cout)

    folded = fold_params(params)                              # one-time weight folding
    out = jax.block_until_ready(g_block_forward(folded, x, y))
    ref = g_block_reference(params, x, y)

    assert out.shape == (B, Cout, H, W), out.shape
    max_err = float(jnp.max(jnp.abs(out - ref)))
    assert jnp.allclose(out, ref, atol=1e-3, rtol=1e-3), f"max abs err {max_err}"

    print("KERNEL_OK")
</pallas_src>

<mosaic_0001>
module attributes {stable_mosaic.version = 11 : i64} {
  func.func @_cond_mlp_kernel(%arg0: memref<2x256xf32, #tpu.memory_space<vmem>>, %arg1: memref<256x2048xf32, #tpu.memory_space<vmem>>, %arg2: memref<1x2048xf32, #tpu.memory_space<vmem>>, %arg3: memref<2048x48xf32, #tpu.memory_space<vmem>>, %arg4: memref<1x48xf32, #tpu.memory_space<vmem>>, %arg5: memref<2x48xf32, #tpu.memory_space<vmem>>) attributes {dimension_semantics = [], scalar_prefetch = 0 : i64, scratch_operands = 0 : i64, tpu.core_type = #tpu.core_type<tc>} {
    %c0 = arith.constant 0 : index
    %c0_0 = arith.constant 0 : index
    %0 = vector.load %arg0[%c0, %c0_0] : memref<2x256xf32, #tpu.memory_space<vmem>>, vector<2x256xf32>
    %c0_1 = arith.constant 0 : index
    %c0_2 = arith.constant 0 : index
    %1 = vector.load %arg1[%c0_1, %c0_2] : memref<256x2048xf32, #tpu.memory_space<vmem>>, vector<256x2048xf32>
    %cst = arith.constant dense<0.000000e+00> : vector<2x2048xf32>
    %2 = tpu.matmul %0, %1, %cst {dimension_numbers = #tpu.dot_dimension_numbers<[1], [0], [0], [1], [0, 0, 1, 1], [], []>} : vector<2x256xf32>, vector<256x2048xf32>, vector<2x2048xf32> -> vector<2x2048xf32>
    %c0_3 = arith.constant 0 : index
    %c0_4 = arith.constant 0 : index
    %3 = vector.load %arg2[%c0_3, %c0_4] : memref<1x2048xf32, #tpu.memory_space<vmem>>, vector<1x2048xf32>
    %4 = vector.broadcast %3 : vector<1x2048xf32> to vector<2x2048xf32>
    %5 = arith.addf %2, %4 : vector<2x2048xf32>
    %cst_5 = arith.constant 0.000000e+00 : f32
    %6 = vector.broadcast %cst_5 : f32 to vector<2x2048xf32>
    %7 = arith.maximumf %5, %6 : vector<2x2048xf32>
    %c0_6 = arith.constant 0 : index
    %c0_7 = arith.constant 0 : index
    %8 = vector.load %arg3[%c0_6, %c0_7] : memref<2048x48xf32, #tpu.memory_space<vmem>>, vector<2048x48xf32>
    %cst_8 = arith.constant dense<0.000000e+00> : vector<2x48xf32>
    %9 = tpu.matmul %7, %8, %cst_8 {dimension_numbers = #tpu.dot_dimension_numbers<[1], [0], [0], [1], [0, 0, 1, 1], [], []>} : vector<2x2048xf32>, vector<2048x48xf32>, vector<2x48xf32> -> vector<2x48xf32>
    %c0_9 = arith.constant 0 : index
    %c0_10 = arith.constant 0 : index
    %10 = vector.load %arg4[%c0_9, %c0_10] : memref<1x48xf32, #tpu.memory_space<vmem>>, vector<1x48xf32>
    %11 = vector.broadcast %10 : vector<1x48xf32> to vector<2x48xf32>
    %12 = arith.addf %9, %11 : vector<2x48xf32>
    %c0_11 = arith.constant 0 : index
    %c0_12 = arith.constant 0 : index
    %13 = vector.load %arg5[%c0_11, %c0_12] : memref<2x48xf32, #tpu.memory_space<vmem>>, vector<2x48xf32>
    tpu.vector_store %arg5[%c0_11, %c0_12], %12 {strides = array<i32>} : memref<2x48xf32, #tpu.memory_space<vmem>>, vector<2x48xf32>,
    return
  }
}

module attributes {stable_mosaic.version = 11 : i64} {
  func.func @kernel(%arg0: i32, %arg1: memref<1x4x384xf32, #tpu.memory_space<vmem>>, %arg2: memref<1x384xf32, #tpu.memory_space<vmem>>, %arg3: memref<1x4x1xf32, #tpu.memory_space<vmem>>, %arg4: memref<1x4x1xf32, #tpu.memory_space<vmem>>, %arg5: memref<1x4x1xf32, #tpu.memory_space<vmem>>, %arg6: memref<1x4x1xf32, #tpu.memory_space<vmem>>, %arg7: memref<8x36xf32, #tpu.memory_space<vmem>>, %arg8: memref<8x1xf32, #tpu.memory_space<vmem>>, %arg9: memref<1x8x1xf32, #tpu.memory_space<vmem>>, %arg10: memref<1x8x1xf32, #tpu.memory_space<vmem>>, %arg11: memref<1x8x1xf32, #tpu.memory_space<vmem>>, %arg12: memref<1x8x1xf32, #tpu.memory_space<vmem>>, %arg13: memref<8x72xf32, #tpu.memory_space<vmem>>, %arg14: memref<8x1xf32, #tpu.memory_space<vmem>>, %arg15: memref<8x4xf32, #tpu.memory_space<vmem>>, %arg16: memref<8x1xf32, #tpu.memory_space<vmem>>, %arg17: memref<1xf32, #tpu.memory_space<smem>>, %arg18: memref<1x8x384xf32, #tpu.memory_space<vmem>>) attributes {dimension_semantics = [#tpu.dimension_semantics<parallel>], iteration_bounds = array<i64: 2>, scalar_prefetch = 0 : i64, scratch_operands = 0 : i64, tpu.core_type = #tpu.core_type<tc>, window_params = [{transform_indices = @transform_0, window_bounds = array<i64: 1, 4, 384>}, {pipeline_mode = #tpu.pipeline_mode<synchronous>, transform_indices = @transform_1, window_bounds = array<i64: 1, 384>}, {transform_indices = @transform_2, window_bounds = array<i64: 1, 4, 1>}, {transform_indices = @transform_3, window_bounds = array<i64: 1, 4, 1>}, {transform_indices = @transform_4, window_bounds = array<i64: 1, 4, 1>}, {transform_indices = @transform_5, window_bounds = array<i64: 1, 4, 1>}, {pipeline_mode = #tpu.pipeline_mode<synchronous>, transform_indices = @transform_6, window_bounds = array<i64: 8, 36>}, {pipeline_mode = #tpu.pipeline_mode<synchronous>, transform_indices = @transform_7, window_bounds = array<i64: 8, 1>}, {transform_indices = @transform_8, window_bounds = array<i64: 1, 8, 1>}, {transform_indices = @transform_9, window_bounds = array<i64: 1, 8, 1>}, {transform_indices = @transform_10, window_bounds = array<i64: 1, 8, 1>}, {transform_indices = @transform_11, window_bounds = array<i64: 1, 8, 1>}, {pipeline_mode = #tpu.pipeline_mode<synchronous>, transform_indices = @transform_12, window_bounds = array<i64: 8, 72>}, {pipeline_mode = #tpu.pipeline_mode<synchronous>, transform_indices = @transform_13, window_bounds = array<i64: 8, 1>}, {pipeline_mode = #tpu.pipeline_mode<synchronous>, transform_indices = @transform_14, window_bounds = array<i64: 8, 4>}, {pipeline_mode = #tpu.pipeline_mode<synchronous>, transform_indices = @transform_15, window_bounds = array<i64: 8, 1>}, {transform_indices = @transform_16, window_bounds = array<i64: 1>}, {transform_indices = @transform_17, window_bounds = array<i64: 1, 8, 384>}]} {
    %c0 = arith.constant 0 : index
    %c0_0 = arith.constant 0 : index
    %c0_1 = arith.constant 0 : index
    %0 = vector.load %arg1[%c0, %c0_0, %c0_1] : memref<1x4x384xf32, #tpu.memory_space<vmem>>, vector<1x4x384xf32>
    %1 = vector.shape_cast %0 : vector<1x4x384xf32> to vector<4x384xf32>
    %c0_2 = arith.constant 0 : index
    %c0_3 = arith.constant 0 : index
    %2 = vector.load %arg2[%c0_2, %c0_3] : memref<1x384xf32, #tpu.memory_space<vmem>>, vector<1x384xf32>
    %c0_4 = arith.constant 0 : index
    %c0_5 = arith.constant 0 : index
    %c0_6 = arith.constant 0 : index
    %3 = vector.load %arg3[%c0_4, %c0_5, %c0_6] : memref<1x4x1xf32, #tpu.memory_space<vmem>>, vector<1x4x1xf32>
    %4 = vector.shape_cast %3 : vector<1x4x1xf32> to vector<4x1xf32>
    %5 = vector.broadcast %4 : vector<4x1xf32> to vector<4x384xf32>
    %6 = arith.mulf %5, %1 : vector<4x384xf32>
    %c0_7 = arith.constant 0 : index
    %c0_8 = arith.constant 0 : index
    %c0_9 = arith.constant 0 : index
    %7 = vector.load %arg4[%c0_7, %c0_8, %c0_9] : memref<1x4x1xf32, #tpu.memory_space<vmem>>, vector<1x4x1xf32>
    %8 = vector.shape_cast %7 : vector<1x4x1xf32> to vector<4x1xf32>
    %9 = vector.broadcast %8 : vector<4x1xf32> to vector<4x384xf32>
    %10 = arith.addf %6, %9 : vector<4x384xf32>
    %cst = arith.constant 0.000000e+00 : f32
    %11 = vector.broadcast %cst : f32 to vector<4x384xf32>
    %12 = arith.cmpf oge, %10, %11 : vector<4x384xf32>
    %cst_10 = arith.constant 2.000000e-01 : f32
    %13 = vector.broadcast %cst_10 : f32 to vector<4x384xf32>
    %14 = arith.mulf %13, %10 : vector<4x384xf32>
    %15 = arith.select %12, %10, %14 : vector<4x384xi1>, vector<4x384xf32>
    %c0_11 = arith.constant 0 : index
    %c0_12 = arith.constant 0 : index
    %c0_13 = arith.constant 0 : index
    %16 = vector.load %arg5[%c0_11, %c0_12, %c0_13] : memref<1x4x1xf32, #tpu.memory_space<vmem>>, vector<1x4x1xf32>
    %17 = vector.shape_cast %16 : vector<1x4x1xf32> to vector<4x1xf32>
    %18 = vector.broadcast %17 : vector<4x1xf32> to vector<4x384xf32>
    %19 = arith.mulf %18, %15 : vector<4x384xf32>
    %c0_14 = arith.constant 0 : index
    %c0_15 = arith.constant 0 : index
    %c0_16 = arith.constant 0 : index
    %20 = vector.load %arg6[%c0_14, %c0_15, %c0_16] : memref<1x4x1xf32, #tpu.memory_space<vmem>>, vector<1x4x1xf32>
    %21 = vector.shape_cast %20 : vector<1x4x1xf32> to vector<4x1xf32>
    %22 = vector.broadcast %21 : vector<4x1xf32> to vector<4x384xf32>
    %23 = arith.addf %19, %22 : vector<4x384xf32>
    %cst_17 = arith.constant 0.000000e+00 : f32
    %24 = vector.broadcast %cst_17 : f32 to vector<4x384xf32>
    %25 = arith.cmpf oge, %23, %24 : vector<4x384xf32>
    %cst_18 = arith.constant 2.000000e-01 : f32
    %26 = vector.broadcast %cst_18 : f32 to vector<4x384xf32>
    %27 = arith.mulf %26, %23 : vector<4x384xf32>
    %28 = arith.select %25, %23, %27 : vector<4x384xi1>, vector<4x384xf32>
    %29 = vector.broadcast %2 : vector<1x384xf32> to vector<4x384xf32>
    %30 = arith.mulf %28, %29 : vector<4x384xf32>
    %c0_19 = arith.constant 0 : index
    %c0_20 = arith.constant 0 : index
    %31 = vector.load %arg7[%c0_19, %c0_20] : memref<8x36xf32, #tpu.memory_space<vmem>>, vector<8x36xf32>
    %cst_21 = arith.constant 0.000000e+00 : f32
    %32 = vector.broadcast %cst_21 : f32 to vector<4x19xf32>
    %33 = tpu.concatenate %32, %30, %32 in 1 : vector<4x19xf32>, vector<4x384xf32>, vector<4x19xf32> -> vector<4x422xf32>
    %34 = vector.extract_strided_slice %33 {offsets = [0, 0], sizes = [4, 384], strides = [1, 1]} : vector<4x422xf32> to vector<4x384xf32>
    %35 = vector.extract_strided_slice %33 {offsets = [0, 1], sizes = [4, 384], strides = [1, 1]} : vector<4x422xf32> to vector<4x384xf32>
    %36 = vector.extract_strided_slice %33 {offsets = [0, 2], sizes = [4, 384], strides = [1, 1]} : vector<4x422xf32> to vector<4x384xf32>
    %37 = vector.extract_strided_slice %33 {offsets = [0, 18], sizes = [4, 384], strides = [1, 1]} : vector<4x422xf32> to vector<4x384xf32>
    %38 = vector.extract_strided_slice %33 {offsets = [0, 19], sizes = [4, 384], strides = [1, 1]} : vector<4x422xf32> to vector<4x384xf32>
    %39 = vector.extract_strided_slice %33 {offsets = [0, 20], sizes = [4, 384], strides = [1, 1]} : vector<4x422xf32> to vector<4x384xf32>
    %40 = vector.extract_strided_slice %33 {offsets = [0, 36], sizes = [4, 384], strides = [1, 1]} : vector<4x422xf32> to vector<4x384xf32>
    %41 = vector.extract_strided_slice %33 {offsets = [0, 37], sizes = [4, 384], strides = [1, 1]} : vector<4x422xf32> to vector<4x384xf32>
    %42 = vector.extract_strided_slice %33 {offsets = [0, 38], sizes = [4, 384], strides = [1, 1]} : vector<4x422xf32> to vector<4x384xf32>
    %43 = tpu.concatenate %34, %35, %36, %37, %38, %39, %40, %41, %42 in 0 : vector<4x384xf32>, vector<4x384xf32>, vector<4x384xf32>, vector<4x384xf32>, vector<4x384xf32>, vector<4x384xf32>, vector<4x384xf32>, vector<4x384xf32>, vector<4x384xf32> -> vector<36x384xf32>
    %cst_22 = arith.constant dense<0.000000e+00> : vector<8x384xf32>
    %44 = tpu.matmul %31, %43, %cst_22 {dimension_numbers = #tpu.dot_dimension_numbers<[1], [0], [0], [1], [0, 0, 1, 1], [], []>} : vector<8x36xf32>, vector<36x384xf32>, vector<8x384xf32> -> vector<8x384xf32>
    %c0_23 = arith.constant 0 : index
    %c0_24 = arith.constant 0 : index
    %45 = vector.load %arg8[%c0_23, %c0_24] : memref<8x1xf32, #tpu.memory_space<vmem>>, vector<8x1xf32>
    %46 = vector.broadcast %45 : vector<8x1xf32> to vector<8x384xf32>
    %47 = arith.addf %44, %46 : vector<8x384xf32>
    %c0_25 = arith.constant 0 : index
    %c0_26 = arith.constant 0 : index
    %c0_27 = arith.constant 0 : index
    %48 = vector.load %arg9[%c0_25, %c0_26, %c0_27] : memref<1x8x1xf32, #tpu.memory_space<vmem>>, vector<1x8x1xf32>
    %49 = vector.shape_cast %48 : vector<1x8x1xf32> to vector<8x1xf32>
    %50 = vector.broadcast %49 : vector<8x1xf32> to vector<8x384xf32>
    %51 = arith.mulf %50, %47 : vector<8x384xf32>
    %c0_28 = arith.constant 0 : index
    %c0_29 = arith.constant 0 : index
    %c0_30 = arith.constant 0 : index
    %52 = vector.load %arg10[%c0_28, %c0_29, %c0_30] : memref<1x8x1xf32, #tpu.memory_space<vmem>>, vector<1x8x1xf32>
    %53 = vector.shape_cast %52 : vector<1x8x1xf32> to vector<8x1xf32>
    %54 = vector.broadcast %53 : vector<8x1xf32> to vector<8x384xf32>
    %55 = arith.addf %51, %54 : vector<8x384xf32>
    %cst_31 = arith.constant 0.000000e+00 : f32
    %56 = vector.broadcast %cst_31 : f32 to vector<8x384xf32>
    %57 = arith.cmpf oge, %55, %56 : vector<8x384xf32>
    %cst_32 = arith.constant 2.000000e-01 : f32
    %58 = vector.broadcast %cst_32 : f32 to vector<8x384xf32>
    %59 = arith.mulf %58, %55 : vector<8x384xf32>
    %60 = arith.select %57, %55, %59 : vector<8x384xi1>, vector<8x384xf32>
    %c0_33 = arith.constant 0 : index
    %c0_34 = arith.constant 0 : index
    %c0_35 = arith.constant 0 : index
    %61 = vector.load %arg11[%c0_33, %c0_34, %c0_35] : memref<1x8x1xf32, #tpu.memory_space<vmem>>, vector<1x8x1xf32>
    %62 = vector.shape_cast %61 : vector<1x8x1xf32> to vector<8x1xf32>
    %63 = vector.broadcast %62 : vector<8x1xf32> to vector<8x384xf32>
    %64 = arith.mulf %63, %60 : vector<8x384xf32>
    %c0_36 = arith.constant 0 : index
    %c0_37 = arith.constant 0 : index
    %c0_38 = arith.constant 0 : index
    %65 = vector.load %arg12[%c0_36, %c0_37, %c0_38] : memref<1x8x1xf32, #tpu.memory_space<vmem>>, vector<1x8x1xf32>
    %66 = vector.shape_cast %65 : vector<1x8x1xf32> to vector<8x1xf32>
    %67 = vector.broadcast %66 : vector<8x1xf32> to vector<8x384xf32>
    %68 = arith.addf %64, %67 : vector<8x384xf32>
    %cst_39 = arith.constant 0.000000e+00 : f32
    %69 = vector.broadcast %cst_39 : f32 to vector<8x384xf32>
    %70 = arith.cmpf oge, %68, %69 : vector<8x384xf32>
    %cst_40 = arith.constant 2.000000e-01 : f32
    %71 = vector.broadcast %cst_40 : f32 to vector<8x384xf32>
    %72 = arith.mulf %71, %68 : vector<8x384xf32>
    %73 = arith.select %70, %68, %72 : vector<8x384xi1>, vector<8x384xf32>
    %74 = vector.broadcast %2 : vector<1x384xf32> to vector<8x384xf32>
    %75 = arith.mulf %73, %74 : vector<8x384xf32>
    %c0_41 = arith.constant 0 : index
    %c0_42 = arith.constant 0 : index
    %76 = vector.load %arg13[%c0_41, %c0_42] : memref<8x72xf32, #tpu.memory_space<vmem>>, vector<8x72xf32>
    %cst_43 = arith.constant 0.000000e+00 : f32
    %77 = vector.broadcast %cst_43 : f32 to vector<8x19xf32>
    %78 = tpu.concatenate %77, %75, %77 in 1 : vector<8x19xf32>, vector<8x384xf32>, vector<8x19xf32> -> vector<8x422xf32>
    %79 = vector.extract_strided_slice %78 {offsets = [0, 0], sizes = [8, 384], strides = [1, 1]} : vector<8x422xf32> to vector<8x384xf32>
    %80 = vector.extract_strided_slice %78 {offsets = [0, 1], sizes = [8, 384], strides = [1, 1]} : vector<8x422xf32> to vector<8x384xf32>
    %81 = vector.extract_strided_slice %78 {offsets = [0, 2], sizes = [8, 384], strides = [1, 1]} : vector<8x422xf32> to vector<8x384xf32>
    %82 = vector.extract_strided_slice %78 {offsets = [0, 18], sizes = [8, 384], strides = [1, 1]} : vector<8x422xf32> to vector<8x384xf32>
    %83 = vector.extract_strided_slice %78 {offsets = [0, 19], sizes = [8, 384], strides = [1, 1]} : vector<8x422xf32> to vector<8x384xf32>
    %84 = vector.extract_strided_slice %78 {offsets = [0, 20], sizes = [8, 384], strides = [1, 1]} : vector<8x422xf32> to vector<8x384xf32>
    %85 = vector.extract_strided_slice %78 {offsets = [0, 36], sizes = [8, 384], strides = [1, 1]} : vector<8x422xf32> to vector<8x384xf32>
    %86 = vector.extract_strided_slice %78 {offsets = [0, 37], sizes = [8, 384], strides = [1, 1]} : vector<8x422xf32> to vector<8x384xf32>
    %87 = vector.extract_strided_slice %78 {offsets = [0, 38], sizes = [8, 384], strides = [1, 1]} : vector<8x422xf32> to vector<8x384xf32>
    %88 = tpu.concatenate %79, %80, %81, %82, %83, %84, %85, %86, %87 in 0 : vector<8x384xf32>, vector<8x384xf32>, vector<8x384xf32>, vector<8x384xf32>, vector<8x384xf32>, vector<8x384xf32>, vector<8x384xf32>, vector<8x384xf32>, vector<8x384xf32> -> vector<72x384xf32>
    %cst_44 = arith.constant dense<0.000000e+00> : vector<8x384xf32>
    %89 = tpu.matmul %76, %88, %cst_44 {dimension_numbers = #tpu.dot_dimension_numbers<[1], [0], [0], [1], [0, 0, 1, 1], [], []>} : vector<8x72xf32>, vector<72x384xf32>, vector<8x384xf32> -> vector<8x384xf32>
    %c0_45 = arith.constant 0 : index
    %c0_46 = arith.constant 0 : index
    %90 = vector.load %arg14[%c0_45, %c0_46] : memref<8x1xf32, #tpu.memory_space<vmem>>, vector<8x1xf32>
    %91 = vector.broadcast %90 : vector<8x1xf32> to vector<8x384xf32>
    %92 = arith.addf %89, %91 : vector<8x384xf32>
    %c0_47 = arith.constant 0 : index
    %c0_48 = arith.constant 0 : index
    %93 = vector.load %arg15[%c0_47, %c0_48] : memref<8x4xf32, #tpu.memory_space<vmem>>, vector<8x4xf32>
    %cst_49 = arith.constant dense<0.000000e+00> : vector<8x384xf32>
    %94 = tpu.matmul %93, %1, %cst_49 {dimension_numbers = #tpu.dot_dimension_numbers<[1], [0], [0], [1], [0, 0, 1, 1], [], []>} : vector<8x4xf32>, vector<4x384xf32>, vector<8x384xf32> -> vector<8x384xf32>
    %c0_50 = arith.constant 0 : index
    %c0_51 = arith.constant 0 : index
    %95 = vector.load %arg16[%c0_50, %c0_51] : memref<8x1xf32, #tpu.memory_space<vmem>>, vector<8x1xf32>
    %96 = vector.broadcast %95 : vector<8x1xf32> to vector<8x384xf32>
    %97 = arith.addf %94, %96 : vector<8x384xf32>
    %c0_52 = arith.constant 0 : index
    %98 = memref.load %arg17[%c0_52] : memref<1xf32, #tpu.memory_space<smem>>
    %99 = vector.broadcast %98 : f32 to vector<8x384xf32>
    %100 = arith.mulf %99, %92 : vector<8x384xf32>
    %101 = arith.addf %97, %100 : vector<8x384xf32>
    %c0_53 = arith.constant 0 : index
    %c0_54 = arith.constant 0 : index
    %c0_55 = arith.constant 0 : index
    %102 = vector.load %arg18[%c0_53, %c0_54, %c0_55] : memref<1x8x384xf32, #tpu.memory_space<vmem>>, vector<1x8x384xf32>
    %103 = vector.shape_cast %102 : vector<1x8x384xf32> to vector<8x384xf32>
    %104 = vector.shape_cast %101 : vector<8x384xf32> to vector<1x8x384xf32>
    tpu.vector_store %arg18[%c0_53, %c0_54, %c0_55], %104 {strides = array<i32>} : memref<1x8x384xf32, #tpu.memory_space<vmem>>, vector<1x8x384xf32>,
    return
  }
  func.func @transform_0(%arg0: i32) -> (i32, i32, i32) {
    %c0_i32 = arith.constant 0 : i32
    %c0_i32_0 = arith.constant 0 : i32
    %c0_i32_1 = arith.constant 0 : i32
    return %arg0, %c0_i32, %c0_i32_0 : i32, i32, i32
  }
  func.func @transform_1(%arg0: i32) -> (i32, i32) {
    %c0_i32 = arith.constant 0 : i32
    %c0_i32_0 = arith.constant 0 : i32
    %c0_i32_1 = arith.constant 0 : i32
    return %c0_i32, %c0_i32_0 : i32, i32
  }
  func.func @transform_2(%arg0: i32) -> (i32, i32, i32) {
    %c0_i32 = arith.constant 0 : i32
    %c0_i32_0 = arith.constant 0 : i32
    %c0_i32_1 = arith.constant 0 : i32
    return %arg0, %c0_i32, %c0_i32_0 : i32, i32, i32
  }
  func.func @transform_3(%arg0: i32) -> (i32, i32, i32) {
    %c0_i32 = arith.constant 0 : i32
    %c0_i32_0 = arith.constant 0 : i32
    %c0_i32_1 = arith.constant 0 : i32
    return %arg0, %c0_i32, %c0_i32_0 : i32, i32, i32
  }
  func.func @transform_4(%arg0: i32) -> (i32, i32, i32) {
    %c0_i32 = arith.constant 0 : i32
    %c0_i32_0 = arith.constant 0 : i32
    %c0_i32_1 = arith.constant 0 : i32
    return %arg0, %c0_i32, %c0_i32_0 : i32, i32, i32
  }
  func.func @transform_5(%arg0: i32) -> (i32, i32, i32) {
    %c0_i32 = arith.constant 0 : i32
    %c0_i32_0 = arith.constant 0 : i32
    %c0_i32_1 = arith.constant 0 : i32
    return %arg0, %c0_i32, %c0_i32_0 : i32, i32, i32
  }
  func.func @transform_6(%arg0: i32) -> (i32, i32) {
    %c0_i32 = arith.constant 0 : i32
    %c0_i32_0 = arith.constant 0 : i32
    %c0_i32_1 = arith.constant 0 : i32
    return %c0_i32, %c0_i32_0 : i32, i32
  }
  func.func @transform_7(%arg0: i32) -> (i32, i32) {
    %c0_i32 = arith.constant 0 : i32
    %c0_i32_0 = arith.constant 0 : i32
    %c0_i32_1 = arith.constant 0 : i32
    return %c0_i32, %c0_i32_0 : i32, i32
  }
  func.func @transform_8(%arg0: i32) -> (i32, i32, i32) {
    %c0_i32 = arith.constant 0 : i32
    %c0_i32_0 = arith.constant 0 : i32
    %c0_i32_1 = arith.constant 0 : i32
    return %arg0, %c0_i32, %c0_i32_0 : i32, i32, i32
  }
  func.func @transform_9(%arg0: i32) -> (i32, i32, i32) {
    %c0_i32 = arith.constant 0 : i32
    %c0_i32_0 = arith.constant 0 : i32
    %c0_i32_1 = arith.constant 0 : i32
    return %arg0, %c0_i32, %c0_i32_0 : i32, i32, i32
  }
  func.func @transform_10(%arg0: i32) -> (i32, i32, i32) {
    %c0_i32 = arith.constant 0 : i32
    %c0_i32_0 = arith.constant 0 : i32
    %c0_i32_1 = arith.constant 0 : i32
    return %arg0, %c0_i32, %c0_i32_0 : i32, i32, i32
  }
  func.func @transform_11(%arg0: i32) -> (i32, i32, i32) {
    %c0_i32 = arith.constant 0 : i32
    %c0_i32_0 = arith.constant 0 : i32
    %c0_i32_1 = arith.constant 0 : i32
    return %arg0, %c0_i32, %c0_i32_0 : i32, i32, i32
  }
  func.func @transform_12(%arg0: i32) -> (i32, i32) {
    %c0_i32 = arith.constant 0 : i32
    %c0_i32_0 = arith.constant 0 : i32
    %c0_i32_1 = arith.constant 0 : i32
    return %c0_i32, %c0_i32_0 : i32, i32
  }
  func.func @transform_13(%arg0: i32) -> (i32, i32) {
    %c0_i32 = arith.constant 0 : i32
    %c0_i32_0 = arith.constant 0 : i32
    %c0_i32_1 = arith.constant 0 : i32
    return %c0_i32, %c0_i32_0 : i32, i32
  }
  func.func @transform_14(%arg0: i32) -> (i32, i32) {
    %c0_i32 = arith.constant 0 : i32
    %c0_i32_0 = arith.constant 0 : i32
    %c0_i32_1 = arith.constant 0 : i32
    return %c0_i32, %c0_i32_0 : i32, i32
  }
  func.func @transform_15(%arg0: i32) -> (i32, i32) {
    %c0_i32 = arith.constant 0 : i32
    %c0_i32_0 = arith.constant 0 : i32
    %c0_i32_1 = arith.constant 0 : i32
    return %c0_i32, %c0_i32_0 : i32, i32
  }
  func.func @transform_16(%arg0: i32) -> i32 {
    %c0_i32 = arith.constant 0 : i32
    %c0_i32_0 = arith.constant 0 : i32
    return %c0_i32 : i32
  }
  func.func @transform_17(%arg0: i32) -> (i32, i32, i32) {
    %c0_i32 = arith.constant 0 : i32
    %c0_i32_0 = arith.constant 0 : i32
    %c0_i32_1 = arith.constant 0 : i32
    return %arg0, %c0_i32, %c0_i32_0 : i32, i32, i32
  }
}

</mosaic_0001>

<bundles_post_ra>
// kernel: g_block_forward.3
= control target key start
LH: loop header
LB: loop body
LE: loop exit
PB: predicated region body
PF: predicated region fallthrough
CT: control target
= control target key end

     0   :  { %s1964_s26 = smov 0   ;;  %s2287_s0 = inlined_call_operand.vmem [shape: f32[2,4,384], index: 0, kind: input, shape index: {}]   ;;  %s2288_s1 = inlined_call_operand.vmem [shape: f32[1,384], index: 1, kind: input, shape index: {}]   ;;  %s2289_s2 = inlined_call_operand.vmem [shape: f32[2,4,1], index: 2, kind: input, shape index: {}]   ;;  %s2290_s3 = inlined_call_operand.vmem [shape: f32[2,4,1], index: 3, kind: input, shape index: {}]   ;;  %s2291_s4 = inlined_call_operand.vmem [shape: f32[2,4,1], index: 4, kind: input, shape index: {}]   ;;  %s2292_s5 = inlined_call_operand.vmem [shape: f32[2,4,1], index: 5, kind: input, shape index: {}]   ;;  %s2293_s6 = inlined_call_operand.vmem [shape: f32[8,36], index: 6, kind: input, shape index: {}]   ;;  %s2294_s7 = inlined_call_operand.vmem [shape: f32[8,1], index: 7, kind: input, shape index: {}]   ;;  %s2295_s8 = inlined_call_operand.vmem [shape: f32[2,8,1], index: 8, kind: input, shape index: {}]   ;;  %s2296_s9 = inlined_call_operand.vmem [shape: f32[2,8,1], index: 9, kind: input, shape index: {}]   ;;  %s2297_s10 = inlined_call_operand.vmem [shape: f32[2,8,1], index: 10, kind: input, shape index: {}]   ;;  %s2298_s11 = inlined_call_operand.vmem [shape: f32[2,8,1], index: 11, kind: input, shape index: {}]   ;;  %s2299_s12 = inlined_call_operand.vmem [shape: f32[8,72], index: 12, kind: input, shape index: {}]   ;;  %s2300_s13 = inlined_call_operand.vmem [shape: f32[8,1], index: 13, kind: input, shape index: {}]   ;;  %s2301_s14 = inlined_call_operand.vmem [shape: f32[8,4], index: 14, kind: input, shape index: {}]   ;;  %s2302_s15 = inlined_call_operand.vmem [shape: f32[8,1], index: 15, kind: input, shape index: {}]   ;;  %s2303_s16 = inlined_call_operand.<no memory space> [shape: f32[1], index: 16, kind: input, shape index: {}]   ;;  %s2304_s17 = inlined_call_operand.vmem [shape: f32[2,8,384], index: 17, kind: output, shape index: {}]  }
   0x1   :  { %2321 = sst [smem:[#allocation3_spill]] %s2287_s0 }
   0x2   :  { %2322 = sst [smem:[#allocation4_spill]] %s2288_s1 }
   0x3   :  { %22 = sst [smem:[#allocation2]] %s2303_s16 }
   0x4 LB: > { %s1738_s27 = sadd.s32 4294967295, %s1857_s26   ;;  %p1742_p0 = scmp.ge.s32.totalorder %s1857_s26, 1  ;;  %s1857_s26 = sphi %s1964_s26, %s28_s26  }
   0x5   : > { %p560_p1 = scmp.lt.s32.totalorder %s1857_s26, 3 }
   0x7   : > { %p561_p2 = pnand %p1742_p0, %p560_p1 }
   0x8   : > { %p644_p3 = scmp.lt.s32.totalorder (!%p561_p2), %s1738_s27, 1  ;;  %s2323_s30 = sld [smem:[#allocation3_spill]] (!%p561_p2) }
   0x9   : > { %564 = sbr.rel (%p561_p2) target bundleno = 1169 (0x491), region = 88  ;;  %s2319_s1 = smov (!%p561_p2), 19  }
   0xa   : > { %s2309_s20 = smov (!%p561_p2), 90   ;;  %s2307_s22 = smov (!%p561_p2), 109  }
   0xb   : > { %s2305_s23 = smov (!%p561_p2), 126   ;;  %s2317_s28 = smov (!%p561_p2), 110  }
   0xc   : > { %s1869_s29 = smov (!%p561_p2), 127   ;;  %s2332_s18 = smov (!%p561_p2), 126  }
   0xe   : > { %v1859_v0 = vmov 0   ;;  %s2334_s27 = smov (!%p644_p3, %s1738_s27), 1  ;;  %v748_v9 = vlaneseq  ;;  %vm776_vm6 = vcmask 154624   ;;  %v1863_v54 = vmov 0.0   ;;  %v921_v60 = vld [vmem:[%s2294_s7] sm:$0xff] }
   0xf   : > { %1848 = vset.pattern.permute.xlu0 %v1859_v0  ;;  %1849 = vset.pattern.permute.xlu1 %v1859_v0  ;;  %s1744_s16 = sshll.u32 %s2334_s27, 2  ;;  %s1826_s25 = smul.u32 12, %s2334_s27  ;;  %vm1870_vm7 = vmmov 0   ;;  %vm904_vm8 = vcmask 736256   ;;  %vm908_vm9 = vcmask 1043456   ;;  %vm874_vm10 = vcmask 752640  }
  0x10   : > { %s652_s0 = scalar_lea.vmem %s2289_s2, %s1744_s16  ;;  %s660_s19 = scalar_lea.vmem %s2291_s4, %s1744_s16  ;;  %v749_v18 = vshrl.u32 %v748_v9, 7  ;;  %1787 = vmatprep.subr.mxu1 %v1863_v54  ;;  %1001 = vmatprep.mubr.f32.mxu0 %v1863_v54  ;;  %vm889_vm11 = vcmask 744448   ;;  %vm859_vm12 = vcmask 883712   ;;  %vm844_vm13 = vcmask 891904  }
  0x11   : > { %v689_v1 = vld [vmem:[%s652_s0] sm:$0xf]  ;;  %s656_s21 = scalar_lea.vmem %s2290_s3, %s1744_s16  ;;  %s664_s24 = scalar_lea.vmem %s2292_s5, %s1744_s16  ;;  %1797 = vmatprep.mubr.msk.f32.mxu1 %vm1870_vm7, %v1863_v54  ;;  %vm814_vm14 = vcmask 1031168   ;;  %vm829_vm15 = vcmask 900096  }
  0x12   : > { %v720_v2 = vld [vmem:[%s660_s19] sm:$0xf]  ;;  %692 = vperm.xlu0 %1848, %v689_v1   ;;  %s648_s0 = scalar_lea.vmem %s2323_s30, %s1826_s25  ;;  %v750_v23 = vsub.s32 0, %v749_v18  ;;  %s2324_s19 = sld [smem:[#allocation4_spill]]  ;;  %v754_v28 = vsub.s32 1, %v749_v18  ;;  %v758_v36 = vsub.s32 2, %v749_v18 }
  0x13   : > { %723 = vperm.xlu1 %1849, %v720_v2   ;;  %v702_v3 = vld [vmem:[%s656_s21] sm:$0xf]  ;;  %v1997_v8 = vld [vmem:[%s648_s0 + $0x8] sm:$0xf]  ;;  %s2311_s21 = smov 92   ;;  %s2313_s25 = smov 108  }
  0x14   : > { %v729_v4 = vld [vmem:[%s664_s24] sm:$0xf]  ;;  %s2315_s24 = smov 91   ;;  %s1748_s30 = sshll.u32 %s2334_s27, 3 }
  0x15   : > { %v1991_v5 = vld [vmem:[%s648_s0] sm:$0xff]  ;;  %s680_s16 = scalar_lea.vmem %s2298_s11, %s1748_s30 }
  0x16   : > { %705 = vperm.xlu0 %1848, %v702_v3   ;;  %v1995_v6 = vcombine.high %v1991_v5, %v1991_v5  ;;  %v1114_v0 = vld [vmem:[%s680_s16] sm:$0xff] }
  0x17   : > { %732 = vperm.xlu1 %1849, %v729_v4  }
  0x18   : > { %v688_v27 = vld [vmem:[%s2324_s19] sm:$0x7] }
  0x19   : > { %v2005_v35 = vrot.slane %v688_v27, %v750_v23  ;;  %v2007_v38 = vrot.slane %v688_v27, %v754_v28  ;;  %v2010_v44 = vrot.slane %v688_v27, %v758_v36 }
  0x8d   : > { %v693_v7 = vpop.permute.xlu0 %692 }
  0x8e   : > { %v699_v10 = vmul.f32 %v693_v7, %v1991_v5  ;;  %v700_v11 = vmul.f32 %v1995_v6, %v693_v7  ;;  %v701_v12 = vmul.f32 %v693_v7, %v1997_v8  ;;  %v724_v14 = vpop.permute.xlu1 %723 }
  0x91   : > { %v706_v13 = vpop.permute.xlu0 %705 }
  0x92   : > { %v708_v15 = vadd.f32 %v706_v13, %v699_v10  ;;  %v709_v16 = vadd.f32 %v706_v13, %v700_v11  ;;  %v710_v17 = vadd.f32 %v706_v13, %v701_v12  ;;  %v733_v29 = vpop.permute.xlu1 %732 }
  0x94   : > { %vm711_vm0 = vcmp.ge.f32.partialorder %v708_v15, 0.0  ;;  %vm712_vm1 = vcmp.ge.f32.partialorder %v709_v16, 0.0  ;;  %vm713_vm2 = vcmp.ge.f32.partialorder %v710_v17, 0.0  ;;  %v714_v19 = vmul.f32 0.2, %v708_v15 }
  0x95   : > { %v715_v20 = vmul.f32 0.2, %v709_v16  ;;  %v716_v21 = vmul.f32 0.2, %v710_v17 }
  0x96   : > { %v717_v22 = vsel %vm711_vm0, %v708_v15, %v714_v19  ;;  %vm799_vm0 = vcmask 1039360  }
  0x97   : > { %v718_v24 = vsel %vm712_vm1, %v709_v16, %v715_v20  ;;  %v719_v25 = vsel %vm713_vm2, %v710_v17, %v716_v21  ;;  %v726_v26 = vmul.f32 %v724_v14, %v717_v22  ;;  %vm927_vm1 = vcmask 293888  }
  0x98   : > { %v727_v30 = vmul.f32 %v724_v14, %v718_v24  ;;  %v728_v31 = vmul.f32 %v724_v14, %v719_v25 }
  0x99   : > { %v735_v32 = vadd.f32 %v733_v29, %v726_v26 }
  0x9a   : > { %v736_v33 = vadd.f32 %v733_v29, %v727_v30  ;;  %v737_v34 = vadd.f32 %v733_v29, %v728_v31 }
  0x9b   : > { %v741_v37 = vmul.f32 0.2, %v735_v32  ;;  %vm738_vm3 = vcmp.ge.f32.partialorder %v735_v32, 0.0 }
  0x9c   : > { %v742_v39 = vmul.f32 0.2, %v736_v33  ;;  %v743_v40 = vmul.f32 0.2, %v737_v34  ;;  %vm739_vm4 = vcmp.ge.f32.partialorder %v736_v33, 0.0  ;;  %vm740_vm5 = vcmp.ge.f32.partialorder %v737_v34, 0.0 }
  0x9d   : > { %v744_v41 = vsel %vm738_vm3, %v735_v32, %v741_v37 }
  0x9e   : > { %v763_v42 = vmul.f32 %v2005_v35, %v744_v41  ;;  %v745_v43 = vsel %vm739_vm4, %v736_v33, %v742_v39  ;;  %v746_v46 = vsel %vm740_vm5, %v737_v34, %v743_v40 }
  0x9f   : > { %v764_v45 = vmul.f32 %v2007_v38, %v745_v43  ;;  %v765_v47 = vmul.f32 %v2010_v44, %v746_v46 }
  0xa0   : > { %770 = vrot.lane.b32.xlu0 %v763_v42, %s2319_s1 }
  0xa1   : > { %772 = vrot.lane.b32.xlu1 %v764_v45, %s2319_s1 }
  0xa4   : > { %774 = vrot.lane.b32.xlu0 %v765_v47, %s2319_s1 }
 0x112   : > { %v771_v48 = vpop.permute.xlu0 %770 }
 0x113   : > { %v773_v49 = vpop.permute.xlu1 %772  ;;  %v2030_v53 = vsel %vm776_vm6, 0.0, %v771_v48 }
 0x114   : > { %v2018_v50 = vsel %vm776_vm6, %v771_v48, %v773_v49  ;;  %v787_v58 = vrot.slane %v2030_v53, 4 }
 0x115   : > { %898 = vrot.lane.b32.xlu1 %v2018_v50, %s2309_s20  ;;  %v788_v57 = vrot.slane %v2018_v50, 4 }
 0x116   : > { %v775_v51 = vpop.permute.xlu0 %774 }
 0x117   : > { %v2023_v52 = vsel %vm776_vm6, %v773_v49, %v775_v51  ;;  %v784_v55 = vsel %vm776_vm6, %v775_v51, 0.0 }
 0x118   : > { %900 = vrot.lane.b32.xlu0 %v2023_v52, %s2309_s20  ;;  %v789_v56 = vrot.slane %v2023_v52, 4  ;;  %v790_v59 = vrot.slane %v784_v55, 4 }
 0x119   : > { %868 = vrot.lane.b32.xlu1 %v2018_v50, %s2311_s21 }
 0x11c   : > { %870 = vrot.lane.b32.xlu0 %v2023_v52, %s2311_s21 }
 0x11d   : > { %896 = vrot.lane.b32.xlu1 %v2030_v53, %s2309_s20 }
 0x120   : > { %866 = vrot.lane.b32.xlu0 %v2030_v53, %s2311_s21 }
 0x121   : > { %840 = vrot.lane.b32.xlu1 %v2023_v52, %s2307_s22 }
 0x124   : > { %838 = vrot.lane.b32.xlu0 %v2018_v50, %s2307_s22 }
 0x125   : > { %836 = vrot.lane.b32.xlu1 %v2030_v53, %s2307_s22 }
 0x128   : > { %902 = vrot.lane.b32.xlu0 %v784_v55, %s2309_s20 }
 0x129   : > { %872 = vrot.lane.b32.xlu1 %v784_v55, %s2311_s21  ;;  %s672_s21 = scalar_lea.vmem %s2296_s9, %s1748_s30 }
 0x12a   : > { %v1087_v62 = vld [vmem:[%s672_s21] sm:$0xff]  ;;  %s2325_s21 = smov 19  }
 0x12c   : > { %810 = vrot.lane.b32.xlu0 %v2023_v52, %s2305_s23 }
 0x12d   : > { %808 = vrot.lane.b32.xlu1 %v2018_v50, %s2305_s23 }
 0x130   : > { %812 = vrot.lane.b32.xlu0 %v784_v55, %s2305_s23 }
 0x131   : > { %806 = vrot.lane.b32.xlu1 %v2030_v53, %s2305_s23  ;;  %s668_s23 = scalar_lea.vmem %s2295_s8, %s1748_s30 }
 0x132   : > { %v1078_v61 = vld [vmem:[%s668_s23] sm:$0xff]  ;;  %s2327_s23 = smov 92  }
 0x134   : > { %885 = vrot.lane.b32.xlu0 %v789_v56, %s2315_s24 }
 0x135   : > { %842 = vrot.lane.b32.xlu1 %v784_v55, %s2307_s22  ;;  %s2326_s22 = smov 91  }
 0x138   : > { %853 = vrot.lane.b32.xlu0 %v788_v57, %s2313_s25 }
 0x139   : > { %883 = vrot.lane.b32.xlu1 %v788_v57, %s2315_s24 }
 0x13c   : > { %851 = vrot.lane.b32.xlu0 %v787_v58, %s2313_s25 }
 0x13d   : > { %881 = vrot.lane.b32.xlu1 %v787_v58, %s2315_s24 }
 0x140   : > { %887 = vrot.lane.b32.xlu0 %v790_v59, %s2315_s24  ;;  %s2328_s24 = smov 90  }
 0x141   : > { %855 = vrot.lane.b32.xlu1 %v789_v56, %s2313_s25 }
 0x144   : > { %825 = vrot.lane.b32.xlu0 %v789_v56, %s2317_s28 }
 0x145   : > { %823 = vrot.lane.b32.xlu1 %v788_v57, %s2317_s28 }
 0x148   : > { %821 = vrot.lane.b32.xlu0 %v787_v58, %s2317_s28 }
 0x149   : > { %793 = vrot.lane.b32.xlu1 %v788_v57, %s1869_s29 }
 0x14c   : > { %857 = vrot.lane.b32.xlu0 %v790_v59, %s2313_s25  ;;  %s2329_s25 = smov 108  }
 0x14d   : > { %791 = vrot.lane.b32.xlu1 %v787_v58, %s1869_s29 }
 0x150   : > { %795 = vrot.lane.b32.xlu0 %v789_v56, %s1869_s29 }
 0x151   : > { %827 = vrot.lane.b32.xlu1 %v790_v59, %s2317_s28  ;;  %s676_s28 = scalar_lea.vmem %s2297_s10, %s1748_s30  ;;  %s2331_s30 = smov 110  }
 0x152   : > { %v1105_v63 = vld [vmem:[%s676_s28] sm:$0xff]  ;;  %s2330_s28 = smov 109  }
 0x154   : > { %797 = vrot.lane.b32.xlu0 %v790_v59, %s1869_s29 }
 0x155   : > { %924 = vperm.xlu1 %1849, %v921_v60  }
 0x158   : > { %1081 = vperm.xlu0 %1848, %v1078_v61  }
 0x159   : > { %1090 = vperm.xlu1 %1849, %v1087_v62  }
 0x15c   : > { %1108 = vperm.xlu0 %1848, %v1105_v63  }
 0x15d   : > { %1117 = vperm.xlu1 %1849, %v1114_v0  }
 0x187   : > { %v899_v1 = vpop.permute.xlu1 %898 }
 0x18a   : > { %v901_v2 = vpop.permute.xlu0 %900 }
 0x18b   : > { %v869_v3 = vpop.permute.xlu1 %868  ;;  %v906_v4 = vsel %vm904_vm8, %v899_v1, %v901_v2 }
 0x18c   : > { %1753 = vmatprep.subr.msk.mxu0 %vm908_vm9, %v906_v4 }
 0x18e   : > { %v871_v7 = vpop.permute.xlu0 %870 }
 0x18f   : > { %v897_v9 = vpop.permute.xlu1 %896  ;;  %v876_v26 = vsel %vm874_vm10, %v869_v3, %v871_v7 }
 0x190   : > { %v905_v10 = vsel %vm904_vm8, %v897_v9, %v899_v1 }
 0x191   : > { %1754 = vmatpush1.msk.msra.mxu0 %vm908_vm9, %v905_v10 }
 0x192   : > { %v867_v11 = vpop.permute.xlu0 %866 }
 0x193   : > { %v841_v12 = vpop.permute.xlu1 %840  ;;  %v875_v31 = vsel %vm874_vm10, %v867_v11, %v869_v3 }
 0x196   : > { %v839_v13 = vpop.permute.xlu0 %838 }
 0x197   : > { %v837_v14 = vpop.permute.xlu1 %836  ;;  %v846_v41 = vsel %vm844_vm13, %v839_v13, %v841_v12 }
 0x198   : > { %v845_v45 = vsel %vm844_vm13, %v837_v14, %v839_v13  ;;  %v766_v13 = vld [vmem:[%s2293_s6] sm:$0xff] }
 0x19a   : > { %v903_v15 = vpop.permute.xlu0 %902 }
 0x19b   : > { %v873_v16 = vpop.permute.xlu1 %872  ;;  %v907_v17 = vsel %vm904_vm8, %v901_v2, %v903_v15 }
 0x19c   : > { %1788 = vmatpush3.msk.msra.mxu1 %vm908_vm9, %v907_v17  ;;  %v877_v36 = vsel %vm874_vm10, %v871_v7, %v873_v16 }
 0x19d   : > { %1789 = vmatprep.subr.mxu1 %v1863_v54 }
 0x19e   : > { %v2101_v18 = vpop.permute.xlu0 %810 }
 0x19f   : > { %v809_v19 = vpop.permute.xlu1 %808 }
 0x1a0   : > { %v816_v51 = vsel %vm814_vm14, %v809_v19, %v2101_v18 }
 0x1a2   : > { %v813_v20 = vpop.permute.xlu0 %812 }
 0x1a3   : > { %v807_v21 = vpop.permute.xlu1 %806  ;;  %v817_v10 = vsel %vm814_vm14, %v2101_v18, %v813_v20 }
 0x1a4   : > { %v815_v58 = vsel %vm814_vm14, %v807_v21, %v809_v19 }
 0x1a6   : > { %v886_v22 = vpop.permute.xlu0 %885 }
 0x1a7   : > { %v843_v23 = vpop.permute.xlu1 %842 }
 0x1a8   : > { %v847_v63 = vsel %vm844_vm13, %v841_v12, %v843_v23 }
 0x1aa   : > { %v854_v24 = vpop.permute.xlu0 %853 }
 0x1ab   : > { %v884_v25 = vpop.permute.xlu1 %883 }
 0x1ac   : > { %v891_v27 = vsel %vm889_vm11, %v884_v25, %v886_v22 }
 0x1ad   : > { %v919_v28 = vsel %vm908_vm9, %v876_v26, %v891_v27 }
 0x1ae   : > { %961 = vmatprep.subr.mxu0 %v919_v28  ;;  %v852_v29 = vpop.permute.xlu0 %851 }
 0x1af   : > { %v882_v30 = vpop.permute.xlu1 %881  ;;  %v860_v37 = vsel %vm859_vm12, %v852_v29, %v854_v24 }
 0x1b0   : > { %v890_v32 = vsel %vm889_vm11, %v882_v30, %v884_v25  ;;  %v915_v48 = vsel %vm908_vm9, %v845_v45, %v860_v37 }
 0x1b1   : > { %v918_v33 = vsel %vm908_vm9, %v875_v31, %v890_v32 }
 0x1b2   : > { %962 = vmatpush1.msra.mxu0 %v918_v33  ;;  %v888_v34 = vpop.permute.xlu0 %887 }
 0x1b3   : > { %v892_v39 = vsel %vm889_vm11, %v886_v22, %v888_v34  ;;  %v856_v40 = vpop.permute.xlu1 %855 }
 0x1b4   : > { %v861_v42 = vsel %vm859_vm12, %v854_v24, %v856_v40  ;;  %v920_v43 = vsel %vm908_vm9, %v877_v36, %v892_v39 }
 0x1b5   : > { %v916_v46 = vsel %vm908_vm9, %v846_v41, %v861_v42  ;;  %1790 = vmatpush3.msra.mxu1 %v920_v43 }
 0x1b6   : > { %963 = vmatprep.subr.mxu0 %v916_v46  ;;  %v826_v47 = vpop.permute.xlu0 %825  ;;  %1791 = vmatprep.subr.mxu1 %v1863_v54 }
 0x1b7   : > { %964 = vmatpush1.msra.mxu0 %v915_v48  ;;  %v824_v49 = vpop.permute.xlu1 %823 }
 0x1b8   : > { %v831_v55 = vsel %vm829_vm15, %v824_v49, %v826_v47 }
 0x1b9   : > { %v913_v56 = vsel %vm908_vm9, %v816_v51, %v831_v55 }
 0x1ba   : > { %965 = vmatprep.subr.mxu0 %v913_v56  ;;  %v822_v57 = vpop.permute.xlu0 %821 }
 0x1bb   : > { %v830_v59 = vsel %vm829_vm15, %v822_v57, %v824_v49  ;;  %v794_v60 = vpop.permute.xlu1 %793 }
 0x1bc   : > { %v912_v61 = vsel %vm908_vm9, %v815_v58, %v830_v59 }
 0x1bd   : > { %966 = vmatpush1.msra.mxu0 %v912_v61 }
 0x1be   : > { %v858_v62 = vpop.permute.xlu0 %857 }
 0x1bf   : > { %v862_v0 = vsel %vm859_vm12, %v856_v40, %v858_v62  ;;  %v792_v1 = vpop.permute.xlu1 %791 }
 0x1c0   : > { %v917_v2 = vsel %vm908_vm9, %v847_v63, %v862_v0  ;;  %v800_v3 = vsel %vm799_vm0, %v792_v1, %v794_v60 }
 0x1c1   : > { %1792 = vmatpush3.msra.mxu1 %v917_v2  ;;  %v909_v15 = vsel %vm908_vm9, %v2030_v53, %v800_v3  ;;  %v1419_v2 = vld [vmem:[%s2302_s15] sm:$0xff] }
 0x1c2   : > { %v796_v4 = vpop.permute.xlu0 %795  ;;  %1793 = vmatprep.subr.mxu1 %v1863_v54  ;;  %v1267_v3 = vld [vmem:[%s2300_s13] sm:$0xff] }
 0x1c3   : > { %v801_v7 = vsel %vm799_vm0, %v794_v60, %v796_v4  ;;  %v828_v9 = vpop.permute.xlu1 %827 }
 0x1c4   : > { %v832_v11 = vsel %vm829_vm15, %v826_v47, %v828_v9  ;;  %v910_v12 = vsel %vm908_vm9, %v2018_v50, %v801_v7 }
 0x1c5   : > { %967 = vmatprep.subr.mxu0 %v910_v12  ;;  %v914_v14 = vsel %vm908_vm9, %v817_v10, %v832_v11 }
 0x1c6   : > { %1794 = vmatpush3.msra.mxu1 %v914_v14  ;;  %v798_v16 = vpop.permute.xlu0 %797  ;;  %968 = vmatpush1.msra.mxu0 %v909_v15 }
 0x1c7   : > { %v802_v17 = vsel %vm799_vm0, %v796_v4, %v798_v16  ;;  %1755 = vmatmul.mubr.msk.f32.vlgmr.msra.gmra.mxu0 %vm927_vm1, %v766_v13  ;;  %1795 = vmatprep.subr.mxu1 %v1863_v54 }
 0x1c8   : > { %v911_v50 = vsel %vm908_vm9, %v2023_v52, %v802_v17  ;;  %1341 = vmatprep.mubr.f32.mxu0 %v1863_v54 }
 0x1c9   : > { %1796 = vmatpush3.msra.mxu1 %v911_v50 }
 0x1ca   : > { %1798 = vmatmul.mubr.msk.f32.vlgmr.msra.gmra.mxu1 %vm927_vm1, %v766_v13  ;;  %1800 = vmatprep.subr.mxu1 %v1863_v54 }
 0x1cb   : > { %1818 = vmatprep.mubr.msk.f32.mxu1 %vm1870_vm7, %v1863_v54 }
 0x1d0   : > { %v925_v53 = vpop.permute.xlu1 %924 }
 0x1d3   : > { %v1082_v20 = vpop.permute.xlu0 %1081 }
 0x1d4   : > { %v1091_v25 = vpop.permute.xlu1 %1090 }
 0x1d7   : > { %v1109_v33 = vpop.permute.xlu0 %1108 }
 0x1d8   : > { %v1118_v40 = vpop.permute.xlu1 %1117 }
 0x287   : > { %v1003_v18 = vpop.f32.mrf.mxu0 }
 0x288   : > { %v1004_v19 = vadd.f32 %v1003_v18, %v925_v53 }
 0x289   : > { %v1005_v21 = vpop.f32.mrf.mxu0 }
 0x28a   : > { %v1084_v22 = vmul.f32 %v1082_v20, %v1004_v19  ;;  %v1006_v23 = vadd.f32 %v1005_v21, %v925_v53  ;;  %v1074_v24 = vpop.f32.mrf.mxu1 }
 0x28b   : > { %v1075_v26 = vadd.f32 %v1074_v24, %v925_v53 }
 0x28c   : > { %v1093_v52 = vadd.f32 %v1091_v25, %v1084_v22  ;;  %v1085_v27 = vmul.f32 %v1082_v20, %v1006_v23  ;;  %v1799_v28 = vpop.f32.mrf.mxu1 }
 0x28d   : > { %v1086_v29 = vmul.f32 %v1082_v20, %v1075_v26 }
 0x28e   : > { %vm1096_vm2 = vcmp.ge.f32.partialorder %v1093_v52, 0.0  ;;  %v1099_v30 = vmul.f32 0.2, %v1093_v52  ;;  %v1094_v31 = vadd.f32 %v1091_v25, %v1085_v27 }
 0x28f   : > { %v1095_v32 = vadd.f32 %v1091_v25, %v1086_v29 }
 0x290   : > { %v1102_v34 = vsel %vm1096_vm2, %v1093_v52, %v1099_v30  ;;  %vm1097_vm3 = vcmp.ge.f32.partialorder %v1094_v31, 0.0  ;;  %v1100_v36 = vmul.f32 0.2, %v1094_v31 }
 0x291   : > { %v1111_v37 = vmul.f32 %v1109_v33, %v1102_v34  ;;  %vm1098_vm4 = vcmp.ge.f32.partialorder %v1095_v32, 0.0  ;;  %v1101_v39 = vmul.f32 0.2, %v1095_v32 }
 0x292   : > { %v1103_v41 = vsel %vm1097_vm3, %v1094_v31, %v1100_v36 }
 0x293   : > { %v1112_v42 = vmul.f32 %v1109_v33, %v1103_v41  ;;  %v1104_v43 = vsel %vm1098_vm4, %v1095_v32, %v1101_v39  ;;  %v1120_v45 = vadd.f32 %v1118_v40, %v1111_v37 }
 0x294   : > { %v1113_v46 = vmul.f32 %v1109_v33, %v1104_v43 }
 0x295   : > { %vm1123_vm5 = vcmp.ge.f32.partialorder %v1120_v45, 0.0  ;;  %v1126_v47 = vmul.f32 0.2, %v1120_v45  ;;  %v1121_v48 = vadd.f32 %v1118_v40, %v1112_v42 }
 0x296   : > { %v1122_v49 = vadd.f32 %v1118_v40, %v1113_v46 }
 0x297   : > { %v1129_v51 = vsel %vm1123_vm5, %v1120_v45, %v1126_v47  ;;  %vm1124_vm1 = vcmp.ge.f32.partialorder %v1121_v48, 0.0  ;;  %v1127_v55 = vmul.f32 0.2, %v1121_v48 }
 0x298   : > { %v1132_v56 = vmul.f32 %v1129_v51, %v2005_v35  ;;  %vm1125_vm2 = vcmp.ge.f32.partialorder %v1122_v49, 0.0  ;;  %v1128_v57 = vmul.f32 0.2, %v1122_v49 }
 0x299   : > { %v1130_v58 = vsel %vm1124_vm1, %v1121_v48, %v1127_v55 }
 0x29a   : > { %1139 = vrot.lane.b32.xlu0 %v1132_v56, %s2325_s21  ;;  %v1133_v59 = vmul.f32 %v1130_v58, %v2007_v38  ;;  %v1131_v60 = vsel %vm1125_vm2, %v1122_v49, %v1128_v57 }
 0x29b   : > { %v1134_v61 = vmul.f32 %v1131_v60, %v2010_v44 }
 0x29c   : > { %1141 = vrot.lane.b32.xlu1 %v1133_v59, %s2325_s21 }
 0x29e   : > { %1143 = vrot.lane.b32.xlu0 %v1134_v61, %s2325_s21 }
 0x30c   : > { %v2157_v62 = vpop.permute.xlu0 %1139 }
 0x30d   : > { %v1151_v63 = vsel %vm776_vm6, 0.0, %v2157_v62 }
 0x30e   : > { %1239 = vrot.lane.b32.xlu0 %v1151_v63, %s2326_s22  ;;  %v1142_v38 = vpop.permute.xlu1 %1141 }
 0x30f   : > { %v2183_v1 = vsel %vm776_vm6, %v2157_v62, %v1142_v38 }
 0x310   : > { %v1144_v35 = vpop.permute.xlu0 %1143 }
 0x311   : > { %v1152_v0 = vsel %vm776_vm6, %v1144_v35, 0.0  ;;  %v2176_v44 = vsel %vm776_vm6, %v1142_v38, %v1144_v35  ;;  %v1135_v35 = vld [vmem:[%s2299_s12] sm:$0xff] }
 0x312   : > { %1225 = vrot.lane.b32.xlu0 %v1151_v63, %s2327_s23  ;;  %1259 = vrot.lane.b32.xlu1 %v1152_v0, %s2328_s24 }
 0x316   : > { %1211 = vrot.lane.b32.xlu0 %v1151_v63, %s2329_s25  ;;  %1245 = vrot.lane.b32.xlu1 %v1152_v0, %s2326_s22 }
 0x31a   : > { %1197 = vrot.lane.b32.xlu0 %v1151_v63, %s2330_s28  ;;  %1231 = vrot.lane.b32.xlu1 %v1152_v0, %s2327_s23 }
 0x31e   : > { %1183 = vrot.lane.b32.xlu0 %v1151_v63, %s2331_s30  ;;  %1217 = vrot.lane.b32.xlu1 %v1152_v0, %s2329_s25 }
 0x322   : > { %1169 = vrot.lane.b32.xlu0 %v1151_v63, %s2332_s18  ;;  %1203 = vrot.lane.b32.xlu1 %v1152_v0, %s2330_s28 }
 0x326   : > { %1155 = vrot.lane.b32.xlu0 %v1151_v63, %s1869_s29  ;;  %1189 = vrot.lane.b32.xlu1 %v1152_v0, %s2331_s30 }
 0x32a   : > { %1253 = vrot.lane.b32.xlu1 %v1151_v63, %s2328_s24  ;;  %1257 = vrot.lane.b32.xlu0 %v2176_v44, %s2328_s24 }
 0x32e   : > { %1255 = vrot.lane.b32.xlu1 %v2183_v1, %s2328_s24  ;;  %1241 = vrot.lane.b32.xlu0 %v2183_v1, %s2326_s22  ;;  %s1827_s24 = smul.u32 24, %s2334_s27 }
 0x332   : > { %1243 = vrot.lane.b32.xlu1 %v2176_v44, %s2326_s22  ;;  %1227 = vrot.lane.b32.xlu0 %v2183_v1, %s2327_s23 }
 0x336   : > { %1229 = vrot.lane.b32.xlu1 %v2176_v44, %s2327_s23  ;;  %1213 = vrot.lane.b32.xlu0 %v2183_v1, %s2329_s25  ;;  %s1576_s23 = sld [smem:[#allocation2]] }
 0x33a   : > { %1215 = vrot.lane.b32.xlu1 %v2176_v44, %s2329_s25  ;;  %1199 = vrot.lane.b32.xlu0 %v2183_v1, %s2330_s28 }
 0x33e   : > { %1201 = vrot.lane.b32.xlu1 %v2176_v44, %s2330_s28  ;;  %1185 = vrot.lane.b32.xlu0 %v2183_v1, %s2331_s30 }
 0x342   : > { %1187 = vrot.lane.b32.xlu1 %v2176_v44, %s2331_s30  ;;  %1171 = vrot.lane.b32.xlu0 %v2183_v1, %s2332_s18  ;;  %s685_s30 = scalar_lea.vmem %s2304_s17, %s1827_s24 }
 0x346   : > { %1173 = vrot.lane.b32.xlu1 %v2176_v44, %s2332_s18  ;;  %1157 = vrot.lane.b32.xlu0 %v2183_v1, %s1869_s29 }
 0x34a   : > { %1159 = vrot.lane.b32.xlu1 %v2176_v44, %s1869_s29  ;;  %1161 = vrot.lane.b32.xlu0 %v1152_v0, %s1869_s29 }
 0x34e   : > { %1175 = vrot.lane.b32.xlu1 %v1152_v0, %s2332_s18  ;;  %1422 = vperm.xlu0 %1848, %v1419_v2  }
 0x352   : > { %1270 = vperm.xlu1 %1849, %v1267_v3  }
 0x380   : > { %v1240_v4 = vpop.permute.xlu0 %1239 }
 0x384   : > { %v1260_v7 = vpop.permute.xlu1 %1259  ;;  %v1226_v9 = vpop.permute.xlu0 %1225 }
 0x388   : > { %v1246_v10 = vpop.permute.xlu1 %1245  ;;  %v1212_v11 = vpop.permute.xlu0 %1211 }
 0x38c   : > { %v1232_v12 = vpop.permute.xlu1 %1231  ;;  %v1198_v13 = vpop.permute.xlu0 %1197 }
 0x390   : > { %v1218_v14 = vpop.permute.xlu1 %1217  ;;  %v1184_v15 = vpop.permute.xlu0 %1183 }
 0x394   : > { %v1204_v16 = vpop.permute.xlu1 %1203  ;;  %v1170_v17 = vpop.permute.xlu0 %1169 }
 0x398   : > { %v1190_v50 = vpop.permute.xlu1 %1189  ;;  %v2223_v53 = vpop.permute.xlu0 %1155 }
 0x39c   : > { %v1254_v18 = vpop.permute.xlu1 %1253  ;;  %v1258_v19 = vpop.permute.xlu0 %1257 }
 0x39d   : > { %v1263_v20 = vsel %vm904_vm8, %v1258_v19, %v1260_v7 }
 0x39e   : > { %1801 = vmatpush3.msra.mxu1 %v1263_v20 }
 0x39f   : > { %1802 = vmatprep.subr.mxu1 %v1863_v54 }
 0x3a0   : > { %v1256_v21 = vpop.permute.xlu1 %1255  ;;  %v1242_v22 = vpop.permute.xlu0 %1241 }
 0x3a1   : > { %v1261_v23 = vsel %vm904_vm8, %v1254_v18, %v1256_v21  ;;  %v1262_v24 = vsel %vm904_vm8, %v1256_v21, %v1258_v19  ;;  %v1247_v28 = vsel %vm889_vm11, %v1240_v4, %v1242_v22  ;;  %vm1758_vm8 = vmneg %vm776_vm6  ;;  %v1418_v4 = vld [vmem:[%s2301_s14] sm:$0xff]  ;;  %vm1425_vm6 = vcmask 31744  }
 0x3a2   : > { %1291 = vmatprep.subr.mxu0 %v1262_v24 }
 0x3a3   : > { %1292 = vmatpush1.msra.mxu0 %v1261_v23 }
 0x3a4   : > { %v1244_v25 = vpop.permute.xlu1 %1243  ;;  %v1228_v26 = vpop.permute.xlu0 %1227 }
 0x3a5   : > { %v1249_v52 = vsel %vm889_vm11, %v1244_v25, %v1246_v10  ;;  %v1248_v27 = vsel %vm889_vm11, %v1242_v22, %v1244_v25  ;;  %v1233_v33 = vsel %vm874_vm10, %v1226_v9, %v1228_v26 }
 0x3a6   : > { %1293 = vmatprep.subr.mxu0 %v1248_v27  ;;  %1803 = vmatpush3.msra.mxu1 %v1249_v52 }
 0x3a7   : > { %1294 = vmatpush1.msra.mxu0 %v1247_v28  ;;  %1804 = vmatprep.subr.mxu1 %v1863_v54 }
 0x3a8   : > { %v1230_v29 = vpop.permute.xlu1 %1229  ;;  %v1214_v30 = vpop.permute.xlu0 %1213 }
 0x3a9   : > { %v1235_v31 = vsel %vm874_vm10, %v1230_v29, %v1232_v12  ;;  %v1234_v32 = vsel %vm874_vm10, %v1228_v26, %v1230_v29  ;;  %v1219_v40 = vsel %vm859_vm12, %v1212_v11, %v1214_v30  ;;  %vm1273_vm10 = vcmask 588800  }
 0x3aa   : > { %1295 = vmatprep.subr.mxu0 %v1234_v32  ;;  %1805 = vmatpush3.msra.mxu1 %v1235_v31 }
 0x3ab   : > { %1296 = vmatpush1.msra.mxu0 %v1233_v33  ;;  %1806 = vmatprep.subr.mxu1 %v1863_v54 }
 0x3ac   : > { %v1216_v34 = vpop.permute.xlu1 %1215  ;;  %v1200_v36 = vpop.permute.xlu0 %1199 }
 0x3ad   : > { %v1221_v37 = vsel %vm859_vm12, %v1216_v34, %v1218_v14  ;;  %v1220_v39 = vsel %vm859_vm12, %v1214_v30, %v1216_v34  ;;  %v1205_v46 = vsel %vm844_vm13, %v1198_v13, %v1200_v36 }
 0x3ae   : > { %1297 = vmatprep.subr.mxu0 %v1220_v39  ;;  %1807 = vmatpush3.msra.mxu1 %v1221_v37 }
 0x3af   : > { %1298 = vmatpush1.msra.mxu0 %v1219_v40  ;;  %1808 = vmatprep.subr.mxu1 %v1863_v54 }
 0x3b0   : > { %v1202_v41 = vpop.permute.xlu1 %1201  ;;  %v1186_v42 = vpop.permute.xlu0 %1185 }
 0x3b1   : > { %v1207_v43 = vsel %vm844_vm13, %v1202_v41, %v1204_v16  ;;  %v1206_v45 = vsel %vm844_vm13, %v1200_v36, %v1202_v41  ;;  %v1191_v55 = vsel %vm829_vm15, %v1184_v15, %v1186_v42 }
 0x3b2   : > { %1299 = vmatprep.subr.mxu0 %v1206_v45  ;;  %1809 = vmatpush3.msra.mxu1 %v1207_v43 }
 0x3b3   : > { %1300 = vmatpush1.msra.mxu0 %v1205_v46  ;;  %1810 = vmatprep.subr.mxu1 %v1863_v54 }
 0x3b4   : > { %v1188_v47 = vpop.permute.xlu1 %1187  ;;  %v1172_v48 = vpop.permute.xlu0 %1171 }
 0x3b5   : > { %v1193_v49 = vsel %vm829_vm15, %v1188_v47, %v1190_v50  ;;  %v1192_v51 = vsel %vm829_vm15, %v1186_v42, %v1188_v47  ;;  %v1177_v58 = vsel %vm814_vm14, %v1170_v17, %v1172_v48 }
 0x3b6   : > { %1301 = vmatprep.subr.mxu0 %v1192_v51  ;;  %1811 = vmatpush3.msra.mxu1 %v1193_v49 }
 0x3b7   : > { %1302 = vmatpush1.msra.mxu0 %v1191_v55  ;;  %1812 = vmatprep.subr.mxu1 %v1863_v54 }
 0x3b8   : > { %v1174_v56 = vpop.permute.xlu1 %1173  ;;  %v1158_v59 = vpop.permute.xlu0 %1157 }
 0x3b9   : > { %v1178_v57 = vsel %vm814_vm14, %v1172_v48, %v1174_v56  ;;  %v1163_v63 = vsel %vm799_vm0, %v2223_v53, %v1158_v59 }
 0x3ba   : > { %1303 = vmatprep.subr.mxu0 %v1178_v57 }
 0x3bb   : > { %1304 = vmatpush1.msra.mxu0 %v1177_v58 }
 0x3bc   : > { %v1160_v60 = vpop.permute.xlu1 %1159  ;;  %v1162_v0 = vpop.permute.xlu0 %1161 }
 0x3bd   : > { %v1164_v61 = vsel %vm799_vm0, %v1158_v59, %v1160_v60  ;;  %v1165_v3 = vsel %vm799_vm0, %v1160_v60, %v1162_v0 }
 0x3be   : > { %1305 = vmatprep.subr.mxu0 %v1164_v61 }
 0x3bf   : > { %1306 = vmatpush1.msra.mxu0 %v1163_v63 }
 0x3c0   : > { %v1176_v38 = vpop.permute.xlu1 %1175  ;;  %1307 = vmatprep.subr.mxu0 %v2183_v1  ;;  %v1577_v1 = vstv %s1576_s23 }
 0x3c1   : > { %v1179_v2 = vsel %vm814_vm14, %v1174_v56, %v1176_v38  ;;  %1759 = vmatpush1.msk.msra.mxu0 %vm1758_vm8, %v2157_v62 }
 0x3c2   : > { %1760 = vmatmul.mubr.msk.f32.vlgmr.msra.gmra.mxu0 %vm1273_vm10, %v1135_v35  ;;  %1813 = vmatpush3.msra.mxu1 %v1179_v2 }
 0x3c3   : > { %1814 = vmatprep.subr.mxu1 %v1863_v54  ;;  %1762 = vmatprep.subr.msk.mxu0 %vm908_vm9, %v1995_v6 }
 0x3c4   : > { %1815 = vmatpush3.msra.mxu1 %v1165_v3  ;;  %1763 = vmatpush1.msk.msra.mxu0 %vm908_vm9, %v1991_v5 }
 0x3c5   : > { %1816 = vmatprep.subr.mxu1 %v1863_v54  ;;  %1499 = vmatprep.mubr.f32.mxu0 %v1863_v54 }
 0x3c6   : > { %1817 = vmatpush3.msra.mxu1 %v2176_v44  ;;  %1764 = vmatmul.mubr.msk.f32.vlgmr.msra.gmra.mxu0 %vm1425_vm6, %v1418_v4 }
 0x3c7   : > { %1819 = vmatmul.mubr.msk.f32.vlgmr.msra.gmra.mxu1 %vm1273_vm10, %v1135_v35  ;;  %1821 = vmatprep.subr.mxu1 %v1863_v54 }
 0x3c8   : > { %1822 = vmatpush3.msk.msra.mxu1 %vm908_vm9, %v1997_v8  ;;  %1823 = vmatprep.mubr.msk.f32.mxu1 %vm1870_vm7, %v1863_v54 }
 0x3c9   : > { %v1423_v9 = vpop.permute.xlu0 %1422 }
 0x3cb   : > { %1824 = vmatmul.mubr.msk.f32.vlgmr.msra.gmra.mxu1 %vm1425_vm6, %v1418_v4 }
 0x3cd   : > { %v1271_v5 = vpop.permute.xlu1 %1270 }
 0x482   : > { %v1343_v6 = vpop.f32.mrf.mxu0 }
 0x483   : > { %v1344_v62 = vadd.f32 %v1343_v6, %v1271_v5 }
 0x484   : > { %v1345_v7 = vpop.f32.mrf.mxu0 }
 0x485   : > { %v1346_v44 = vadd.f32 %v1345_v7, %v1271_v5  ;;  %v1578_v11 = vmul.f32 %v1577_v1, %v1344_v62 }
 0x486   : > { %v1501_v10 = vpop.f32.mrf.mxu0 }
 0x487   : > { %v1502_v12 = vadd.f32 %v1501_v10, %v1423_v9  ;;  %v1414_v13 = vpop.f32.mrf.mxu1  ;;  %v1579_v14 = vmul.f32 %v1577_v1, %v1346_v44 }
 0x488   : > { %v1415_v8 = vadd.f32 %v1414_v13, %v1271_v5  ;;  %v1503_v54 = vpop.f32.mrf.mxu0 }
 0x489   : > { %v1581_v15 = vadd.f32 %v1578_v11, %v1502_v12  ;;  %v1504_v16 = vadd.f32 %v1503_v54, %v1423_v9  ;;  %v1820_v17 = vpop.f32.mrf.mxu1 }
 0x48a   : > { %v1580_v18 = vmul.f32 %v1577_v1, %v1415_v8 }
 0x48b   : > { %1584 = vst [vmem:[%s685_s30] sm:$0xff] %v1581_v15  ;;  %v1582_v50 = vadd.f32 %v1579_v14, %v1504_v16  ;;  %v1572_v53 = vpop.f32.mrf.mxu1 }
 0x48c   : > { %v1573_v19 = vadd.f32 %v1572_v53, %v1423_v9 }
 0x48d   : > { %1585 = vst [vmem:[%s685_s30 + $0x8] sm:$0xff] %v1582_v50  ;;  %v1825_v20 = vpop.f32.mrf.mxu1 }
 0x48e   : > { %v1583_v21 = vadd.f32 %v1580_v18, %v1573_v19 }
 0x490   : > { %1586 = vst [vmem:[%s685_s30 + $0x10] sm:$0xff] %v1583_v21 }
 0x491 PF: > { %s28_s26 = sadd.s32 1, %s1857_s26  }
 0x492   : > { %p25_p4 = scmp.ge.s32.totalorder %s28_s26, 4  }
 0x494   :  { %27 = sbr.rel (!%p25_p4) target bundleno = 4 (0x4), region = 142 }

// kernel: g_block_forward.2
= control target key start
LH: loop header
LB: loop body
LE: loop exit
PB: predicated region body
PF: predicated region fallthrough
CT: control target
= control target key end

     0   :  { %10 = vsyncpa [#allocation3], 0  ;;  %s3379_s0 = inlined_call_operand.hbm [shape: f32[2,256], index: 0, kind: input, shape index: {}]   ;;  %s3380_s1 = inlined_call_operand.hbm [shape: f32[256,2048], index: 1, kind: input, shape index: {}]   ;;  %s3381_s2 = inlined_call_operand.hbm [shape: f32[1,2048], index: 2, kind: input, shape index: {}]   ;;  %s3382_s3 = inlined_call_operand.vmem [shape: f32[2048,48], index: 3, kind: input, shape index: {}]   ;;  %s3383_s4 = inlined_call_operand.hbm [shape: f32[1,48], index: 4, kind: input, shape index: {}]   ;;  %s3384_s5 = inlined_call_operand.vmem [shape: f32[2,48], index: 5, kind: output, shape index: {}]  }
   0x1   :  { %11 = vsyncpa [#allocation5], 0 }
   0x2   :  { %12 = vsyncpa [#allocation8], 0  ;;  %s2468_s18 = smov [#allocation4]  }
   0x3   :  { %s28_s19 = sshll.u32 %s2468_s18, 4  ;;  %s29_s19 = int_to_ptr.vmem [resolvable:$true] %s28_s19 }
   0x4   :  { %s2390_s20 = scalar_lea.vmem %s29_s19, 65536  ;;  %p2395_p1 = scmp.lt.s32.totalorder %s29_s19, %s29_s19 }
   0x5   :  { %p2391_p0 = scmp.ne.s32.totalorder %s29_s19, %s2390_s20  ;;  %p2396_p2 = scmp.lt.s32.totalorder %s2390_s20, %s2390_s20 }
   0x7   :  { %p2397_p3 = por %p2396_p2, %p2395_p1 }
   0x9   :  { %p2398_p4 = pnand %p2397_p3, %p2391_p0 }
   0xb   :  { %2401 = shalt.err (!%p2398_p4)
}
   0xc   :  { %s2469_s21 = smov 2048   ;;  %s2470_s22 = smov 128  }
   0xd   :  { %34 = dma.hbm_to_vmem [thread:$0]  %s3380_s1, 65536, %s29_s19, [#allocation5], %s2469_s21, %s2469_s21, %s2470_s22  }
   0xe   :  { %s2471_s25 = smov [#allocation2]   ;;  %s2472_s27 = smov [#allocation6]  }
   0xf   :  { %s19_s26 = sshll.u32 %s2471_s25, 4  ;;  %s41_s28 = sshll.u32 %s2472_s27, 4  ;;  %s20_s26 = int_to_ptr.vmem [resolvable:$true] %s19_s26  ;;  %s42_s28 = int_to_ptr.vmem [resolvable:$true] %s41_s28 }
  0x10   :  { %s2410_s29 = scalar_lea.vmem %s20_s26, 64  ;;  %p2415_p6 = scmp.lt.s32.totalorder %s20_s26, %s20_s26 }
  0x11   :  { %p2411_p5 = scmp.ne.s32.totalorder %s20_s26, %s2410_s29  ;;  %p2416_p7 = scmp.lt.s32.totalorder %s2410_s29, %s2410_s29 }
  0x13   :  { %p2417_p8 = por %p2416_p7, %p2415_p6 }
  0x15   :  { %p2418_p9 = pnand %p2417_p8, %p2411_p5 }
  0x17   :  { %2421 = shalt.err (!%p2418_p9)
}
  0x18   :  { %22 = dma.hbm_to_vmem [thread:$0]  %s3379_s0, 64, %s20_s26, [#allocation3]  }
  0x19   :  { %s2430_s7 = scalar_lea.vmem %s42_s28, 256  ;;  %p2435_p11 = scmp.lt.s32.totalorder %s42_s28, %s42_s28 }
  0x1a   :  { %p2431_p10 = scmp.ne.s32.totalorder %s42_s28, %s2430_s7  ;;  %p2436_p12 = scmp.lt.s32.totalorder %s2430_s7, %s2430_s7 }
  0x1c   :  { %p2437_p13 = por %p2436_p12, %p2435_p11 }
  0x1e   :  { %p2438_p0 = pnand %p2437_p13, %p2431_p10 }
  0x20   :  { %2441 = shalt.err (!%p2438_p0)
}
  0x21   :  { %44 = dma.hbm_to_vmem [thread:$0]  %s3381_s2, 256, %s42_s28, [#allocation5]  }
  0x22   :  { %s2473_s9 = smov [#allocation7]  }
  0x23   :  { %s53_s10 = sshll.u32 %s2473_s9, 4  ;;  %s54_s10 = int_to_ptr.vmem [resolvable:$true] %s53_s10 }
  0x24   :  { %s2450_s11 = scalar_lea.vmem %s54_s10, 16  ;;  %s2454_s12 = scalar_lea.vmem %s54_s10, 32 }
  0x25   :  { %p2451_p1 = scmp.ne.s32.totalorder %s54_s10, %s2450_s11  ;;  %p2455_p2 = scmp.lt.s32.totalorder %s54_s10, %s54_s10 }
  0x26   :  { %p2456_p3 = scmp.lt.s32.totalorder %s2454_s12, %s2450_s11 }
  0x28   :  { %p2457_p4 = por %p2456_p3, %p2455_p2 }
  0x2a   :  { %p2458_p5 = pnand %p2457_p4, %p2451_p1 }
  0x2c   :  { %2461 = shalt.err (!%p2458_p5)
}
  0x2d   :  { %56 = dma.hbm_to_vmem [thread:$0]  %s3383_s4, 16, %s54_s10, [#allocation8]  }
  0x2e   :  { %2462 = dma.done.wait [#allocation3], 64  }
  0x2f   :  { %2463 = vsyncadd [#allocation3], 4294967232 }
  0x30   :  { %2464 = dma.done.wait [#allocation5], 65792  }
  0x31   :  { %2465 = vsyncadd [#allocation5], 4294901504 }
  0x32   :  { %2466 = dma.done.wait [#allocation8], 16  }
  0x33   :  { %2467 = vsyncadd [#allocation8], 4294967280  ;;  %v311_v0 = vld [vmem:[#allocation4 + $0x788] sm:$0xff]  ;;  %v313_v1 = vld [vmem:[#allocation4 + $0x798] sm:$0xff]  ;;  %vm2084_vm0 = vcmask 386048  }
  0x34   :  { %v310_v2 = vld [vmem:[#allocation4 + $0x780] sm:$0xff]  ;;  %677 = vmatprep.subr.mxu0 %v311_v0  ;;  %748 = vmatprep.subr.mxu1 %v313_v1  ;;  %v312_v3 = vld [vmem:[#allocation4 + $0x790] sm:$0xff]  ;;  %v295_v4 = vld [vmem:[#allocation4 + $0x708] sm:$0xff] }
  0x35   :  { %v297_v5 = vld [vmem:[#allocation4 + $0x718] sm:$0xff]  ;;  %678 = vmatpush1.msra.mxu0 %v310_v2  ;;  %749 = vmatpush1.msra.mxu1 %v312_v3  ;;  %v294_v6 = vld [vmem:[#allocation4 + $0x700] sm:$0xff]  ;;  %v296_v7 = vld [vmem:[#allocation4 + $0x710] sm:$0xff] }
  0x36   :  { %v279_v8 = vld [vmem:[#allocation4 + $0x688] sm:$0xff]  ;;  %679 = vmatprep.subr.mxu0 %v295_v4  ;;  %750 = vmatprep.subr.mxu1 %v297_v5  ;;  %v281_v9 = vld [vmem:[#allocation4 + $0x698] sm:$0xff]  ;;  %v278_v10 = vld [vmem:[#allocation4 + $0x680] sm:$0xff] }
  0x37   :  { %v280_v11 = vld [vmem:[#allocation4 + $0x690] sm:$0xff]  ;;  %680 = vmatpush1.msra.mxu0 %v294_v6  ;;  %751 = vmatpush1.msra.mxu1 %v296_v7  ;;  %v263_v12 = vld [vmem:[#allocation4 + $0x608] sm:$0xff]  ;;  %v265_v13 = vld [vmem:[#allocation4 + $0x618] sm:$0xff] }
  0x38   :  { %681 = vmatprep.subr.mxu0 %v279_v8  ;;  %752 = vmatprep.subr.mxu1 %v281_v9  ;;  %v262_v14 = vld [vmem:[#allocation4 + $0x600] sm:$0xff]  ;;  %v264_v15 = vld [vmem:[#allocation4 + $0x610] sm:$0xff]  ;;  %v247_v16 = vld [vmem:[#allocation4 + $0x588] sm:$0xff] }
  0x39   :  { %682 = vmatpush1.msra.mxu0 %v278_v10  ;;  %753 = vmatpush1.msra.mxu1 %v280_v11  ;;  %v249_v17 = vld [vmem:[#allocation4 + $0x598] sm:$0xff]  ;;  %v246_v18 = vld [vmem:[#allocation4 + $0x580] sm:$0xff]  ;;  %v248_v19 = vld [vmem:[#allocation4 + $0x590] sm:$0xff] }
  0x3a   :  { %683 = vmatprep.subr.mxu0 %v263_v12  ;;  %754 = vmatprep.subr.mxu1 %v265_v13  ;;  %v231_v20 = vld [vmem:[#allocation4 + $0x508] sm:$0xff]  ;;  %v233_v21 = vld [vmem:[#allocation4 + $0x518] sm:$0xff]  ;;  %v230_v22 = vld [vmem:[#allocation4 + $0x500] sm:$0xff] }
  0x3b   :  { %684 = vmatpush1.msra.mxu0 %v262_v14  ;;  %755 = vmatpush1.msra.mxu1 %v264_v15  ;;  %v232_v23 = vld [vmem:[#allocation4 + $0x510] sm:$0xff]  ;;  %v215_v24 = vld [vmem:[#allocation4 + $0x488] sm:$0xff]  ;;  %v217_v25 = vld [vmem:[#allocation4 + $0x498] sm:$0xff] }
  0x3c   :  { %685 = vmatprep.subr.mxu0 %v247_v16  ;;  %756 = vmatprep.subr.mxu1 %v249_v17  ;;  %v214_v26 = vld [vmem:[#allocation4 + $0x480] sm:$0xff]  ;;  %v216_v27 = vld [vmem:[#allocation4 + $0x490] sm:$0xff]  ;;  %v199_v28 = vld [vmem:[#allocation4 + $0x408] sm:$0xff] }
  0x3d   :  { %686 = vmatpush1.msra.mxu0 %v246_v18  ;;  %757 = vmatpush1.msra.mxu1 %v248_v19  ;;  %v201_v29 = vld [vmem:[#allocation4 + $0x418] sm:$0xff]  ;;  %v198_v30 = vld [vmem:[#allocation4 + $0x400] sm:$0xff]  ;;  %v200_v31 = vld [vmem:[#allocation4 + $0x410] sm:$0xff] }
  0x3e   :  { %687 = vmatprep.subr.mxu0 %v231_v20  ;;  %758 = vmatprep.subr.mxu1 %v233_v21  ;;  %v183_v32 = vld [vmem:[#allocation4 + $0x388] sm:$0xff]  ;;  %v185_v33 = vld [vmem:[#allocation4 + $0x398] sm:$0xff]  ;;  %v182_v34 = vld [vmem:[#allocation4 + $0x380] sm:$0xff] }
  0x3f   :  { %688 = vmatpush1.msra.mxu0 %v230_v22  ;;  %759 = vmatpush1.msra.mxu1 %v232_v23  ;;  %v184_v35 = vld [vmem:[#allocation4 + $0x390] sm:$0xff]  ;;  %v167_v36 = vld [vmem:[#allocation4 + $0x308] sm:$0xff]  ;;  %v169_v37 = vld [vmem:[#allocation4 + $0x318] sm:$0xff] }
  0x40   :  { %689 = vmatprep.subr.mxu0 %v215_v24  ;;  %760 = vmatprep.subr.mxu1 %v217_v25  ;;  %v166_v38 = vld [vmem:[#allocation4 + $0x300] sm:$0xff]  ;;  %v168_v39 = vld [vmem:[#allocation4 + $0x310] sm:$0xff]  ;;  %v151_v40 = vld [vmem:[#allocation4 + $0x288] sm:$0xff] }
  0x41   :  { %690 = vmatpush1.msra.mxu0 %v214_v26  ;;  %761 = vmatpush1.msra.mxu1 %v216_v27  ;;  %v153_v41 = vld [vmem:[#allocation4 + $0x298] sm:$0xff]  ;;  %v150_v42 = vld [vmem:[#allocation4 + $0x280] sm:$0xff]  ;;  %v152_v43 = vld [vmem:[#allocation4 + $0x290] sm:$0xff] }
  0x42   :  { %691 = vmatprep.subr.mxu0 %v199_v28  ;;  %762 = vmatprep.subr.mxu1 %v201_v29  ;;  %v135_v44 = vld [vmem:[#allocation4 + $0x208] sm:$0xff]  ;;  %v137_v45 = vld [vmem:[#allocation4 + $0x218] sm:$0xff]  ;;  %v134_v46 = vld [vmem:[#allocation4 + $0x200] sm:$0xff] }
  0x43   :  { %692 = vmatpush1.msra.mxu0 %v198_v30  ;;  %763 = vmatpush1.msra.mxu1 %v200_v31  ;;  %v136_v47 = vld [vmem:[#allocation4 + $0x210] sm:$0xff]  ;;  %v119_v48 = vld [vmem:[#allocation4 + $0x188] sm:$0xff]  ;;  %v121_v49 = vld [vmem:[#allocation4 + $0x198] sm:$0xff] }
  0x44   :  { %693 = vmatprep.subr.mxu0 %v183_v32  ;;  %764 = vmatprep.subr.mxu1 %v185_v33  ;;  %v118_v50 = vld [vmem:[#allocation4 + $0x180] sm:$0xff]  ;;  %v120_v51 = vld [vmem:[#allocation4 + $0x190] sm:$0xff]  ;;  %v103_v52 = vld [vmem:[#allocation4 + $0x108] sm:$0xff] }
  0x45   :  { %694 = vmatpush1.msra.mxu0 %v182_v34  ;;  %765 = vmatpush1.msra.mxu1 %v184_v35  ;;  %v105_v53 = vld [vmem:[#allocation4 + $0x118] sm:$0xff]  ;;  %v102_v54 = vld [vmem:[#allocation4 + $0x100] sm:$0xff]  ;;  %v104_v55 = vld [vmem:[#allocation4 + $0x110] sm:$0xff] }
  0x46   :  { %695 = vmatprep.subr.mxu0 %v167_v36  ;;  %766 = vmatprep.subr.mxu1 %v169_v37  ;;  %v87_v56 = vld [vmem:[#allocation4 + $0x88] sm:$0xff]  ;;  %v89_v57 = vld [vmem:[#allocation4 + $0x98] sm:$0xff]  ;;  %v86_v58 = vld [vmem:[#allocation4 + $0x80] sm:$0xff] }
  0x47   :  { %696 = vmatpush1.msra.mxu0 %v166_v38  ;;  %767 = vmatpush1.msra.mxu1 %v168_v39  ;;  %v88_v59 = vld [vmem:[#allocation4 + $0x90] sm:$0xff]  ;;  %v71_v60 = vld [vmem:[#allocation4 + $0x8] sm:$0xff]  ;;  %v73_v61 = vld [vmem:[#allocation4 + $0x18] sm:$0xff] }
  0x48   :  { %697 = vmatprep.subr.mxu0 %v151_v40  ;;  %768 = vmatprep.subr.mxu1 %v153_v41  ;;  %v70_v62 = vld [vmem:[#allocation4] sm:$0xff]  ;;  %v72_v63 = vld [vmem:[#allocation4 + $0x10] sm:$0xff]  ;;  %v567_v0 = vld [vmem:[#allocation4 + $0xf88] sm:$0xff] }
  0x49   :  { %698 = vmatpush1.msra.mxu0 %v150_v42  ;;  %769 = vmatpush1.msra.mxu1 %v152_v43  ;;  %v569_v1 = vld [vmem:[#allocation4 + $0xf98] sm:$0xff]  ;;  %v566_v2 = vld [vmem:[#allocation4 + $0xf80] sm:$0xff]  ;;  %v568_v3 = vld [vmem:[#allocation4 + $0xf90] sm:$0xff] }
  0x4a   :  { %699 = vmatprep.subr.mxu0 %v135_v44  ;;  %770 = vmatprep.subr.mxu1 %v137_v45  ;;  %v551_v4 = vld [vmem:[#allocation4 + $0xf08] sm:$0xff]  ;;  %v553_v5 = vld [vmem:[#allocation4 + $0xf18] sm:$0xff]  ;;  %v550_v6 = vld [vmem:[#allocation4 + $0xf00] sm:$0xff] }
  0x4b   :  { %700 = vmatpush1.msra.mxu0 %v134_v46  ;;  %771 = vmatpush1.msra.mxu1 %v136_v47  ;;  %v552_v7 = vld [vmem:[#allocation4 + $0xf10] sm:$0xff]  ;;  %v535_v8 = vld [vmem:[#allocation4 + $0xe88] sm:$0xff]  ;;  %v537_v9 = vld [vmem:[#allocation4 + $0xe98] sm:$0xff] }
  0x4c   :  { %701 = vmatprep.subr.mxu0 %v119_v48  ;;  %772 = vmatprep.subr.mxu1 %v121_v49  ;;  %v534_v10 = vld [vmem:[#allocation4 + $0xe80] sm:$0xff]  ;;  %v536_v11 = vld [vmem:[#allocation4 + $0xe90] sm:$0xff]  ;;  %v519_v12 = vld [vmem:[#allocation4 + $0xe08] sm:$0xff] }
  0x4d   :  { %702 = vmatpush1.msra.mxu0 %v118_v50  ;;  %773 = vmatpush1.msra.mxu1 %v120_v51  ;;  %v521_v13 = vld [vmem:[#allocation4 + $0xe18] sm:$0xff]  ;;  %v518_v14 = vld [vmem:[#allocation4 + $0xe00] sm:$0xff]  ;;  %v520_v15 = vld [vmem:[#allocation4 + $0xe10] sm:$0xff] }
  0x4e   :  { %703 = vmatprep.subr.mxu0 %v103_v52  ;;  %774 = vmatprep.subr.mxu1 %v105_v53  ;;  %v503_v16 = vld [vmem:[#allocation4 + $0xd88] sm:$0xff]  ;;  %v505_v17 = vld [vmem:[#allocation4 + $0xd98] sm:$0xff]  ;;  %v502_v18 = vld [vmem:[#allocation4 + $0xd80] sm:$0xff] }
  0x4f   :  { %704 = vmatpush1.msra.mxu0 %v102_v54  ;;  %775 = vmatpush1.msra.mxu1 %v104_v55  ;;  %v504_v19 = vld [vmem:[#allocation4 + $0xd90] sm:$0xff]  ;;  %v487_v20 = vld [vmem:[#allocation4 + $0xd08] sm:$0xff]  ;;  %v489_v21 = vld [vmem:[#allocation4 + $0xd18] sm:$0xff] }
  0x50   :  { %705 = vmatprep.subr.mxu0 %v87_v56  ;;  %776 = vmatprep.subr.mxu1 %v89_v57  ;;  %v486_v22 = vld [vmem:[#allocation4 + $0xd00] sm:$0xff]  ;;  %v488_v23 = vld [vmem:[#allocation4 + $0xd10] sm:$0xff]  ;;  %v471_v24 = vld [vmem:[#allocation4 + $0xc88] sm:$0xff] }
  0x51   :  { %706 = vmatpush1.msra.mxu0 %v86_v58  ;;  %777 = vmatpush1.msra.mxu1 %v88_v59  ;;  %v473_v25 = vld [vmem:[#allocation4 + $0xc98] sm:$0xff]  ;;  %v470_v26 = vld [vmem:[#allocation4 + $0xc80] sm:$0xff]  ;;  %v472_v27 = vld [vmem:[#allocation4 + $0xc90] sm:$0xff] }
  0x52   :  { %707 = vmatprep.subr.mxu0 %v71_v60  ;;  %778 = vmatprep.subr.mxu1 %v73_v61  ;;  %v455_v28 = vld [vmem:[#allocation4 + $0xc08] sm:$0xff]  ;;  %v457_v29 = vld [vmem:[#allocation4 + $0xc18] sm:$0xff]  ;;  %v454_v30 = vld [vmem:[#allocation4 + $0xc00] sm:$0xff] }
  0x53   :  { %708 = vmatpush1.msra.mxu0 %v70_v62  ;;  %779 = vmatpush1.msra.mxu1 %v72_v63  ;;  %v456_v31 = vld [vmem:[#allocation4 + $0xc10] sm:$0xff]  ;;  %v439_v32 = vld [vmem:[#allocation4 + $0xb88] sm:$0xff]  ;;  %v441_v33 = vld [vmem:[#allocation4 + $0xb98] sm:$0xff] }
  0x54   :  { %709 = vmatprep.subr.mxu0 %v567_v0  ;;  %780 = vmatprep.subr.mxu1 %v569_v1  ;;  %v438_v34 = vld [vmem:[#allocation4 + $0xb80] sm:$0xff]  ;;  %v440_v35 = vld [vmem:[#allocation4 + $0xb90] sm:$0xff]  ;;  %v423_v36 = vld [vmem:[#allocation4 + $0xb08] sm:$0xff] }
  0x55   :  { %710 = vmatpush2.msra.mxu0 %v566_v2  ;;  %781 = vmatpush2.msra.mxu1 %v568_v3  ;;  %v425_v37 = vld [vmem:[#allocation4 + $0xb18] sm:$0xff]  ;;  %v422_v38 = vld [vmem:[#allocation4 + $0xb00] sm:$0xff]  ;;  %v424_v39 = vld [vmem:[#allocation4 + $0xb10] sm:$0xff] }
  0x56   :  { %711 = vmatprep.subr.mxu0 %v551_v4  ;;  %782 = vmatprep.subr.mxu1 %v553_v5  ;;  %v407_v40 = vld [vmem:[#allocation4 + $0xa88] sm:$0xff]  ;;  %v409_v41 = vld [vmem:[#allocation4 + $0xa98] sm:$0xff]  ;;  %v406_v42 = vld [vmem:[#allocation4 + $0xa80] sm:$0xff] }
  0x57   :  { %712 = vmatpush2.msra.mxu0 %v550_v6  ;;  %783 = vmatpush2.msra.mxu1 %v552_v7  ;;  %v408_v43 = vld [vmem:[#allocation4 + $0xa90] sm:$0xff]  ;;  %v391_v44 = vld [vmem:[#allocation4 + $0xa08] sm:$0xff]  ;;  %v393_v45 = vld [vmem:[#allocation4 + $0xa18] sm:$0xff] }
  0x58   :  { %713 = vmatprep.subr.mxu0 %v535_v8  ;;  %784 = vmatprep.subr.mxu1 %v537_v9  ;;  %v390_v46 = vld [vmem:[#allocation4 + $0xa00] sm:$0xff]  ;;  %v392_v47 = vld [vmem:[#allocation4 + $0xa10] sm:$0xff]  ;;  %v375_v48 = vld [vmem:[#allocation4 + $0x988] sm:$0xff] }
  0x59   :  { %714 = vmatpush2.msra.mxu0 %v534_v10  ;;  %785 = vmatpush2.msra.mxu1 %v536_v11  ;;  %v377_v49 = vld [vmem:[#allocation4 + $0x998] sm:$0xff]  ;;  %v374_v50 = vld [vmem:[#allocation4 + $0x980] sm:$0xff]  ;;  %v376_v51 = vld [vmem:[#allocation4 + $0x990] sm:$0xff] }
  0x5a   :  { %715 = vmatprep.subr.mxu0 %v519_v12  ;;  %786 = vmatprep.subr.mxu1 %v521_v13  ;;  %v359_v52 = vld [vmem:[#allocation4 + $0x908] sm:$0xff]  ;;  %v361_v53 = vld [vmem:[#allocation4 + $0x918] sm:$0xff]  ;;  %v358_v54 = vld [vmem:[#allocation4 + $0x900] sm:$0xff] }
  0x5b   :  { %716 = vmatpush2.msra.mxu0 %v518_v14  ;;  %787 = vmatpush2.msra.mxu1 %v520_v15  ;;  %v360_v55 = vld [vmem:[#allocation4 + $0x910] sm:$0xff]  ;;  %v2516_v56 = vld.sshfl [vmem:[#allocation2] sm:$0x33 pattern:$0x76325410]  ;;  %v343_v57 = vld [vmem:[#allocation4 + $0x888] sm:$0xff] }
  0x5c   :  { %717 = vmatprep.subr.mxu0 %v503_v16  ;;  %788 = vmatprep.subr.mxu1 %v505_v17  ;;  %v345_v58 = vld [vmem:[#allocation4 + $0x898] sm:$0xff]  ;;  %v342_v59 = vld [vmem:[#allocation4 + $0x880] sm:$0xff]  ;;  %v344_v60 = vld [vmem:[#allocation4 + $0x890] sm:$0xff]  ;;  %v2520_v63 = vcombine.high %v2516_v56, %v2516_v56 }
  0x5d   :  { %718 = vmatpush2.msra.mxu0 %v502_v18  ;;  %789 = vmatpush2.msra.mxu1 %v504_v19  ;;  %v327_v61 = vld [vmem:[#allocation4 + $0x808] sm:$0xff]  ;;  %v329_v62 = vld [vmem:[#allocation4 + $0x818] sm:$0xff]  ;;  %v326_v0 = vld [vmem:[#allocation4 + $0x800] sm:$0xff] }
  0x5e   :  { %719 = vmatprep.subr.mxu0 %v487_v20  ;;  %790 = vmatprep.subr.mxu1 %v489_v21  ;;  %v328_v1 = vld [vmem:[#allocation4 + $0x810] sm:$0xff]  ;;  %v315_v2 = vld [vmem:[#allocation4 + $0x7a8] sm:$0xff]  ;;  %v317_v3 = vld [vmem:[#allocation4 + $0x7b8] sm:$0xff] }
  0x5f   :  { %720 = vmatpush2.msra.mxu0 %v486_v22  ;;  %791 = vmatpush2.msra.mxu1 %v488_v23  ;;  %v314_v4 = vld [vmem:[#allocation4 + $0x7a0] sm:$0xff]  ;;  %v316_v5 = vld [vmem:[#allocation4 + $0x7b0] sm:$0xff]  ;;  %v299_v6 = vld [vmem:[#allocation4 + $0x728] sm:$0xff] }
  0x60   :  { %721 = vmatprep.subr.mxu0 %v471_v24  ;;  %792 = vmatprep.subr.mxu1 %v473_v25  ;;  %v301_v7 = vld [vmem:[#allocation4 + $0x738] sm:$0xff]  ;;  %v298_v8 = vld [vmem:[#allocation4 + $0x720] sm:$0xff]  ;;  %v300_v9 = vld [vmem:[#allocation4 + $0x730] sm:$0xff] }
  0x61   :  { %722 = vmatpush2.msra.mxu0 %v470_v26  ;;  %793 = vmatpush2.msra.mxu1 %v472_v27  ;;  %v283_v10 = vld [vmem:[#allocation4 + $0x6a8] sm:$0xff]  ;;  %v285_v11 = vld [vmem:[#allocation4 + $0x6b8] sm:$0xff]  ;;  %v282_v12 = vld [vmem:[#allocation4 + $0x6a0] sm:$0xff] }
  0x62   :  { %723 = vmatprep.subr.mxu0 %v455_v28  ;;  %794 = vmatprep.subr.mxu1 %v457_v29  ;;  %v284_v13 = vld [vmem:[#allocation4 + $0x6b0] sm:$0xff]  ;;  %v267_v14 = vld [vmem:[#allocation4 + $0x628] sm:$0xff]  ;;  %v269_v15 = vld [vmem:[#allocation4 + $0x638] sm:$0xff] }
  0x63   :  { %724 = vmatpush2.msra.mxu0 %v454_v30  ;;  %795 = vmatpush2.msra.mxu1 %v456_v31  ;;  %v266_v16 = vld [vmem:[#allocation4 + $0x620] sm:$0xff]  ;;  %v268_v17 = vld [vmem:[#allocation4 + $0x630] sm:$0xff]  ;;  %v251_v18 = vld [vmem:[#allocation4 + $0x5a8] sm:$0xff] }
  0x64   :  { %725 = vmatprep.subr.mxu0 %v439_v32  ;;  %796 = vmatprep.subr.mxu1 %v441_v33  ;;  %v253_v19 = vld [vmem:[#allocation4 + $0x5b8] sm:$0xff]  ;;  %v250_v20 = vld [vmem:[#allocation4 + $0x5a0] sm:$0xff]  ;;  %v252_v21 = vld [vmem:[#allocation4 + $0x5b0] sm:$0xff] }
  0x65   :  { %726 = vmatpush2.msra.mxu0 %v438_v34  ;;  %797 = vmatpush2.msra.mxu1 %v440_v35  ;;  %v235_v22 = vld [vmem:[#allocation4 + $0x528] sm:$0xff]  ;;  %v237_v23 = vld [vmem:[#allocation4 + $0x538] sm:$0xff]  ;;  %v234_v24 = vld [vmem:[#allocation4 + $0x520] sm:$0xff] }
  0x66   :  { %727 = vmatprep.subr.mxu0 %v423_v36  ;;  %798 = vmatprep.subr.mxu1 %v425_v37  ;;  %v236_v25 = vld [vmem:[#allocation4 + $0x530] sm:$0xff]  ;;  %v219_v26 = vld [vmem:[#allocation4 + $0x4a8] sm:$0xff]  ;;  %v221_v27 = vld [vmem:[#allocation4 + $0x4b8] sm:$0xff] }
  0x67   :  { %728 = vmatpush2.msra.mxu0 %v422_v38  ;;  %799 = vmatpush2.msra.mxu1 %v424_v39  ;;  %v218_v28 = vld [vmem:[#allocation4 + $0x4a0] sm:$0xff]  ;;  %v220_v29 = vld [vmem:[#allocation4 + $0x4b0] sm:$0xff]  ;;  %v203_v30 = vld [vmem:[#allocation4 + $0x428] sm:$0xff] }
  0x68   :  { %729 = vmatprep.subr.mxu0 %v407_v40  ;;  %800 = vmatprep.subr.mxu1 %v409_v41  ;;  %v205_v31 = vld [vmem:[#allocation4 + $0x438] sm:$0xff]  ;;  %v202_v32 = vld [vmem:[#allocation4 + $0x420] sm:$0xff]  ;;  %v204_v33 = vld [vmem:[#allocation4 + $0x430] sm:$0xff] }
  0x69   :  { %730 = vmatpush2.msra.mxu0 %v406_v42  ;;  %801 = vmatpush2.msra.mxu1 %v408_v43  ;;  %v187_v34 = vld [vmem:[#allocation4 + $0x3a8] sm:$0xff]  ;;  %v189_v35 = vld [vmem:[#allocation4 + $0x3b8] sm:$0xff]  ;;  %v186_v36 = vld [vmem:[#allocation4 + $0x3a0] sm:$0xff] }
  0x6a   :  { %731 = vmatprep.subr.mxu0 %v391_v44  ;;  %802 = vmatprep.subr.mxu1 %v393_v45  ;;  %v188_v37 = vld [vmem:[#allocation4 + $0x3b0] sm:$0xff]  ;;  %v171_v38 = vld [vmem:[#allocation4 + $0x328] sm:$0xff]  ;;  %v173_v39 = vld [vmem:[#allocation4 + $0x338] sm:$0xff] }
  0x6b   :  { %732 = vmatpush2.msra.mxu0 %v390_v46  ;;  %803 = vmatpush2.msra.mxu1 %v392_v47  ;;  %v170_v40 = vld [vmem:[#allocation4 + $0x320] sm:$0xff]  ;;  %v172_v41 = vld [vmem:[#allocation4 + $0x330] sm:$0xff]  ;;  %v155_v42 = vld [vmem:[#allocation4 + $0x2a8] sm:$0xff] }
  0x6c   :  { %733 = vmatprep.subr.mxu0 %v375_v48  ;;  %804 = vmatprep.subr.mxu1 %v377_v49  ;;  %v157_v43 = vld [vmem:[#allocation4 + $0x2b8] sm:$0xff]  ;;  %v154_v44 = vld [vmem:[#allocation4 + $0x2a0] sm:$0xff]  ;;  %v156_v45 = vld [vmem:[#allocation4 + $0x2b0] sm:$0xff] }
  0x6d   :  { %734 = vmatpush2.msra.mxu0 %v374_v50  ;;  %805 = vmatpush2.msra.mxu1 %v376_v51  ;;  %v139_v46 = vld [vmem:[#allocation4 + $0x228] sm:$0xff]  ;;  %v141_v47 = vld [vmem:[#allocation4 + $0x238] sm:$0xff]  ;;  %v138_v48 = vld [vmem:[#allocation4 + $0x220] sm:$0xff] }
  0x6e   :  { %735 = vmatprep.subr.mxu0 %v359_v52  ;;  %806 = vmatprep.subr.mxu1 %v361_v53  ;;  %v140_v49 = vld [vmem:[#allocation4 + $0x230] sm:$0xff]  ;;  %v123_v50 = vld [vmem:[#allocation4 + $0x1a8] sm:$0xff]  ;;  %v125_v51 = vld [vmem:[#allocation4 + $0x1b8] sm:$0xff] }
  0x6f   :  { %736 = vmatpush2.msra.mxu0 %v358_v54  ;;  %807 = vmatpush2.msra.mxu1 %v360_v55  ;;  %v122_v52 = vld [vmem:[#allocation4 + $0x1a0] sm:$0xff]  ;;  %v124_v53 = vld [vmem:[#allocation4 + $0x1b0] sm:$0xff]  ;;  %v107_v54 = vld [vmem:[#allocation4 + $0x128] sm:$0xff] }
  0x70   :  { %737 = vmatprep.subr.mxu0 %v343_v57  ;;  %808 = vmatprep.subr.mxu1 %v345_v58  ;;  %v109_v55 = vld [vmem:[#allocation4 + $0x138] sm:$0xff]  ;;  %v106_v57 = vld [vmem:[#allocation4 + $0x120] sm:$0xff]  ;;  %v108_v58 = vld [vmem:[#allocation4 + $0x130] sm:$0xff] }
  0x71   :  { %738 = vmatpush2.msra.mxu0 %v342_v59  ;;  %809 = vmatpush2.msra.mxu1 %v344_v60  ;;  %v91_v59 = vld [vmem:[#allocation4 + $0xa8] sm:$0xff]  ;;  %v93_v60 = vld [vmem:[#allocation4 + $0xb8] sm:$0xff] }
  0x72   :  { %739 = vmatprep.subr.mxu0 %v327_v61  ;;  %810 = vmatprep.subr.mxu1 %v329_v62  ;;  %v90_v61 = vld [vmem:[#allocation4 + $0xa0] sm:$0xff]  ;;  %v92_v62 = vld [vmem:[#allocation4 + $0xb0] sm:$0xff] }
  0x73   :  { %740 = vmatpush2.msra.mxu0 %v326_v0  ;;  %741 = vmatprep.mubr.f32.mxu0 %v2520_v63  ;;  %v75_v0 = vld [vmem:[#allocation4 + $0x28] sm:$0xff] }
  0x74   :  { %811 = vmatpush2.msra.mxu1 %v328_v1  ;;  %742 = vmatmul.mubr.f32.vlgmr.msra.gmra.mxu0 %v2516_v56  ;;  %v77_v1 = vld [vmem:[#allocation4 + $0x38] sm:$0xff] }
  0x75   :  { %812 = vmatprep.mubr.f32.mxu1 %v2520_v63  ;;  %819 = vmatprep.subr.mxu0 %v315_v2  ;;  %v74_v2 = vld [vmem:[#allocation4 + $0x20] sm:$0xff] }
  0x76   :  { %890 = vmatprep.subr.mxu1 %v317_v3  ;;  %813 = vmatmul.mubr.f32.vlgmr.msra.gmra.mxu1 %v2516_v56  ;;  %v76_v3 = vld [vmem:[#allocation4 + $0x30] sm:$0xff] }
  0x77   :  { %820 = vmatpush1.msra.mxu0 %v314_v4  ;;  %891 = vmatpush1.msra.mxu1 %v316_v5  ;;  %v571_v4 = vld [vmem:[#allocation4 + $0xfa8] sm:$0xff]  ;;  %v573_v5 = vld [vmem:[#allocation4 + $0xfb8] sm:$0xff] }
  0x78   :  { %821 = vmatprep.subr.mxu0 %v299_v6  ;;  %892 = vmatprep.subr.mxu1 %v301_v7  ;;  %v570_v6 = vld [vmem:[#allocation4 + $0xfa0] sm:$0xff]  ;;  %v572_v7 = vld [vmem:[#allocation4 + $0xfb0] sm:$0xff] }
  0x79   :  { %822 = vmatpush1.msra.mxu0 %v298_v8  ;;  %893 = vmatpush1.msra.mxu1 %v300_v9  ;;  %v555_v8 = vld [vmem:[#allocation4 + $0xf28] sm:$0xff]  ;;  %v557_v9 = vld [vmem:[#allocation4 + $0xf38] sm:$0xff] }
  0x7a   :  { %823 = vmatprep.subr.mxu0 %v283_v10  ;;  %894 = vmatprep.subr.mxu1 %v285_v11  ;;  %v554_v10 = vld [vmem:[#allocation4 + $0xf20] sm:$0xff]  ;;  %v556_v11 = vld [vmem:[#allocation4 + $0xf30] sm:$0xff] }
  0x7b   :  { %824 = vmatpush1.msra.mxu0 %v282_v12  ;;  %895 = vmatpush1.msra.mxu1 %v284_v13  ;;  %v539_v12 = vld [vmem:[#allocation4 + $0xea8] sm:$0xff]  ;;  %v541_v13 = vld [vmem:[#allocation4 + $0xeb8] sm:$0xff] }
  0x7c   :  { %825 = vmatprep.subr.mxu0 %v267_v14  ;;  %896 = vmatprep.subr.mxu1 %v269_v15  ;;  %v538_v14 = vld [vmem:[#allocation4 + $0xea0] sm:$0xff]  ;;  %v540_v15 = vld [vmem:[#allocation4 + $0xeb0] sm:$0xff] }
  0x7d   :  { %826 = vmatpush1.msra.mxu0 %v266_v16  ;;  %897 = vmatpush1.msra.mxu1 %v268_v17  ;;  %v523_v16 = vld [vmem:[#allocation4 + $0xe28] sm:$0xff]  ;;  %v525_v17 = vld [vmem:[#allocation4 + $0xe38] sm:$0xff] }
  0x7e   :  { %827 = vmatprep.subr.mxu0 %v251_v18  ;;  %898 = vmatprep.subr.mxu1 %v253_v19  ;;  %v522_v18 = vld [vmem:[#allocation4 + $0xe20] sm:$0xff]  ;;  %v524_v19 = vld [vmem:[#allocation4 + $0xe30] sm:$0xff] }
  0x7f   :  { %828 = vmatpush1.msra.mxu0 %v250_v20  ;;  %899 = vmatpush1.msra.mxu1 %v252_v21  ;;  %v507_v20 = vld [vmem:[#allocation4 + $0xda8] sm:$0xff]  ;;  %v509_v21 = vld [vmem:[#allocation4 + $0xdb8] sm:$0xff] }
  0x80   :  { %829 = vmatprep.subr.mxu0 %v235_v22  ;;  %900 = vmatprep.subr.mxu1 %v237_v23  ;;  %v506_v22 = vld [vmem:[#allocation4 + $0xda0] sm:$0xff]  ;;  %v508_v23 = vld [vmem:[#allocation4 + $0xdb0] sm:$0xff] }
  0x81   :  { %830 = vmatpush1.msra.mxu0 %v234_v24  ;;  %901 = vmatpush1.msra.mxu1 %v236_v25  ;;  %v491_v24 = vld [vmem:[#allocation4 + $0xd28] sm:$0xff]  ;;  %v493_v25 = vld [vmem:[#allocation4 + $0xd38] sm:$0xff] }
  0x82   :  { %831 = vmatprep.subr.mxu0 %v219_v26  ;;  %902 = vmatprep.subr.mxu1 %v221_v27  ;;  %v490_v26 = vld [vmem:[#allocation4 + $0xd20] sm:$0xff]  ;;  %v492_v27 = vld [vmem:[#allocation4 + $0xd30] sm:$0xff] }
  0x83   :  { %832 = vmatpush1.msra.mxu0 %v218_v28  ;;  %903 = vmatpush1.msra.mxu1 %v220_v29  ;;  %v475_v28 = vld [vmem:[#allocation4 + $0xca8] sm:$0xff]  ;;  %v477_v29 = vld [vmem:[#allocation4 + $0xcb8] sm:$0xff] }
  0x84   :  { %833 = vmatprep.subr.mxu0 %v203_v30  ;;  %904 = vmatprep.subr.mxu1 %v205_v31  ;;  %v474_v30 = vld [vmem:[#allocation4 + $0xca0] sm:$0xff]  ;;  %v476_v31 = vld [vmem:[#allocation4 + $0xcb0] sm:$0xff] }
  0x85   :  { %834 = vmatpush1.msra.mxu0 %v202_v32  ;;  %905 = vmatpush1.msra.mxu1 %v204_v33  ;;  %v459_v32 = vld [vmem:[#allocation4 + $0xc28] sm:$0xff]  ;;  %v461_v33 = vld [vmem:[#allocation4 + $0xc38] sm:$0xff] }
  0x86   :  { %835 = vmatprep.subr.mxu0 %v187_v34  ;;  %906 = vmatprep.subr.mxu1 %v189_v35  ;;  %v458_v34 = vld [vmem:[#allocation4 + $0xc20] sm:$0xff]  ;;  %v460_v35 = vld [vmem:[#allocation4 + $0xc30] sm:$0xff] }
  0x87   :  { %836 = vmatpush1.msra.mxu0 %v186_v36  ;;  %907 = vmatpush1.msra.mxu1 %v188_v37  ;;  %v443_v36 = vld [vmem:[#allocation4 + $0xba8] sm:$0xff]  ;;  %v445_v37 = vld [vmem:[#allocation4 + $0xbb8] sm:$0xff] }
  0x88   :  { %837 = vmatprep.subr.mxu0 %v171_v38  ;;  %908 = vmatprep.subr.mxu1 %v173_v39  ;;  %v442_v38 = vld [vmem:[#allocation4 + $0xba0] sm:$0xff]  ;;  %v444_v39 = vld [vmem:[#allocation4 + $0xbb0] sm:$0xff] }
  0x89   :  { %838 = vmatpush1.msra.mxu0 %v170_v40  ;;  %909 = vmatpush1.msra.mxu1 %v172_v41  ;;  %v427_v40 = vld [vmem:[#allocation4 + $0xb28] sm:$0xff]  ;;  %v429_v41 = vld [vmem:[#allocation4 + $0xb38] sm:$0xff] }
  0x8a   :  { %839 = vmatprep.subr.mxu0 %v155_v42  ;;  %910 = vmatprep.subr.mxu1 %v157_v43  ;;  %v426_v42 = vld [vmem:[#allocation4 + $0xb20] sm:$0xff]  ;;  %v428_v43 = vld [vmem:[#allocation4 + $0xb30] sm:$0xff] }
  0x8b   :  { %840 = vmatpush1.msra.mxu0 %v154_v44  ;;  %911 = vmatpush1.msra.mxu1 %v156_v45  ;;  %v411_v44 = vld [vmem:[#allocation4 + $0xaa8] sm:$0xff]  ;;  %v413_v45 = vld [vmem:[#allocation4 + $0xab8] sm:$0xff] }
  0x8c   :  { %841 = vmatprep.subr.mxu0 %v139_v46  ;;  %912 = vmatprep.subr.mxu1 %v141_v47  ;;  %v410_v46 = vld [vmem:[#allocation4 + $0xaa0] sm:$0xff]  ;;  %v412_v47 = vld [vmem:[#allocation4 + $0xab0] sm:$0xff] }
  0x8d   :  { %842 = vmatpush1.msra.mxu0 %v138_v48  ;;  %913 = vmatpush1.msra.mxu1 %v140_v49  ;;  %v395_v48 = vld [vmem:[#allocation4 + $0xa28] sm:$0xff]  ;;  %v397_v49 = vld [vmem:[#allocation4 + $0xa38] sm:$0xff] }
  0x8e   :  { %843 = vmatprep.subr.mxu0 %v123_v50  ;;  %914 = vmatprep.subr.mxu1 %v125_v51  ;;  %v394_v50 = vld [vmem:[#allocation4 + $0xa20] sm:$0xff]  ;;  %v396_v51 = vld [vmem:[#allocation4 + $0xa30] sm:$0xff] }
  0x8f   :  { %844 = vmatpush1.msra.mxu0 %v122_v52  ;;  %915 = vmatpush1.msra.mxu1 %v124_v53  ;;  %v379_v52 = vld [vmem:[#allocation4 + $0x9a8] sm:$0xff]  ;;  %v381_v53 = vld [vmem:[#allocation4 + $0x9b8] sm:$0xff] }
  0x90   :  { %845 = vmatprep.subr.mxu0 %v107_v54  ;;  %916 = vmatprep.subr.mxu1 %v109_v55  ;;  %v378_v54 = vld [vmem:[#allocation4 + $0x9a0] sm:$0xff]  ;;  %v380_v55 = vld [vmem:[#allocation4 + $0x9b0] sm:$0xff] }
  0x91   :  { %846 = vmatpush1.msra.mxu0 %v106_v57  ;;  %917 = vmatpush1.msra.mxu1 %v108_v58  ;;  %v363_v57 = vld [vmem:[#allocation4 + $0x928] sm:$0xff]  ;;  %v365_v58 = vld [vmem:[#allocation4 + $0x938] sm:$0xff] }
  0x92   :  { %847 = vmatprep.subr.mxu0 %v91_v59  ;;  %918 = vmatprep.subr.mxu1 %v93_v60  ;;  %v362_v59 = vld [vmem:[#allocation4 + $0x920] sm:$0xff]  ;;  %v364_v60 = vld [vmem:[#allocation4 + $0x930] sm:$0xff] }
  0x93   :  { %848 = vmatpush1.msra.mxu0 %v90_v61  ;;  %919 = vmatpush1.msra.mxu1 %v92_v62  ;;  %v347_v61 = vld [vmem:[#allocation4 + $0x8a8] sm:$0xff]  ;;  %v349_v62 = vld [vmem:[#allocation4 + $0x8b8] sm:$0xff] }
  0x94   :  { %849 = vmatprep.subr.mxu0 %v75_v0  ;;  %920 = vmatprep.subr.mxu1 %v77_v1  ;;  %v346_v0 = vld [vmem:[#allocation4 + $0x8a0] sm:$0xff]  ;;  %v348_v1 = vld [vmem:[#allocation4 + $0x8b0] sm:$0xff] }
  0x95   :  { %850 = vmatpush1.msra.mxu0 %v74_v2  ;;  %921 = vmatpush1.msra.mxu1 %v76_v3  ;;  %v331_v2 = vld [vmem:[#allocation4 + $0x828] sm:$0xff]  ;;  %v333_v3 = vld [vmem:[#allocation4 + $0x838] sm:$0xff] }
  0x96   :  { %851 = vmatprep.subr.mxu0 %v571_v4  ;;  %922 = vmatprep.subr.mxu1 %v573_v5  ;;  %v330_v4 = vld [vmem:[#allocation4 + $0x820] sm:$0xff]  ;;  %v332_v5 = vld [vmem:[#allocation4 + $0x830] sm:$0xff] }
  0x97   :  { %852 = vmatpush2.msra.mxu0 %v570_v6  ;;  %923 = vmatpush2.msra.mxu1 %v572_v7  ;;  %v319_v6 = vld [vmem:[#allocation4 + $0x7c8] sm:$0xff]  ;;  %v321_v7 = vld [vmem:[#allocation4 + $0x7d8] sm:$0xff] }
  0x98   :  { %853 = vmatprep.subr.mxu0 %v555_v8  ;;  %924 = vmatprep.subr.mxu1 %v557_v9  ;;  %v318_v8 = vld [vmem:[#allocation4 + $0x7c0] sm:$0xff]  ;;  %v320_v9 = vld [vmem:[#allocation4 + $0x7d0] sm:$0xff] }
  0x99   :  { %854 = vmatpush2.msra.mxu0 %v554_v10  ;;  %925 = vmatpush2.msra.mxu1 %v556_v11  ;;  %v303_v10 = vld [vmem:[#allocation4 + $0x748] sm:$0xff]  ;;  %v305_v11 = vld [vmem:[#allocation4 + $0x758] sm:$0xff] }
  0x9a   :  { %855 = vmatprep.subr.mxu0 %v539_v12  ;;  %926 = vmatprep.subr.mxu1 %v541_v13  ;;  %v302_v12 = vld [vmem:[#allocation4 + $0x740] sm:$0xff]  ;;  %v304_v13 = vld [vmem:[#allocation4 + $0x750] sm:$0xff] }
  0x9b   :  { %856 = vmatpush2.msra.mxu0 %v538_v14  ;;  %927 = vmatpush2.msra.mxu1 %v540_v15  ;;  %v287_v14 = vld [vmem:[#allocation4 + $0x6c8] sm:$0xff]  ;;  %v289_v15 = vld [vmem:[#allocation4 + $0x6d8] sm:$0xff] }
  0x9c   :  { %857 = vmatprep.subr.mxu0 %v523_v16  ;;  %928 = vmatprep.subr.mxu1 %v525_v17  ;;  %v286_v16 = vld [vmem:[#allocation4 + $0x6c0] sm:$0xff]  ;;  %v288_v17 = vld [vmem:[#allocation4 + $0x6d0] sm:$0xff] }
  0x9d   :  { %858 = vmatpush2.msra.mxu0 %v522_v18  ;;  %929 = vmatpush2.msra.mxu1 %v524_v19  ;;  %v271_v18 = vld [vmem:[#allocation4 + $0x648] sm:$0xff]  ;;  %v273_v19 = vld [vmem:[#allocation4 + $0x658] sm:$0xff] }
  0x9e   :  { %859 = vmatprep.subr.mxu0 %v507_v20  ;;  %930 = vmatprep.subr.mxu1 %v509_v21  ;;  %v272_v20 = vld [vmem:[#allocation4 + $0x650] sm:$0xff]  ;;  %v255_v21 = vld [vmem:[#allocation4 + $0x5c8] sm:$0xff] }
  0x9f   :  { %860 = vmatpush2.msra.mxu0 %v506_v22  ;;  %931 = vmatpush2.msra.mxu1 %v508_v23  ;;  %v257_v22 = vld [vmem:[#allocation4 + $0x5d8] sm:$0xff]  ;;  %v254_v23 = vld [vmem:[#allocation4 + $0x5c0] sm:$0xff] }
  0xa0   :  { %861 = vmatprep.subr.mxu0 %v491_v24  ;;  %932 = vmatprep.subr.mxu1 %v493_v25  ;;  %v256_v24 = vld [vmem:[#allocation4 + $0x5d0] sm:$0xff]  ;;  %v239_v25 = vld [vmem:[#allocation4 + $0x548] sm:$0xff] }
  0xa1   :  { %862 = vmatpush2.msra.mxu0 %v490_v26  ;;  %933 = vmatpush2.msra.mxu1 %v492_v27  ;;  %v241_v26 = vld [vmem:[#allocation4 + $0x558] sm:$0xff]  ;;  %v238_v27 = vld [vmem:[#allocation4 + $0x540] sm:$0xff] }
  0xa2   :  { %863 = vmatprep.subr.mxu0 %v475_v28  ;;  %934 = vmatprep.subr.mxu1 %v477_v29  ;;  %v240_v28 = vld [vmem:[#allocation4 + $0x550] sm:$0xff]  ;;  %v223_v29 = vld [vmem:[#allocation4 + $0x4c8] sm:$0xff] }
  0xa3   :  { %864 = vmatpush2.msra.mxu0 %v474_v30  ;;  %935 = vmatpush2.msra.mxu1 %v476_v31  ;;  %v225_v30 = vld [vmem:[#allocation4 + $0x4d8] sm:$0xff]  ;;  %v222_v31 = vld [vmem:[#allocation4 + $0x4c0] sm:$0xff] }
  0xa4   :  { %865 = vmatprep.subr.mxu0 %v459_v32  ;;  %936 = vmatprep.subr.mxu1 %v461_v33  ;;  %v224_v32 = vld [vmem:[#allocation4 + $0x4d0] sm:$0xff]  ;;  %v207_v33 = vld [vmem:[#allocation4 + $0x448] sm:$0xff] }
  0xa5   :  { %866 = vmatpush2.msra.mxu0 %v458_v34  ;;  %937 = vmatpush2.msra.mxu1 %v460_v35  ;;  %v209_v34 = vld [vmem:[#allocation4 + $0x458] sm:$0xff]  ;;  %v206_v35 = vld [vmem:[#allocation4 + $0x440] sm:$0xff] }
  0xa6   :  { %867 = vmatprep.subr.mxu0 %v443_v36  ;;  %938 = vmatprep.subr.mxu1 %v445_v37  ;;  %v208_v36 = vld [vmem:[#allocation4 + $0x450] sm:$0xff]  ;;  %v191_v37 = vld [vmem:[#allocation4 + $0x3c8] sm:$0xff] }
  0xa7   :  { %868 = vmatpush2.msra.mxu0 %v442_v38  ;;  %939 = vmatpush2.msra.mxu1 %v444_v39  ;;  %v193_v38 = vld [vmem:[#allocation4 + $0x3d8] sm:$0xff]  ;;  %v190_v39 = vld [vmem:[#allocation4 + $0x3c0] sm:$0xff] }
  0xa8   :  { %869 = vmatprep.subr.mxu0 %v427_v40  ;;  %940 = vmatprep.subr.mxu1 %v429_v41  ;;  %v192_v40 = vld [vmem:[#allocation4 + $0x3d0] sm:$0xff]  ;;  %v175_v41 = vld [vmem:[#allocation4 + $0x348] sm:$0xff] }
  0xa9   :  { %870 = vmatpush2.msra.mxu0 %v426_v42  ;;  %941 = vmatpush2.msra.mxu1 %v428_v43  ;;  %v177_v42 = vld [vmem:[#allocation4 + $0x358] sm:$0xff]  ;;  %v174_v43 = vld [vmem:[#allocation4 + $0x340] sm:$0xff] }
  0xaa   :  { %871 = vmatprep.subr.mxu0 %v411_v44  ;;  %942 = vmatprep.subr.mxu1 %v413_v45  ;;  %v176_v44 = vld [vmem:[#allocation4 + $0x350] sm:$0xff]  ;;  %v159_v45 = vld [vmem:[#allocation4 + $0x2c8] sm:$0xff] }
  0xab   :  { %872 = vmatpush2.msra.mxu0 %v410_v46  ;;  %943 = vmatpush2.msra.mxu1 %v412_v47  ;;  %v161_v46 = vld [vmem:[#allocation4 + $0x2d8] sm:$0xff]  ;;  %v158_v47 = vld [vmem:[#allocation4 + $0x2c0] sm:$0xff] }
  0xac   :  { %873 = vmatprep.subr.mxu0 %v395_v48  ;;  %944 = vmatprep.subr.mxu1 %v397_v49  ;;  %v160_v48 = vld [vmem:[#allocation4 + $0x2d0] sm:$0xff]  ;;  %v143_v49 = vld [vmem:[#allocation4 + $0x248] sm:$0xff] }
  0xad   :  { %874 = vmatpush2.msra.mxu0 %v394_v50  ;;  %945 = vmatpush2.msra.mxu1 %v396_v51  ;;  %v145_v50 = vld [vmem:[#allocation4 + $0x258] sm:$0xff]  ;;  %v142_v51 = vld [vmem:[#allocation4 + $0x240] sm:$0xff] }
  0xae   :  { %875 = vmatprep.subr.mxu0 %v379_v52  ;;  %946 = vmatprep.subr.mxu1 %v381_v53  ;;  %v144_v52 = vld [vmem:[#allocation4 + $0x250] sm:$0xff]  ;;  %v127_v53 = vld [vmem:[#allocation4 + $0x1c8] sm:$0xff] }
  0xaf   :  { %876 = vmatpush2.msra.mxu0 %v378_v54  ;;  %947 = vmatpush2.msra.mxu1 %v380_v55  ;;  %v129_v54 = vld [vmem:[#allocation4 + $0x1d8] sm:$0xff]  ;;  %v126_v55 = vld [vmem:[#allocation4 + $0x1c0] sm:$0xff] }
  0xb0   :  { %877 = vmatprep.subr.mxu0 %v363_v57  ;;  %948 = vmatprep.subr.mxu1 %v365_v58  ;;  %v128_v57 = vld [vmem:[#allocation4 + $0x1d0] sm:$0xff]  ;;  %v111_v58 = vld [vmem:[#allocation4 + $0x148] sm:$0xff] }
  0xb1   :  { %878 = vmatpush2.msra.mxu0 %v362_v59  ;;  %949 = vmatpush2.msra.mxu1 %v364_v60  ;;  %v113_v59 = vld [vmem:[#allocation4 + $0x158] sm:$0xff]  ;;  %v110_v60 = vld [vmem:[#allocation4 + $0x140] sm:$0xff] }
  0xb2   :  { %879 = vmatprep.subr.mxu0 %v347_v61  ;;  %950 = vmatprep.subr.mxu1 %v349_v62  ;;  %v112_v61 = vld [vmem:[#allocation4 + $0x150] sm:$0xff]  ;;  %v95_v62 = vld [vmem:[#allocation4 + $0xc8] sm:$0xff] }
  0xb3   :  { %880 = vmatpush2.msra.mxu0 %v346_v0  ;;  %951 = vmatpush2.msra.mxu1 %v348_v1  ;;  %v97_v0 = vld [vmem:[#allocation4 + $0xd8] sm:$0xff]  ;;  %v94_v1 = vld [vmem:[#allocation4 + $0xc0] sm:$0xff] }
  0xb4   :  { %881 = vmatprep.subr.mxu0 %v331_v2  ;;  %952 = vmatprep.subr.mxu1 %v333_v3  ;;  %v96_v2 = vld [vmem:[#allocation4 + $0xd0] sm:$0xff]  ;;  %v79_v3 = vld [vmem:[#allocation4 + $0x48] sm:$0xff] }
  0xb5   :  { %882 = vmatpush2.msra.mxu0 %v330_v4  ;;  %883 = vmatprep.mubr.f32.mxu0 %v2520_v63  ;;  %v81_v4 = vld [vmem:[#allocation4 + $0x58] sm:$0xff] }
  0xb6   :  { %953 = vmatpush2.msra.mxu1 %v332_v5  ;;  %954 = vmatprep.mubr.f32.mxu1 %v2520_v63  ;;  %v78_v5 = vld [vmem:[#allocation4 + $0x40] sm:$0xff] }
  0xb7   :  { %884 = vmatmul.mubr.f32.vlgmr.msra.gmra.mxu0 %v2516_v56  ;;  %955 = vmatmul.mubr.f32.vlgmr.msra.gmra.mxu1 %v2516_v56  ;;  %v270_v56 = vld [vmem:[#allocation4 + $0x640] sm:$0xff] }
  0xb8   :  { %961 = vmatprep.subr.mxu0 %v319_v6  ;;  %1032 = vmatprep.subr.mxu1 %v321_v7  ;;  %v80_v6 = vld [vmem:[#allocation4 + $0x50] sm:$0xff]  ;;  %v575_v7 = vld [vmem:[#allocation4 + $0xfc8] sm:$0xff] }
  0xb9   :  { %962 = vmatpush1.msra.mxu0 %v318_v8  ;;  %1033 = vmatpush1.msra.mxu1 %v320_v9  ;;  %v577_v8 = vld [vmem:[#allocation4 + $0xfd8] sm:$0xff]  ;;  %v574_v9 = vld [vmem:[#allocation4 + $0xfc0] sm:$0xff] }
  0xba   :  { %963 = vmatprep.subr.mxu0 %v303_v10  ;;  %1034 = vmatprep.subr.mxu1 %v305_v11  ;;  %v576_v10 = vld [vmem:[#allocation4 + $0xfd0] sm:$0xff]  ;;  %v559_v11 = vld [vmem:[#allocation4 + $0xf48] sm:$0xff] }
  0xbb   :  { %964 = vmatpush1.msra.mxu0 %v302_v12  ;;  %1035 = vmatpush1.msra.mxu1 %v304_v13  ;;  %v561_v12 = vld [vmem:[#allocation4 + $0xf58] sm:$0xff]  ;;  %v558_v13 = vld [vmem:[#allocation4 + $0xf40] sm:$0xff] }
  0xbc   :  { %965 = vmatprep.subr.mxu0 %v287_v14  ;;  %1036 = vmatprep.subr.mxu1 %v289_v15  ;;  %v560_v14 = vld [vmem:[#allocation4 + $0xf50] sm:$0xff]  ;;  %v543_v15 = vld [vmem:[#allocation4 + $0xec8] sm:$0xff] }
  0xbd   :  { %966 = vmatpush1.msra.mxu0 %v286_v16  ;;  %1037 = vmatpush1.msra.mxu1 %v288_v17  ;;  %v545_v16 = vld [vmem:[#allocation4 + $0xed8] sm:$0xff]  ;;  %v542_v17 = vld [vmem:[#allocation4 + $0xec0] sm:$0xff] }
  0xbe   :  { %967 = vmatprep.subr.mxu0 %v271_v18  ;;  %1038 = vmatprep.subr.mxu1 %v273_v19  ;;  %v544_v18 = vld [vmem:[#allocation4 + $0xed0] sm:$0xff]  ;;  %v527_v19 = vld [vmem:[#allocation4 + $0xe48] sm:$0xff] }
  0xbf   :  { %968 = vmatpush1.msra.mxu0 %v270_v56  ;;  %1039 = vmatpush1.msra.mxu1 %v272_v20  ;;  %v529_v56 = vld [vmem:[#allocation4 + $0xe58] sm:$0xff]  ;;  %v526_v20 = vld [vmem:[#allocation4 + $0xe40] sm:$0xff] }
  0xc0   :  { %969 = vmatprep.subr.mxu0 %v255_v21  ;;  %1040 = vmatprep.subr.mxu1 %v257_v22  ;;  %v528_v21 = vld [vmem:[#allocation4 + $0xe50] sm:$0xff]  ;;  %v511_v22 = vld [vmem:[#allocation4 + $0xdc8] sm:$0xff] }
  0xc1   :  { %970 = vmatpush1.msra.mxu0 %v254_v23  ;;  %1041 = vmatpush1.msra.mxu1 %v256_v24  ;;  %v513_v23 = vld [vmem:[#allocation4 + $0xdd8] sm:$0xff]  ;;  %v510_v24 = vld [vmem:[#allocation4 + $0xdc0] sm:$0xff] }
  0xc2   :  { %971 = vmatprep.subr.mxu0 %v239_v25  ;;  %1042 = vmatprep.subr.mxu1 %v241_v26  ;;  %v512_v25 = vld [vmem:[#allocation4 + $0xdd0] sm:$0xff]  ;;  %v495_v26 = vld [vmem:[#allocation4 + $0xd48] sm:$0xff] }
  0xc3   :  { %972 = vmatpush1.msra.mxu0 %v238_v27  ;;  %1043 = vmatpush1.msra.mxu1 %v240_v28  ;;  %v497_v27 = vld [vmem:[#allocation4 + $0xd58] sm:$0xff]  ;;  %v494_v28 = vld [vmem:[#allocation4 + $0xd40] sm:$0xff] }
  0xc4   :  { %973 = vmatprep.subr.mxu0 %v223_v29  ;;  %1044 = vmatprep.subr.mxu1 %v225_v30  ;;  %v496_v29 = vld [vmem:[#allocation4 + $0xd50] sm:$0xff]  ;;  %v479_v30 = vld [vmem:[#allocation4 + $0xcc8] sm:$0xff] }
  0xc5   :  { %974 = vmatpush1.msra.mxu0 %v222_v31  ;;  %1045 = vmatpush1.msra.mxu1 %v224_v32  ;;  %v481_v31 = vld [vmem:[#allocation4 + $0xcd8] sm:$0xff]  ;;  %v478_v32 = vld [vmem:[#allocation4 + $0xcc0] sm:$0xff] }
  0xc6   :  { %975 = vmatprep.subr.mxu0 %v207_v33  ;;  %1046 = vmatprep.subr.mxu1 %v209_v34  ;;  %v480_v33 = vld [vmem:[#allocation4 + $0xcd0] sm:$0xff]  ;;  %v463_v34 = vld [vmem:[#allocation4 + $0xc48] sm:$0xff] }
  0xc7   :  { %976 = vmatpush1.msra.mxu0 %v206_v35  ;;  %1047 = vmatpush1.msra.mxu1 %v208_v36  ;;  %v465_v35 = vld [vmem:[#allocation4 + $0xc58] sm:$0xff]  ;;  %v462_v36 = vld [vmem:[#allocation4 + $0xc40] sm:$0xff] }
  0xc8   :  { %977 = vmatprep.subr.mxu0 %v191_v37  ;;  %1048 = vmatprep.subr.mxu1 %v193_v38  ;;  %v464_v37 = vld [vmem:[#allocation4 + $0xc50] sm:$0xff]  ;;  %v447_v38 = vld [vmem:[#allocation4 + $0xbc8] sm:$0xff] }
  0xc9   :  { %978 = vmatpush1.msra.mxu0 %v190_v39  ;;  %1049 = vmatpush1.msra.mxu1 %v192_v40  ;;  %v449_v39 = vld [vmem:[#allocation4 + $0xbd8] sm:$0xff]  ;;  %v446_v40 = vld [vmem:[#allocation4 + $0xbc0] sm:$0xff] }
  0xca   :  { %979 = vmatprep.subr.mxu0 %v175_v41  ;;  %1050 = vmatprep.subr.mxu1 %v177_v42  ;;  %v448_v41 = vld [vmem:[#allocation4 + $0xbd0] sm:$0xff]  ;;  %v431_v42 = vld [vmem:[#allocation4 + $0xb48] sm:$0xff] }
  0xcb   :  { %980 = vmatpush1.msra.mxu0 %v174_v43  ;;  %1051 = vmatpush1.msra.mxu1 %v176_v44  ;;  %v433_v43 = vld [vmem:[#allocation4 + $0xb58] sm:$0xff]  ;;  %v430_v44 = vld [vmem:[#allocation4 + $0xb40] sm:$0xff] }
  0xcc   :  { %981 = vmatprep.subr.mxu0 %v159_v45  ;;  %1052 = vmatprep.subr.mxu1 %v161_v46  ;;  %v432_v45 = vld [vmem:[#allocation4 + $0xb50] sm:$0xff]  ;;  %v415_v46 = vld [vmem:[#allocation4 + $0xac8] sm:$0xff] }
  0xcd   :  { %982 = vmatpush1.msra.mxu0 %v158_v47  ;;  %1053 = vmatpush1.msra.mxu1 %v160_v48  ;;  %v417_v47 = vld [vmem:[#allocation4 + $0xad8] sm:$0xff]  ;;  %v414_v48 = vld [vmem:[#allocation4 + $0xac0] sm:$0xff] }
  0xce   :  { %983 = vmatprep.subr.mxu0 %v143_v49  ;;  %1054 = vmatprep.subr.mxu1 %v145_v50  ;;  %v416_v49 = vld [vmem:[#allocation4 + $0xad0] sm:$0xff]  ;;  %v399_v50 = vld [vmem:[#allocation4 + $0xa48] sm:$0xff] }
  0xcf   :  { %984 = vmatpush1.msra.mxu0 %v142_v51  ;;  %1055 = vmatpush1.msra.mxu1 %v144_v52  ;;  %v401_v51 = vld [vmem:[#allocation4 + $0xa58] sm:$0xff]  ;;  %v398_v52 = vld [vmem:[#allocation4 + $0xa40] sm:$0xff] }
  0xd0   :  { %985 = vmatprep.subr.mxu0 %v127_v53  ;;  %1056 = vmatprep.subr.mxu1 %v129_v54  ;;  %v400_v53 = vld [vmem:[#allocation4 + $0xa50] sm:$0xff]  ;;  %v383_v54 = vld [vmem:[#allocation4 + $0x9c8] sm:$0xff] }
  0xd1   :  { %986 = vmatpush1.msra.mxu0 %v126_v55  ;;  %1057 = vmatpush1.msra.mxu1 %v128_v57  ;;  %v385_v55 = vld [vmem:[#allocation4 + $0x9d8] sm:$0xff]  ;;  %v382_v57 = vld [vmem:[#allocation4 + $0x9c0] sm:$0xff] }
  0xd2   :  { %987 = vmatprep.subr.mxu0 %v111_v58  ;;  %1058 = vmatprep.subr.mxu1 %v113_v59  ;;  %v384_v58 = vld [vmem:[#allocation4 + $0x9d0] sm:$0xff]  ;;  %v367_v59 = vld [vmem:[#allocation4 + $0x948] sm:$0xff] }
  0xd3   :  { %988 = vmatpush1.msra.mxu0 %v110_v60  ;;  %1059 = vmatpush1.msra.mxu1 %v112_v61  ;;  %v369_v60 = vld [vmem:[#allocation4 + $0x958] sm:$0xff]  ;;  %v366_v61 = vld [vmem:[#allocation4 + $0x940] sm:$0xff] }
  0xd4   :  { %989 = vmatprep.subr.mxu0 %v95_v62  ;;  %1060 = vmatprep.subr.mxu1 %v97_v0  ;;  %v368_v62 = vld [vmem:[#allocation4 + $0x950] sm:$0xff]  ;;  %v351_v0 = vld [vmem:[#allocation4 + $0x8c8] sm:$0xff] }
  0xd5   :  { %990 = vmatpush1.msra.mxu0 %v94_v1  ;;  %1061 = vmatpush1.msra.mxu1 %v96_v2  ;;  %v353_v1 = vld [vmem:[#allocation4 + $0x8d8] sm:$0xff]  ;;  %v350_v2 = vld [vmem:[#allocation4 + $0x8c0] sm:$0xff] }
  0xd6   :  { %991 = vmatprep.subr.mxu0 %v79_v3  ;;  %1062 = vmatprep.subr.mxu1 %v81_v4  ;;  %v352_v3 = vld [vmem:[#allocation4 + $0x8d0] sm:$0xff]  ;;  %v335_v4 = vld [vmem:[#allocation4 + $0x848] sm:$0xff] }
  0xd7   :  { %992 = vmatpush1.msra.mxu0 %v78_v5  ;;  %1063 = vmatpush1.msra.mxu1 %v80_v6  ;;  %v337_v5 = vld [vmem:[#allocation4 + $0x858] sm:$0xff]  ;;  %v334_v6 = vld [vmem:[#allocation4 + $0x840] sm:$0xff] }
  0xd8   :  { %993 = vmatprep.subr.mxu0 %v575_v7  ;;  %1064 = vmatprep.subr.mxu1 %v577_v8  ;;  %v336_v7 = vld [vmem:[#allocation4 + $0x850] sm:$0xff]  ;;  %v323_v8 = vld [vmem:[#allocation4 + $0x7e8] sm:$0xff] }
  0xd9   :  { %994 = vmatpush2.msra.mxu0 %v574_v9  ;;  %1065 = vmatpush2.msra.mxu1 %v576_v10  ;;  %v325_v9 = vld [vmem:[#allocation4 + $0x7f8] sm:$0xff]  ;;  %v322_v10 = vld [vmem:[#allocation4 + $0x7e0] sm:$0xff] }
  0xda   :  { %995 = vmatprep.subr.mxu0 %v559_v11  ;;  %1066 = vmatprep.subr.mxu1 %v561_v12  ;;  %v324_v11 = vld [vmem:[#allocation4 + $0x7f0] sm:$0xff]  ;;  %v2532_v12 = vld.sshfl [vmem:[#allocation2] sm:$0x33 pattern:$0x76325410] }
  0xdb   :  { %996 = vmatpush2.msra.mxu0 %v558_v13  ;;  %1067 = vmatpush2.msra.mxu1 %v560_v14  ;;  %v307_v13 = vld [vmem:[#allocation4 + $0x768] sm:$0xff]  ;;  %v309_v14 = vld [vmem:[#allocation4 + $0x778] sm:$0xff] }
  0xdc   :  { %997 = vmatprep.subr.mxu0 %v543_v15  ;;  %1068 = vmatprep.subr.mxu1 %v545_v16  ;;  %v306_v15 = vld [vmem:[#allocation4 + $0x760] sm:$0xff]  ;;  %v308_v16 = vld [vmem:[#allocation4 + $0x770] sm:$0xff] }
  0xdd   :  { %998 = vmatpush2.msra.mxu0 %v542_v17  ;;  %1069 = vmatpush2.msra.mxu1 %v544_v18  ;;  %v291_v17 = vld [vmem:[#allocation4 + $0x6e8] sm:$0xff]  ;;  %v293_v18 = vld [vmem:[#allocation4 + $0x6f8] sm:$0xff] }
  0xde   :  { %999 = vmatprep.subr.mxu0 %v527_v19  ;;  %1070 = vmatprep.subr.mxu1 %v529_v56  ;;  %v290_v19 = vld [vmem:[#allocation4 + $0x6e0] sm:$0xff]  ;;  %v292_v56 = vld [vmem:[#allocation4 + $0x6f0] sm:$0xff] }
  0xdf   :  { %1000 = vmatpush2.msra.mxu0 %v526_v20  ;;  %1071 = vmatpush2.msra.mxu1 %v528_v21  ;;  %v275_v20 = vld [vmem:[#allocation4 + $0x668] sm:$0xff]  ;;  %v277_v21 = vld [vmem:[#allocation4 + $0x678] sm:$0xff] }
  0xe0   :  { %1001 = vmatprep.subr.mxu0 %v511_v22  ;;  %1072 = vmatprep.subr.mxu1 %v513_v23  ;;  %v274_v22 = vld [vmem:[#allocation4 + $0x660] sm:$0xff]  ;;  %v276_v23 = vld [vmem:[#allocation4 + $0x670] sm:$0xff] }
  0xe1   :  { %1002 = vmatpush2.msra.mxu0 %v510_v24  ;;  %1073 = vmatpush2.msra.mxu1 %v512_v25  ;;  %v259_v24 = vld [vmem:[#allocation4 + $0x5e8] sm:$0xff]  ;;  %v261_v25 = vld [vmem:[#allocation4 + $0x5f8] sm:$0xff] }
  0xe2   :  { %1003 = vmatprep.subr.mxu0 %v495_v26  ;;  %1074 = vmatprep.subr.mxu1 %v497_v27  ;;  %v258_v26 = vld [vmem:[#allocation4 + $0x5e0] sm:$0xff]  ;;  %v260_v27 = vld [vmem:[#allocation4 + $0x5f0] sm:$0xff] }
  0xe3   :  { %1004 = vmatpush2.msra.mxu0 %v494_v28  ;;  %1075 = vmatpush2.msra.mxu1 %v496_v29  ;;  %v243_v28 = vld [vmem:[#allocation4 + $0x568] sm:$0xff]  ;;  %v245_v29 = vld [vmem:[#allocation4 + $0x578] sm:$0xff] }
  0xe4   :  { %1005 = vmatprep.subr.mxu0 %v479_v30  ;;  %1076 = vmatprep.subr.mxu1 %v481_v31  ;;  %v242_v30 = vld [vmem:[#allocation4 + $0x560] sm:$0xff]  ;;  %v244_v31 = vld [vmem:[#allocation4 + $0x570] sm:$0xff] }
  0xe5   :  { %1006 = vmatpush2.msra.mxu0 %v478_v32  ;;  %1077 = vmatpush2.msra.mxu1 %v480_v33  ;;  %v227_v32 = vld [vmem:[#allocation4 + $0x4e8] sm:$0xff]  ;;  %v229_v33 = vld [vmem:[#allocation4 + $0x4f8] sm:$0xff] }
  0xe6   :  { %1007 = vmatprep.subr.mxu0 %v463_v34  ;;  %1078 = vmatprep.subr.mxu1 %v465_v35  ;;  %v226_v34 = vld [vmem:[#allocation4 + $0x4e0] sm:$0xff]  ;;  %v228_v35 = vld [vmem:[#allocation4 + $0x4f0] sm:$0xff] }
  0xe7   :  { %1008 = vmatpush2.msra.mxu0 %v462_v36  ;;  %1079 = vmatpush2.msra.mxu1 %v464_v37  ;;  %v211_v36 = vld [vmem:[#allocation4 + $0x468] sm:$0xff]  ;;  %v213_v37 = vld [vmem:[#allocation4 + $0x478] sm:$0xff] }
  0xe8   :  { %1009 = vmatprep.subr.mxu0 %v447_v38  ;;  %1080 = vmatprep.subr.mxu1 %v449_v39  ;;  %v210_v38 = vld [vmem:[#allocation4 + $0x460] sm:$0xff]  ;;  %v212_v39 = vld [vmem:[#allocation4 + $0x470] sm:$0xff] }
  0xe9   :  { %1010 = vmatpush2.msra.mxu0 %v446_v40  ;;  %1081 = vmatpush2.msra.mxu1 %v448_v41  ;;  %v195_v40 = vld [vmem:[#allocation4 + $0x3e8] sm:$0xff]  ;;  %v197_v41 = vld [vmem:[#allocation4 + $0x3f8] sm:$0xff] }
  0xea   :  { %1011 = vmatprep.subr.mxu0 %v431_v42  ;;  %1082 = vmatprep.subr.mxu1 %v433_v43  ;;  %v194_v42 = vld [vmem:[#allocation4 + $0x3e0] sm:$0xff]  ;;  %v196_v43 = vld [vmem:[#allocation4 + $0x3f0] sm:$0xff] }
  0xeb   :  { %1012 = vmatpush2.msra.mxu0 %v430_v44  ;;  %1083 = vmatpush2.msra.mxu1 %v432_v45  ;;  %v179_v44 = vld [vmem:[#allocation4 + $0x368] sm:$0xff]  ;;  %v181_v45 = vld [vmem:[#allocation4 + $0x378] sm:$0xff] }
  0xec   :  { %1013 = vmatprep.subr.mxu0 %v415_v46  ;;  %1084 = vmatprep.subr.mxu1 %v417_v47  ;;  %v178_v46 = vld [vmem:[#allocation4 + $0x360] sm:$0xff]  ;;  %v180_v47 = vld [vmem:[#allocation4 + $0x370] sm:$0xff] }
  0xed   :  { %1014 = vmatpush2.msra.mxu0 %v414_v48  ;;  %1085 = vmatpush2.msra.mxu1 %v416_v49  ;;  %v163_v48 = vld [vmem:[#allocation4 + $0x2e8] sm:$0xff]  ;;  %v165_v49 = vld [vmem:[#allocation4 + $0x2f8] sm:$0xff] }
  0xee   :  { %1015 = vmatprep.subr.mxu0 %v399_v50  ;;  %1086 = vmatprep.subr.mxu1 %v401_v51  ;;  %v162_v50 = vld [vmem:[#allocation4 + $0x2e0] sm:$0xff]  ;;  %v164_v51 = vld [vmem:[#allocation4 + $0x2f0] sm:$0xff] }
  0xef   :  { %1016 = vmatpush2.msra.mxu0 %v398_v52  ;;  %1087 = vmatpush2.msra.mxu1 %v400_v53  ;;  %v147_v52 = vld [vmem:[#allocation4 + $0x268] sm:$0xff]  ;;  %v149_v53 = vld [vmem:[#allocation4 + $0x278] sm:$0xff] }
  0xf0   :  { %1017 = vmatprep.subr.mxu0 %v383_v54  ;;  %1088 = vmatprep.subr.mxu1 %v385_v55  ;;  %v146_v54 = vld [vmem:[#allocation4 + $0x260] sm:$0xff]  ;;  %v148_v55 = vld [vmem:[#allocation4 + $0x270] sm:$0xff] }
  0xf1   :  { %1018 = vmatpush2.msra.mxu0 %v382_v57  ;;  %1089 = vmatpush2.msra.mxu1 %v384_v58  ;;  %v131_v57 = vld [vmem:[#allocation4 + $0x1e8] sm:$0xff]  ;;  %v133_v58 = vld [vmem:[#allocation4 + $0x1f8] sm:$0xff] }
  0xf2   :  { %1019 = vmatprep.subr.mxu0 %v367_v59  ;;  %1090 = vmatprep.subr.mxu1 %v369_v60  ;;  %v130_v59 = vld [vmem:[#allocation4 + $0x1e0] sm:$0xff]  ;;  %v132_v60 = vld [vmem:[#allocation4 + $0x1f0] sm:$0xff] }
  0xf3   :  { %1020 = vmatpush2.msra.mxu0 %v366_v61  ;;  %1091 = vmatpush2.msra.mxu1 %v368_v62  ;;  %v115_v61 = vld [vmem:[#allocation4 + $0x168] sm:$0xff]  ;;  %v117_v62 = vld [vmem:[#allocation4 + $0x178] sm:$0xff] }
  0xf4   :  { %1021 = vmatprep.subr.mxu0 %v351_v0  ;;  %1092 = vmatprep.subr.mxu1 %v353_v1  ;;  %v114_v0 = vld [vmem:[#allocation4 + $0x160] sm:$0xff]  ;;  %v116_v1 = vld [vmem:[#allocation4 + $0x170] sm:$0xff] }
  0xf5   :  { %1022 = vmatpush2.msra.mxu0 %v350_v2  ;;  %1093 = vmatpush2.msra.mxu1 %v352_v3  ;;  %v99_v2 = vld [vmem:[#allocation4 + $0xe8] sm:$0xff]  ;;  %v101_v3 = vld [vmem:[#allocation4 + $0xf8] sm:$0xff] }
  0xf6   :  { %1023 = vmatprep.subr.mxu0 %v335_v4  ;;  %1094 = vmatprep.subr.mxu1 %v337_v5  ;;  %v98_v4 = vld [vmem:[#allocation4 + $0xe0] sm:$0xff]  ;;  %v100_v5 = vld [vmem:[#allocation4 + $0xf0] sm:$0xff] }
  0xf7   :  { %1024 = vmatpush2.msra.mxu0 %v334_v6  ;;  %1025 = vmatprep.mubr.f32.mxu0 %v2520_v63  ;;  %v83_v6 = vld [vmem:[#allocation4 + $0x68] sm:$0xff] }
  0xf8   :  { %1095 = vmatpush2.msra.mxu1 %v336_v7  ;;  %1096 = vmatprep.mubr.f32.mxu1 %v2520_v63  ;;  %v85_v7 = vld [vmem:[#allocation4 + $0x78] sm:$0xff] }
  0xf9   :  { %1026 = vmatmul.mubr.f32.vlgmr.msra.gmra.mxu0 %v2532_v12  ;;  %1097 = vmatmul.mubr.f32.vlgmr.msra.gmra.mxu1 %v2532_v12 }
  0xfa   :  { %1103 = vmatprep.subr.mxu0 %v323_v8  ;;  %1174 = vmatprep.subr.mxu1 %v325_v9  ;;  %v82_v8 = vld [vmem:[#allocation4 + $0x60] sm:$0xff]  ;;  %v84_v9 = vld [vmem:[#allocation4 + $0x70] sm:$0xff] }
  0xfb   :  { %1104 = vmatpush1.msra.mxu0 %v322_v10  ;;  %1175 = vmatpush1.msra.mxu1 %v324_v11  ;;  %v579_v10 = vld [vmem:[#allocation4 + $0xfe8] sm:$0xff]  ;;  %v581_v11 = vld [vmem:[#allocation4 + $0xff8] sm:$0xff] }
  0xfc   :  { %1105 = vmatprep.subr.mxu0 %v307_v13  ;;  %1176 = vmatprep.subr.mxu1 %v309_v14  ;;  %v578_v13 = vld [vmem:[#allocation4 + $0xfe0] sm:$0xff]  ;;  %v580_v14 = vld [vmem:[#allocation4 + $0xff0] sm:$0xff] }
  0xfd   :  { %1106 = vmatpush1.msra.mxu0 %v306_v15  ;;  %1177 = vmatpush1.msra.mxu1 %v308_v16  ;;  %v563_v15 = vld [vmem:[#allocation4 + $0xf68] sm:$0xff]  ;;  %v565_v16 = vld [vmem:[#allocation4 + $0xf78] sm:$0xff] }
  0xfe   :  { %1107 = vmatprep.subr.mxu0 %v291_v17  ;;  %1178 = vmatprep.subr.mxu1 %v293_v18  ;;  %v562_v17 = vld [vmem:[#allocation4 + $0xf60] sm:$0xff]  ;;  %v564_v18 = vld [vmem:[#allocation4 + $0xf70] sm:$0xff] }
  0xff   :  { %1108 = vmatpush1.msra.mxu0 %v290_v19  ;;  %1179 = vmatpush1.msra.mxu1 %v292_v56  ;;  %v547_v19 = vld [vmem:[#allocation4 + $0xee8] sm:$0xff]  ;;  %v549_v56 = vld [vmem:[#allocation4 + $0xef8] sm:$0xff] }
 0x100   :  { %1109 = vmatprep.subr.mxu0 %v275_v20  ;;  %1180 = vmatprep.subr.mxu1 %v277_v21  ;;  %v546_v20 = vld [vmem:[#allocation4 + $0xee0] sm:$0xff]  ;;  %v548_v21 = vld [vmem:[#allocation4 + $0xef0] sm:$0xff] }
 0x101   :  { %1110 = vmatpush1.msra.mxu0 %v274_v22  ;;  %1181 = vmatpush1.msra.mxu1 %v276_v23  ;;  %v531_v22 = vld [vmem:[#allocation4 + $0xe68] sm:$0xff]  ;;  %v533_v23 = vld [vmem:[#allocation4 + $0xe78] sm:$0xff] }
 0x102   :  { %1111 = vmatprep.subr.mxu0 %v259_v24  ;;  %1182 = vmatprep.subr.mxu1 %v261_v25  ;;  %v530_v24 = vld [vmem:[#allocation4 + $0xe60] sm:$0xff]  ;;  %v532_v25 = vld [vmem:[#allocation4 + $0xe70] sm:$0xff] }
 0x103   :  { %1112 = vmatpush1.msra.mxu0 %v258_v26  ;;  %1183 = vmatpush1.msra.mxu1 %v260_v27  ;;  %v515_v26 = vld [vmem:[#allocation4 + $0xde8] sm:$0xff]  ;;  %v517_v27 = vld [vmem:[#allocation4 + $0xdf8] sm:$0xff] }
 0x104   :  { %1113 = vmatprep.subr.mxu0 %v243_v28  ;;  %1184 = vmatprep.subr.mxu1 %v245_v29  ;;  %v514_v28 = vld [vmem:[#allocation4 + $0xde0] sm:$0xff]  ;;  %v516_v29 = vld [vmem:[#allocation4 + $0xdf0] sm:$0xff] }
 0x105   :  { %1114 = vmatpush1.msra.mxu0 %v242_v30  ;;  %1185 = vmatpush1.msra.mxu1 %v244_v31  ;;  %v499_v30 = vld [vmem:[#allocation4 + $0xd68] sm:$0xff]  ;;  %v501_v31 = vld [vmem:[#allocation4 + $0xd78] sm:$0xff] }
 0x106   :  { %1115 = vmatprep.subr.mxu0 %v227_v32  ;;  %1186 = vmatprep.subr.mxu1 %v229_v33  ;;  %v498_v32 = vld [vmem:[#allocation4 + $0xd60] sm:$0xff]  ;;  %v500_v33 = vld [vmem:[#allocation4 + $0xd70] sm:$0xff] }
 0x107   :  { %1116 = vmatpush1.msra.mxu0 %v226_v34  ;;  %1187 = vmatpush1.msra.mxu1 %v228_v35  ;;  %v483_v34 = vld [vmem:[#allocation4 + $0xce8] sm:$0xff]  ;;  %v485_v35 = vld [vmem:[#allocation4 + $0xcf8] sm:$0xff] }
 0x108   :  { %1117 = vmatprep.subr.mxu0 %v211_v36  ;;  %1188 = vmatprep.subr.mxu1 %v213_v37  ;;  %v482_v36 = vld [vmem:[#allocation4 + $0xce0] sm:$0xff]  ;;  %v484_v37 = vld [vmem:[#allocation4 + $0xcf0] sm:$0xff] }
 0x109   :  { %1118 = vmatpush1.msra.mxu0 %v210_v38  ;;  %1189 = vmatpush1.msra.mxu1 %v212_v39  ;;  %v467_v38 = vld [vmem:[#allocation4 + $0xc68] sm:$0xff]  ;;  %v469_v39 = vld [vmem:[#allocation4 + $0xc78] sm:$0xff] }
 0x10a   :  { %1119 = vmatprep.subr.mxu0 %v195_v40  ;;  %1190 = vmatprep.subr.mxu1 %v197_v41  ;;  %v466_v40 = vld [vmem:[#allocation4 + $0xc60] sm:$0xff]  ;;  %v468_v41 = vld [vmem:[#allocation4 + $0xc70] sm:$0xff] }
 0x10b   :  { %1120 = vmatpush1.msra.mxu0 %v194_v42  ;;  %1191 = vmatpush1.msra.mxu1 %v196_v43  ;;  %v451_v42 = vld [vmem:[#allocation4 + $0xbe8] sm:$0xff]  ;;  %v453_v43 = vld [vmem:[#allocation4 + $0xbf8] sm:$0xff] }
 0x10c   :  { %1121 = vmatprep.subr.mxu0 %v179_v44  ;;  %1192 = vmatprep.subr.mxu1 %v181_v45  ;;  %v450_v44 = vld [vmem:[#allocation4 + $0xbe0] sm:$0xff]  ;;  %v452_v45 = vld [vmem:[#allocation4 + $0xbf0] sm:$0xff] }
 0x10d   :  { %1122 = vmatpush1.msra.mxu0 %v178_v46  ;;  %1193 = vmatpush1.msra.mxu1 %v180_v47  ;;  %v435_v46 = vld [vmem:[#allocation4 + $0xb68] sm:$0xff]  ;;  %v437_v47 = vld [vmem:[#allocation4 + $0xb78] sm:$0xff] }
 0x10e   :  { %1123 = vmatprep.subr.mxu0 %v163_v48  ;;  %1194 = vmatprep.subr.mxu1 %v165_v49  ;;  %v434_v48 = vld [vmem:[#allocation4 + $0xb60] sm:$0xff]  ;;  %v436_v49 = vld [vmem:[#allocation4 + $0xb70] sm:$0xff] }
 0x10f   :  { %1124 = vmatpush1.msra.mxu0 %v162_v50  ;;  %1195 = vmatpush1.msra.mxu1 %v164_v51  ;;  %v419_v50 = vld [vmem:[#allocation4 + $0xae8] sm:$0xff]  ;;  %v421_v51 = vld [vmem:[#allocation4 + $0xaf8] sm:$0xff] }
 0x110   :  { %1125 = vmatprep.subr.mxu0 %v147_v52  ;;  %1196 = vmatprep.subr.mxu1 %v149_v53  ;;  %v586_v52 = vlaneseq  ;;  %v418_v53 = vld [vmem:[#allocation4 + $0xae0] sm:$0xff] }
 0x111   :  { %1126 = vmatpush1.msra.mxu0 %v146_v54  ;;  %1197 = vmatpush1.msra.mxu1 %v148_v55  ;;  %v420_v54 = vld [vmem:[#allocation4 + $0xaf0] sm:$0xff]  ;;  %v403_v55 = vld [vmem:[#allocation4 + $0xa68] sm:$0xff] }
 0x112   :  { %1127 = vmatprep.subr.mxu0 %v131_v57  ;;  %1198 = vmatprep.subr.mxu1 %v133_v58  ;;  %v405_v57 = vld [vmem:[#allocation4 + $0xa78] sm:$0xff]  ;;  %v402_v58 = vld [vmem:[#allocation4 + $0xa60] sm:$0xff] }
 0x113   :  { %1128 = vmatpush1.msra.mxu0 %v130_v59  ;;  %1199 = vmatpush1.msra.mxu1 %v132_v60  ;;  %v404_v59 = vld [vmem:[#allocation4 + $0xa70] sm:$0xff]  ;;  %v387_v60 = vld [vmem:[#allocation4 + $0x9e8] sm:$0xff] }
 0x114   :  { %1129 = vmatprep.subr.mxu0 %v115_v61  ;;  %1200 = vmatprep.subr.mxu1 %v117_v62  ;;  %v389_v61 = vld [vmem:[#allocation4 + $0x9f8] sm:$0xff]  ;;  %v2536_v62 = vshrl.u32 %v586_v52, 7  ;;  %v1302_v52 = vld [vmem:[%s3382_s3 + $0x148] sm:$0xff] }
 0x115   :  { %1130 = vmatpush1.msra.mxu0 %v114_v0  ;;  %1201 = vmatpush1.msra.mxu1 %v116_v1  ;;  %v386_v0 = vld [vmem:[#allocation4 + $0x9e0] sm:$0xff]  ;;  %v388_v1 = vld [vmem:[#allocation4 + $0x9f0] sm:$0xff] }
 0x116   :  { %1131 = vmatprep.subr.mxu0 %v99_v2  ;;  %1202 = vmatprep.subr.mxu1 %v101_v3  ;;  %v371_v2 = vld [vmem:[#allocation4 + $0x968] sm:$0xff]  ;;  %v373_v3 = vld [vmem:[#allocation4 + $0x978] sm:$0xff] }
 0x117   :  { %1132 = vmatpush1.msra.mxu0 %v98_v4  ;;  %1203 = vmatpush1.msra.mxu1 %v100_v5  ;;  %v370_v4 = vld [vmem:[#allocation4 + $0x960] sm:$0xff]  ;;  %v372_v5 = vld [vmem:[#allocation4 + $0x970] sm:$0xff] }
 0x118   :  { %1133 = vmatprep.subr.mxu0 %v83_v6  ;;  %1204 = vmatprep.subr.mxu1 %v85_v7  ;;  %v355_v6 = vld [vmem:[#allocation4 + $0x8e8] sm:$0xff]  ;;  %v357_v7 = vld [vmem:[#allocation4 + $0x8f8] sm:$0xff] }
 0x119   :  { %1134 = vmatpush1.msra.mxu0 %v82_v8  ;;  %1205 = vmatpush1.msra.mxu1 %v84_v9  ;;  %v592_v8 = vsub.s32 1, %v2536_v62  ;;  %v354_v9 = vld [vmem:[#allocation4 + $0x8e0] sm:$0xff] }
 0x11a   :  { %1135 = vmatprep.subr.mxu0 %v579_v10  ;;  %1206 = vmatprep.subr.mxu1 %v581_v11  ;;  %v356_v10 = vld [vmem:[#allocation4 + $0x8f0] sm:$0xff]  ;;  %v2539_v11 = vld [vmem:[#allocation6] sm:$0xff] }
 0x11b   :  { %1136 = vmatpush2.msra.mxu0 %v578_v13  ;;  %1207 = vmatpush2.msra.mxu1 %v580_v14  ;;  %v339_v14 = vld [vmem:[#allocation4 + $0x868] sm:$0xff] }
 0x11c   :  { %1137 = vmatprep.subr.mxu0 %v563_v15  ;;  %1208 = vmatprep.subr.mxu1 %v565_v16  ;;  %v341_v15 = vld [vmem:[#allocation4 + $0x878] sm:$0xff]  ;;  %v600_v16 = vsub.s32 3, %v2536_v62 }
 0x11d   :  { %1138 = vmatpush2.msra.mxu0 %v562_v17  ;;  %1209 = vmatpush2.msra.mxu1 %v564_v18  ;;  %v338_v17 = vld [vmem:[#allocation4 + $0x860] sm:$0xff] }
 0x11e   :  { %1139 = vmatprep.subr.mxu0 %v547_v19  ;;  %1210 = vmatprep.subr.mxu1 %v549_v56  ;;  %v340_v19 = vld [vmem:[#allocation4 + $0x870] sm:$0xff]  ;;  %v593_v56 = vrot.slane %v2539_v11, %v592_v8 }
 0x11f   :  { %1140 = vmatpush2.msra.mxu0 %v546_v20  ;;  %1211 = vmatpush2.msra.mxu1 %v548_v21  ;;  %v1292_v21 = vld [vmem:[%s3382_s3 + $0xf8] sm:$0xff] }
 0x120   :  { %1141 = vmatprep.subr.mxu0 %v531_v22  ;;  %1212 = vmatprep.subr.mxu1 %v533_v23  ;;  %v1324_v22 = vld [vmem:[%s3382_s3 + $0x1f8] sm:$0xff]  ;;  %v601_v23 = vrot.slane %v2539_v11, %v600_v16 }
 0x121   :  { %1142 = vmatpush2.msra.mxu0 %v530_v24  ;;  %1213 = vmatpush2.msra.mxu1 %v532_v25  ;;  %v1276_v24 = vld [vmem:[%s3382_s3 + $0x78] sm:$0xff] }
 0x122   :  { %1143 = vmatprep.subr.mxu0 %v515_v26  ;;  %1214 = vmatprep.subr.mxu1 %v517_v27  ;;  %v1308_v25 = vld [vmem:[%s3382_s3 + $0x178] sm:$0xff] }
 0x123   :  { %1144 = vmatpush2.msra.mxu0 %v514_v28  ;;  %1215 = vmatpush2.msra.mxu1 %v516_v29  ;;  %v1291_v28 = vld [vmem:[%s3382_s3 + $0xf0] sm:$0xff] }
 0x124   :  { %1145 = vmatprep.subr.mxu0 %v499_v30  ;;  %1216 = vmatprep.subr.mxu1 %v501_v31  ;;  %v1275_v29 = vld [vmem:[%s3382_s3 + $0x70] sm:$0xff]  ;;  %v1290_v31 = vld [vmem:[%s3382_s3 + $0xe8] sm:$0xff] }
 0x125   :  { %1146 = vmatpush2.msra.mxu0 %v498_v32  ;;  %1217 = vmatpush2.msra.mxu1 %v500_v33  ;;  %v1307_v30 = vld [vmem:[%s3382_s3 + $0x170] sm:$0xff]  ;;  %v1322_v32 = vld [vmem:[%s3382_s3 + $0x1e8] sm:$0xff] }
 0x126   :  { %1147 = vmatprep.subr.mxu0 %v483_v34  ;;  %1218 = vmatprep.subr.mxu1 %v485_v35  ;;  %v1274_v33 = vld [vmem:[%s3382_s3 + $0x68] sm:$0xff] }
 0x127   :  { %1148 = vmatpush2.msra.mxu0 %v482_v36  ;;  %1219 = vmatpush2.msra.mxu1 %v484_v37  ;;  %v1306_v34 = vld [vmem:[%s3382_s3 + $0x168] sm:$0xff]  ;;  %v1289_v36 = vld [vmem:[%s3382_s3 + $0xe0] sm:$0xff] }
 0x128   :  { %1149 = vmatprep.subr.mxu0 %v467_v38  ;;  %1220 = vmatprep.subr.mxu1 %v469_v39  ;;  %v1321_v37 = vld [vmem:[%s3382_s3 + $0x1e0] sm:$0xff] }
 0x129   :  { %1150 = vmatpush2.msra.mxu0 %v466_v40  ;;  %1221 = vmatpush2.msra.mxu1 %v468_v41  ;;  %v1273_v38 = vld [vmem:[%s3382_s3 + $0x60] sm:$0xff]  ;;  %v1288_v41 = vld [vmem:[%s3382_s3 + $0xd8] sm:$0xff] }
 0x12a   :  { %1151 = vmatprep.subr.mxu0 %v451_v42  ;;  %1222 = vmatprep.subr.mxu1 %v453_v43  ;;  %v1305_v40 = vld [vmem:[%s3382_s3 + $0x160] sm:$0xff]  ;;  %v1320_v42 = vld [vmem:[%s3382_s3 + $0x1d8] sm:$0xff] }
 0x12b   :  { %1152 = vmatpush2.msra.mxu0 %v450_v44  ;;  %1223 = vmatpush2.msra.mxu1 %v452_v45  ;;  %v1272_v43 = vld [vmem:[%s3382_s3 + $0x58] sm:$0xff]  ;;  %v1287_v45 = vld [vmem:[%s3382_s3 + $0xd0] sm:$0xff] }
 0x12c   :  { %1153 = vmatprep.subr.mxu0 %v435_v46  ;;  %1224 = vmatprep.subr.mxu1 %v437_v47  ;;  %v1304_v44 = vld [vmem:[%s3382_s3 + $0x158] sm:$0xff]  ;;  %v1319_v46 = vld [vmem:[%s3382_s3 + $0x1d0] sm:$0xff] }
 0x12d   :  { %1154 = vmatpush2.msra.mxu0 %v434_v48  ;;  %1225 = vmatpush2.msra.mxu1 %v436_v49  ;;  %v1271_v47 = vld [vmem:[%s3382_s3 + $0x50] sm:$0xff]  ;;  %v1286_v49 = vld [vmem:[%s3382_s3 + $0xc8] sm:$0xff] }
 0x12e   :  { %1155 = vmatprep.subr.mxu0 %v419_v50  ;;  %1226 = vmatprep.subr.mxu1 %v421_v51  ;;  %v1303_v48 = vld [vmem:[%s3382_s3 + $0x150] sm:$0xff]  ;;  %v1318_v50 = vld [vmem:[%s3382_s3 + $0x1c8] sm:$0xff] }
 0x12f   :  { %1156 = vmatpush2.msra.mxu0 %v418_v53  ;;  %1227 = vmatpush2.msra.mxu1 %v420_v54  ;;  %v1270_v51 = vld [vmem:[%s3382_s3 + $0x48] sm:$0xff]  ;;  %v1285_v53 = vld [vmem:[%s3382_s3 + $0xc0] sm:$0xff] }
 0x130   :  { %1157 = vmatprep.subr.mxu0 %v403_v55  ;;  %1228 = vmatprep.subr.mxu1 %v405_v57  ;;  %v1317_v54 = vld [vmem:[%s3382_s3 + $0x1c0] sm:$0xff] }
 0x131   :  { %1158 = vmatpush2.msra.mxu0 %v402_v58  ;;  %1229 = vmatpush2.msra.mxu1 %v404_v59  ;;  %v1269_v55 = vld [vmem:[%s3382_s3 + $0x40] sm:$0xff]  ;;  %v1284_v58 = vld [vmem:[%s3382_s3 + $0xb8] sm:$0xff] }
 0x132   :  { %1159 = vmatprep.subr.mxu0 %v387_v60  ;;  %1230 = vmatprep.subr.mxu1 %v389_v61  ;;  %v1301_v57 = vld [vmem:[%s3382_s3 + $0x140] sm:$0xff]  ;;  %v1316_v59 = vld [vmem:[%s3382_s3 + $0x1b8] sm:$0xff] }
 0x133   :  { %1160 = vmatpush2.msra.mxu0 %v386_v0  ;;  %1231 = vmatpush2.msra.mxu1 %v388_v1  ;;  %v1268_v60 = vld [vmem:[%s3382_s3 + $0x38] sm:$0xff]  ;;  %v1283_v0 = vld [vmem:[%s3382_s3 + $0xb0] sm:$0xff] }
 0x134   :  { %1161 = vmatprep.subr.mxu0 %v371_v2  ;;  %1232 = vmatprep.subr.mxu1 %v373_v3  ;;  %v2541_v13 = vpop.f32.mrf.mxu0  ;;  %v1300_v61 = vld [vmem:[%s3382_s3 + $0x138] sm:$0xff]  ;;  %v1315_v1 = vld [vmem:[%s3382_s3 + $0x1b0] sm:$0xff] }
 0x135   :  { %1162 = vmatpush2.msra.mxu0 %v370_v4  ;;  %1233 = vmatpush2.msra.mxu1 %v372_v5  ;;  %v1267_v2 = vld [vmem:[%s3382_s3 + $0x30] sm:$0xff]  ;;  %v1282_v4 = vld [vmem:[%s3382_s3 + $0xa8] sm:$0xff] }
 0x136   :  { %1163 = vmatprep.subr.mxu0 %v355_v6  ;;  %1234 = vmatprep.subr.mxu1 %v357_v7  ;;  %v2544_v18 = vpop.f32.mrf.mxu1  ;;  %v745_v20 = vpop.f32.mrf.mxu0  ;;  %v1299_v3 = vld [vmem:[%s3382_s3 + $0x130] sm:$0xff]  ;;  %v1314_v5 = vld [vmem:[%s3382_s3 + $0x1a8] sm:$0xff]  ;;  %v588_v6 = vsub.s32 0, %v2536_v62  ;;  %v596_v7 = vsub.s32 2, %v2536_v62 }
 0x137   :  { %1164 = vmatpush2.msra.mxu0 %v354_v9  ;;  %1235 = vmatpush2.msra.mxu1 %v356_v10  ;;  %v746_v27 = vadd.f32 %v745_v20, %v593_v56  ;;  %v1266_v9 = vld [vmem:[%s3382_s3 + $0x28] sm:$0xff]  ;;  %v1280_v56 = vld [vmem:[%s3382_s3 + $0x98] sm:$0xff] }
 0x138   :  { %1165 = vmatprep.subr.mxu0 %v339_v14  ;;  %1236 = vmatprep.subr.mxu1 %v341_v15  ;;  %v816_v26 = vpop.f32.mrf.mxu1  ;;  %v1298_v10 = vld [vmem:[%s3382_s3 + $0x128] sm:$0xff]  ;;  %v1281_v14 = vld [vmem:[%s3382_s3 + $0xa0] sm:$0xff]  ;;  %v1312_v20 = vld [vmem:[%s3382_s3 + $0x198] sm:$0xff] }
 0x139   :  { %1166 = vmatpush2.msra.mxu0 %v338_v17  ;;  %1167 = vmatprep.mubr.f32.mxu0 %v2520_v63  ;;  %v1246_v35 = vmax.f32 %v746_v27, 0.0  ;;  %v1313_v15 = vld [vmem:[%s3382_s3 + $0x1a0] sm:$0xff]  ;;  %v1263_v27 = vld [vmem:[%s3382_s3 + $0x10] sm:$0xff] }
 0x13a   :  { %1237 = vmatpush2.msra.mxu1 %v340_v19  ;;  %1238 = vmatprep.mubr.f32.mxu1 %v2520_v63  ;;  %v1323_v63 = vld [vmem:[%s3382_s3 + $0x1f0] sm:$0xff]  ;;  %v1265_v17 = vld [vmem:[%s3382_s3 + $0x20] sm:$0xff] }
 0x13b   :  { %1168 = vmatmul.mubr.f32.vlgmr.msra.gmra.mxu0 %v2532_v12  ;;  %1239 = vmatmul.mubr.f32.vlgmr.msra.gmra.mxu1 %v2532_v12  ;;  %v817_v12 = vadd.f32 %v816_v26, %v601_v23  ;;  %v1297_v19 = vld [vmem:[%s3382_s3 + $0x120] sm:$0xff]  ;;  %v1264_v23 = vld [vmem:[%s3382_s3 + $0x18] sm:$0xff]  ;;  %v1311_v26 = vld [vmem:[%s3382_s3 + $0x190] sm:$0xff] }
 0x13c   :  { %2095 = vmatprep.subr.mxu0 %v1292_v21  ;;  %2130 = vmatprep.subr.mxu1 %v1324_v22  ;;  %v589_v21 = vrot.slane %v2539_v11, %v588_v6  ;;  %v597_v22 = vrot.slane %v2539_v11, %v596_v7 }
 0x13d   :  { %2096 = vmatpush3.msra.mxu0 %v1276_v24  ;;  %2131 = vmatpush3.msra.mxu1 %v1308_v25  ;;  %v1248_v39 = vmax.f32 %v817_v12, 0.0  ;;  %v1296_v24 = vld [vmem:[%s3382_s3 + $0x118] sm:$0xff]  ;;  %v1279_v25 = vld [vmem:[%s3382_s3 + $0x90] sm:$0xff] }
 0x13e   :  { %2097 = vmatprep.subr.mxu0 %v1291_v28  ;;  %2132 = vmatprep.subr.mxu1 %v1323_v63  ;;  %v1295_v28 = vld [vmem:[%s3382_s3 + $0x110] sm:$0xff]  ;;  %v1278_v63 = vld [vmem:[%s3382_s3 + $0x88] sm:$0xff]  ;;  %v815_v12 = vadd.f32 %v2544_v18, %v597_v22  ;;  %v1261_v18 = vld [vmem:[%s3382_s3] sm:$0xff] }
 0x13f   :  { %2098 = vmatpush3.msra.mxu0 %v1275_v29  ;;  %2133 = vmatpush3.msra.mxu1 %v1307_v30  ;;  %v1310_v29 = vld [vmem:[%s3382_s3 + $0x188] sm:$0xff]  ;;  %v744_v30 = vadd.f32 %v2541_v13, %v589_v21  ;;  %v1309_v13 = vld [vmem:[%s3382_s3 + $0x180] sm:$0xff]  ;;  %v1331_v21 = vld [vmem:[%s3382_s3 + $0x230] sm:$0xff] }
 0x140   :  { %2099 = vmatprep.subr.mxu0 %v1290_v31  ;;  %2134 = vmatprep.subr.mxu1 %v1322_v32  ;;  %v1262_v31 = vld [vmem:[%s3382_s3 + $0x8] sm:$0xff]  ;;  %v1363_v22 = vld [vmem:[%s3382_s3 + $0x330] sm:$0xff] }
 0x141   :  { %2100 = vmatpush3.msra.mxu0 %v1274_v33  ;;  %2135 = vmatpush3.msra.mxu1 %v1306_v34  ;;  %v1294_v32 = vld [vmem:[%s3382_s3 + $0x108] sm:$0xff]  ;;  %v1277_v33 = vld [vmem:[%s3382_s3 + $0x80] sm:$0xff] }
 0x142   :  { %2101 = vmatprep.subr.mxu0 %v1289_v36  ;;  %2136 = vmatprep.subr.mxu1 %v1321_v37  ;;  %v1293_v34 = vld [vmem:[%s3382_s3 + $0x100] sm:$0xff]  ;;  %v1247_v36 = vmax.f32 %v815_v12, 0.0  ;;  %v1356_v37 = vld [vmem:[%s3382_s3 + $0x2f8] sm:$0xff] }
 0x143   :  { %2102 = vmatpush3.msra.mxu0 %v1273_v38  ;;  %1588 = vmatprep.mubr.f32.mxu0 %v1246_v35  ;;  %v1245_v35 = vmax.f32 %v744_v30, 0.0  ;;  %v1388_v38 = vld [vmem:[%s3382_s3 + $0x3f8] sm:$0xff]  ;;  %v1329_v30 = vld [vmem:[%s3382_s3 + $0x220] sm:$0xff] }
 0x144   :  { %2137 = vmatpush3.msra.mxu1 %v1305_v40  ;;  %2103 = vmatprep.subr.mxu0 %v1288_v41  ;;  %v1372_v40 = vld [vmem:[%s3382_s3 + $0x378] sm:$0xff]  ;;  %v1355_v41 = vld [vmem:[%s3382_s3 + $0x2f0] sm:$0xff]  ;;  %v1361_v12 = vld [vmem:[%s3382_s3 + $0x320] sm:$0xff] }
 0x145   :  { %2138 = vmatprep.subr.mxu1 %v1320_v42  ;;  %1658 = vmatprep.mubr.f32.mxu1 %v1248_v39  ;;  %v1340_v39 = vld [vmem:[%s3382_s3 + $0x278] sm:$0xff]  ;;  %v1387_v42 = vld [vmem:[%s3382_s3 + $0x3f0] sm:$0xff] }
 0x146   :  { %2104 = vmatpush3.msra.mxu0 %v1272_v43  ;;  %2139 = vmatpush3.msra.mxu1 %v1304_v44  ;;  %v1339_v43 = vld [vmem:[%s3382_s3 + $0x270] sm:$0xff] }
 0x147   :  { %2105 = vmatprep.subr.mxu0 %v1287_v45  ;;  %2140 = vmatprep.subr.mxu1 %v1319_v46  ;;  %v1371_v44 = vld [vmem:[%s3382_s3 + $0x370] sm:$0xff]  ;;  %v1354_v45 = vld [vmem:[%s3382_s3 + $0x2e8] sm:$0xff] }
 0x148   :  { %2106 = vmatpush3.msra.mxu0 %v1271_v47  ;;  %2141 = vmatpush3.msra.mxu1 %v1303_v48  ;;  %v1386_v46 = vld [vmem:[%s3382_s3 + $0x3e8] sm:$0xff] }
 0x149   :  { %2107 = vmatprep.subr.mxu0 %v1286_v49  ;;  %2142 = vmatprep.subr.mxu1 %v1318_v50  ;;  %v1338_v47 = vld [vmem:[%s3382_s3 + $0x268] sm:$0xff]  ;;  %v1353_v49 = vld [vmem:[%s3382_s3 + $0x2e0] sm:$0xff] }
 0x14a   :  { %2108 = vmatpush3.msra.mxu0 %v1270_v51  ;;  %2143 = vmatpush3.msra.mxu1 %v1302_v52  ;;  %v1370_v48 = vld [vmem:[%s3382_s3 + $0x368] sm:$0xff]  ;;  %v1385_v50 = vld [vmem:[%s3382_s3 + $0x3e0] sm:$0xff] }
 0x14b   :  { %2109 = vmatprep.subr.mxu0 %v1285_v53  ;;  %2144 = vmatprep.subr.mxu1 %v1317_v54  ;;  %v1337_v51 = vld [vmem:[%s3382_s3 + $0x260] sm:$0xff]  ;;  %v1352_v53 = vld [vmem:[%s3382_s3 + $0x2d8] sm:$0xff] }
 0x14c   :  { %2110 = vmatpush3.msra.mxu0 %v1269_v55  ;;  %2145 = vmatpush3.msra.mxu1 %v1301_v57  ;;  %v1369_v52 = vld [vmem:[%s3382_s3 + $0x360] sm:$0xff]  ;;  %v1384_v54 = vld [vmem:[%s3382_s3 + $0x3d8] sm:$0xff] }
 0x14d   :  { %2111 = vmatprep.subr.mxu0 %v1284_v58  ;;  %2146 = vmatprep.subr.mxu1 %v1316_v59  ;;  %v1336_v55 = vld [vmem:[%s3382_s3 + $0x258] sm:$0xff]  ;;  %v1351_v58 = vld [vmem:[%s3382_s3 + $0x2d0] sm:$0xff] }
 0x14e   :  { %2112 = vmatpush3.msra.mxu0 %v1268_v60  ;;  %2147 = vmatpush3.msra.mxu1 %v1300_v61  ;;  %v1368_v57 = vld [vmem:[%s3382_s3 + $0x358] sm:$0xff]  ;;  %v1383_v59 = vld [vmem:[%s3382_s3 + $0x3d0] sm:$0xff] }
 0x14f   :  { %2113 = vmatprep.subr.mxu0 %v1283_v0  ;;  %2148 = vmatprep.subr.mxu1 %v1315_v1  ;;  %v1335_v60 = vld [vmem:[%s3382_s3 + $0x250] sm:$0xff]  ;;  %v1350_v0 = vld [vmem:[%s3382_s3 + $0x2c8] sm:$0xff] }
 0x150   :  { %2114 = vmatpush3.msra.mxu0 %v1267_v2  ;;  %2149 = vmatpush3.msra.mxu1 %v1299_v3  ;;  %v1367_v61 = vld [vmem:[%s3382_s3 + $0x350] sm:$0xff]  ;;  %v1382_v1 = vld [vmem:[%s3382_s3 + $0x3c8] sm:$0xff] }
 0x151   :  { %2115 = vmatprep.subr.mxu0 %v1282_v4  ;;  %2150 = vmatprep.subr.mxu1 %v1314_v5  ;;  %v1334_v2 = vld [vmem:[%s3382_s3 + $0x248] sm:$0xff]  ;;  %v1349_v4 = vld [vmem:[%s3382_s3 + $0x2c0] sm:$0xff] }
 0x152   :  { %2116 = vmatpush3.msra.mxu0 %v1266_v9  ;;  %2151 = vmatpush3.msra.mxu1 %v1298_v10  ;;  %v1366_v3 = vld [vmem:[%s3382_s3 + $0x348] sm:$0xff]  ;;  %v1381_v5 = vld [vmem:[%s3382_s3 + $0x3c0] sm:$0xff] }
 0x153   :  { %2117 = vmatprep.subr.mxu0 %v1281_v14  ;;  %2152 = vmatprep.subr.mxu1 %v1313_v15  ;;  %v1333_v9 = vld [vmem:[%s3382_s3 + $0x240] sm:$0xff]  ;;  %v1348_v14 = vld [vmem:[%s3382_s3 + $0x2b8] sm:$0xff] }
 0x154   :  { %2118 = vmatpush3.msra.mxu0 %v1265_v17  ;;  %2153 = vmatpush3.msra.mxu1 %v1297_v19  ;;  %v1365_v10 = vld [vmem:[%s3382_s3 + $0x340] sm:$0xff]  ;;  %v1380_v15 = vld [vmem:[%s3382_s3 + $0x3b8] sm:$0xff] }
 0x155   :  { %2119 = vmatprep.subr.mxu0 %v1280_v56  ;;  %2154 = vmatprep.subr.mxu1 %v1312_v20  ;;  %v1332_v17 = vld [vmem:[%s3382_s3 + $0x238] sm:$0xff]  ;;  %v1347_v56 = vld [vmem:[%s3382_s3 + $0x2b0] sm:$0xff] }
 0x156   :  { %2120 = vmatpush3.msra.mxu0 %v1264_v23  ;;  %2155 = vmatpush3.msra.mxu1 %v1296_v24  ;;  %v1364_v19 = vld [vmem:[%s3382_s3 + $0x338] sm:$0xff]  ;;  %v1379_v20 = vld [vmem:[%s3382_s3 + $0x3b0] sm:$0xff]  ;;  %v1346_v23 = vld [vmem:[%s3382_s3 + $0x2a8] sm:$0xff] }
 0x157   :  { %2121 = vmatprep.subr.mxu0 %v1279_v25  ;;  %2156 = vmatprep.subr.mxu1 %v1311_v26  ;;  %v1378_v24 = vld [vmem:[%s3382_s3 + $0x3a8] sm:$0xff] }
 0x158   :  { %2122 = vmatpush3.msra.mxu0 %v1263_v27  ;;  %2157 = vmatpush3.msra.mxu1 %v1295_v28  ;;  %v1330_v25 = vld [vmem:[%s3382_s3 + $0x228] sm:$0xff]  ;;  %v612_v27 = vsub.s32 6, %v2536_v62  ;;  %v1345_v28 = vld [vmem:[%s3382_s3 + $0x2a0] sm:$0xff] }
 0x159   :  { %2123 = vmatprep.subr.mxu0 %v1278_v63  ;;  %2158 = vmatprep.subr.mxu1 %v1310_v29  ;;  %v1362_v26 = vld [vmem:[%s3382_s3 + $0x328] sm:$0xff]  ;;  %v1377_v63 = vld [vmem:[%s3382_s3 + $0x3a0] sm:$0xff]  ;;  %v604_v29 = vsub.s32 4, %v2536_v62 }
 0x15a   :  { %2124 = vmatpush3.msra.mxu0 %v1262_v31  ;;  %2159 = vmatpush3.msra.mxu1 %v1294_v32  ;;  %v608_v31 = vsub.s32 5, %v2536_v62  ;;  %v616_v32 = vsub.s32 7, %v2536_v62 }
 0x15b   :  { %2125 = vmatprep.subr.mxu0 %v1277_v33  ;;  %2160 = vmatprep.subr.mxu1 %v1309_v13  ;;  %v1344_v33 = vld [vmem:[%s3382_s3 + $0x298] sm:$0xff] }
 0x15c   :  { %2126 = vmatpush3.msra.mxu0 %v1261_v18  ;;  %2161 = vmatpush3.msra.mxu1 %v1293_v34  ;;  %v1376_v13 = vld [vmem:[%s3382_s3 + $0x398] sm:$0xff]  ;;  %v613_v18 = vrot.slane %v2539_v11, %v612_v27 }
 0x15d   :  { %1589 = vmatmul.mubr.f32.vlgmr.msra.gmra.mxu0 %v1245_v35  ;;  %1659 = vmatmul.mubr.f32.vlgmr.msra.gmra.mxu1 %v1247_v36  ;;  %v1328_v34 = vld [vmem:[%s3382_s3 + $0x218] sm:$0xff]  ;;  %v605_v36 = vrot.slane %v2539_v11, %v604_v29 }
 0x15e   :  { %2165 = vmatprep.subr.mxu0 %v1356_v37  ;;  %2200 = vmatprep.subr.mxu1 %v1388_v38  ;;  %v1360_v35 = vld [vmem:[%s3382_s3 + $0x318] sm:$0xff]  ;;  %v1343_v37 = vld [vmem:[%s3382_s3 + $0x290] sm:$0xff] }
 0x15f   :  { %2166 = vmatpush3.msra.mxu0 %v1340_v39  ;;  %2201 = vmatpush3.msra.mxu1 %v1372_v40  ;;  %v1375_v38 = vld [vmem:[%s3382_s3 + $0x390] sm:$0xff]  ;;  %v609_v39 = vrot.slane %v2539_v11, %v608_v31  ;;  %v617_v40 = vrot.slane %v2539_v11, %v616_v32  ;;  %v1374_v11 = vld [vmem:[%s3382_s3 + $0x388] sm:$0xff] }
 0x160   :  { %2167 = vmatprep.subr.mxu0 %v1355_v41  ;;  %2202 = vmatprep.subr.mxu1 %v1387_v42  ;;  %v1327_v41 = vld [vmem:[%s3382_s3 + $0x210] sm:$0xff] }
 0x161   :  { %2168 = vmatpush3.msra.mxu0 %v1339_v43  ;;  %2203 = vmatpush3.msra.mxu1 %v1371_v44  ;;  %v1359_v42 = vld [vmem:[%s3382_s3 + $0x310] sm:$0xff] }
 0x162   :  { %2169 = vmatprep.subr.mxu0 %v1354_v45  ;;  %2204 = vmatprep.subr.mxu1 %v1386_v46  ;;  %v1342_v45 = vld [vmem:[%s3382_s3 + $0x288] sm:$0xff] }
 0x163   :  { %2170 = vmatpush3.msra.mxu0 %v1338_v47  ;;  %2205 = vmatpush3.msra.mxu1 %v1370_v48  ;;  %v1326_v47 = vld [vmem:[%s3382_s3 + $0x208] sm:$0xff] }
 0x164   :  { %2171 = vmatprep.subr.mxu0 %v1353_v49  ;;  %2206 = vmatprep.subr.mxu1 %v1385_v50  ;;  %v1358_v48 = vld [vmem:[%s3382_s3 + $0x308] sm:$0xff] }
 0x165   :  { %2172 = vmatpush3.msra.mxu0 %v1337_v51  ;;  %2207 = vmatpush3.msra.mxu1 %v1369_v52  ;;  %v1341_v52 = vld [vmem:[%s3382_s3 + $0x280] sm:$0xff] }
 0x166   :  { %2173 = vmatprep.subr.mxu0 %v1352_v53  ;;  %2208 = vmatprep.subr.mxu1 %v1384_v54  ;;  %v1373_v53 = vld [vmem:[%s3382_s3 + $0x380] sm:$0xff] }
 0x167   :  { %2174 = vmatpush3.msra.mxu0 %v1336_v55  ;;  %2209 = vmatpush3.msra.mxu1 %v1368_v57  ;;  %v1325_v57 = vld [vmem:[%s3382_s3 + $0x200] sm:$0xff] }
 0x168   :  { %2175 = vmatprep.subr.mxu0 %v1351_v58  ;;  %2210 = vmatprep.subr.mxu1 %v1383_v59  ;;  %v1357_v58 = vld [vmem:[%s3382_s3 + $0x300] sm:$0xff] }
 0x169   :  { %2176 = vmatpush3.msra.mxu0 %v1335_v60  ;;  %2211 = vmatpush3.msra.mxu1 %v1367_v61 }
 0x16a   :  { %2177 = vmatprep.subr.mxu0 %v1350_v0  ;;  %2212 = vmatprep.subr.mxu1 %v1382_v1  ;;  %v1420_v1 = vld [vmem:[%s3382_s3 + $0x4f8] sm:$0xff] }
 0x16b   :  { %2178 = vmatpush3.msra.mxu0 %v1334_v2  ;;  %2213 = vmatpush3.msra.mxu1 %v1366_v3  ;;  %v1452_v2 = vld [vmem:[%s3382_s3 + $0x5f8] sm:$0xff] }
 0x16c   :  { %2179 = vmatprep.subr.mxu0 %v1349_v4  ;;  %2214 = vmatprep.subr.mxu1 %v1381_v5  ;;  %v1404_v3 = vld [vmem:[%s3382_s3 + $0x478] sm:$0xff]  ;;  %v1419_v5 = vld [vmem:[%s3382_s3 + $0x4f0] sm:$0xff] }
 0x16d   :  { %2180 = vmatpush3.msra.mxu0 %v1333_v9  ;;  %2215 = vmatpush3.msra.mxu1 %v1365_v10  ;;  %v1436_v4 = vld [vmem:[%s3382_s3 + $0x578] sm:$0xff]  ;;  %v1451_v9 = vld [vmem:[%s3382_s3 + $0x5f0] sm:$0xff] }
 0x16e   :  { %2181 = vmatprep.subr.mxu0 %v1348_v14  ;;  %2216 = vmatprep.subr.mxu1 %v1380_v15  ;;  %v1403_v10 = vld [vmem:[%s3382_s3 + $0x470] sm:$0xff]  ;;  %v1418_v15 = vld [vmem:[%s3382_s3 + $0x4e8] sm:$0xff] }
 0x16f   :  { %2182 = vmatpush3.msra.mxu0 %v1332_v17  ;;  %2217 = vmatpush3.msra.mxu1 %v1364_v19  ;;  %v1435_v14 = vld [vmem:[%s3382_s3 + $0x570] sm:$0xff]  ;;  %v1450_v17 = vld [vmem:[%s3382_s3 + $0x5e8] sm:$0xff] }
 0x170   :  { %2183 = vmatprep.subr.mxu0 %v1347_v56  ;;  %2218 = vmatprep.subr.mxu1 %v1379_v20  ;;  %v1402_v19 = vld [vmem:[%s3382_s3 + $0x468] sm:$0xff]  ;;  %v1417_v20 = vld [vmem:[%s3382_s3 + $0x4e0] sm:$0xff] }
 0x171   :  { %2184 = vmatpush3.msra.mxu0 %v1331_v21  ;;  %2219 = vmatpush3.msra.mxu1 %v1363_v22  ;;  %v1434_v56 = vld [vmem:[%s3382_s3 + $0x568] sm:$0xff]  ;;  %v1449_v21 = vld [vmem:[%s3382_s3 + $0x5e0] sm:$0xff] }
 0x172   :  { %2185 = vmatprep.subr.mxu0 %v1346_v23  ;;  %2220 = vmatprep.subr.mxu1 %v1378_v24  ;;  %v1401_v22 = vld [vmem:[%s3382_s3 + $0x460] sm:$0xff]  ;;  %v1416_v24 = vld [vmem:[%s3382_s3 + $0x4d8] sm:$0xff] }
 0x173   :  { %2186 = vmatpush3.msra.mxu0 %v1330_v25  ;;  %2221 = vmatpush3.msra.mxu1 %v1362_v26  ;;  %v1433_v23 = vld [vmem:[%s3382_s3 + $0x560] sm:$0xff]  ;;  %v1448_v25 = vld [vmem:[%s3382_s3 + $0x5d8] sm:$0xff] }
 0x174   :  { %2187 = vmatprep.subr.mxu0 %v1345_v28  ;;  %2222 = vmatprep.subr.mxu1 %v1377_v63  ;;  %v1400_v26 = vld [vmem:[%s3382_s3 + $0x458] sm:$0xff]  ;;  %v1415_v63 = vld [vmem:[%s3382_s3 + $0x4d0] sm:$0xff] }
 0x175   :  { %2188 = vmatpush3.msra.mxu0 %v1329_v30  ;;  %2223 = vmatpush3.msra.mxu1 %v1361_v12  ;;  %v1432_v28 = vld [vmem:[%s3382_s3 + $0x558] sm:$0xff]  ;;  %v1447_v30 = vld [vmem:[%s3382_s3 + $0x5d0] sm:$0xff] }
 0x176   :  { %2189 = vmatprep.subr.mxu0 %v1344_v33  ;;  %2224 = vmatprep.subr.mxu1 %v1376_v13  ;;  %v1399_v12 = vld [vmem:[%s3382_s3 + $0x450] sm:$0xff]  ;;  %v1414_v13 = vld [vmem:[%s3382_s3 + $0x4c8] sm:$0xff] }
 0x177   :  { %v885_v43 = vpop.f32.mrf.mxu0  ;;  %v956_v44 = vpop.f32.mrf.mxu1  ;;  %2190 = vmatpush3.msra.mxu0 %v1328_v34  ;;  %2225 = vmatpush3.msra.mxu1 %v1360_v35  ;;  %v1431_v33 = vld [vmem:[%s3382_s3 + $0x550] sm:$0xff]  ;;  %v1398_v34 = vld [vmem:[%s3382_s3 + $0x448] sm:$0xff] }
 0x178   :  { %v957_v46 = vadd.f32 %v956_v44, %v613_v18  ;;  %2191 = vmatprep.subr.mxu0 %v1343_v37  ;;  %2226 = vmatprep.subr.mxu1 %v1375_v38  ;;  %v886_v49 = vadd.f32 %v885_v43, %v605_v36  ;;  %v1446_v18 = vld [vmem:[%s3382_s3 + $0x5c8] sm:$0xff]  ;;  %v1413_v36 = vld [vmem:[%s3382_s3 + $0x4c0] sm:$0xff]  ;;  %v1428_v43 = vld [vmem:[%s3382_s3 + $0x538] sm:$0xff] }
 0x179   :  { %v887_v50 = vpop.f32.mrf.mxu0  ;;  %v958_v51 = vpop.f32.mrf.mxu1  ;;  %2192 = vmatpush3.msra.mxu0 %v1327_v41  ;;  %2227 = vmatpush3.msra.mxu1 %v1359_v42  ;;  %v1430_v35 = vld [vmem:[%s3382_s3 + $0x548] sm:$0xff]  ;;  %v1445_v37 = vld [vmem:[%s3382_s3 + $0x5c0] sm:$0xff]  ;;  %v1444_v41 = vld [vmem:[%s3382_s3 + $0x5b8] sm:$0xff] }
 0x17a   :  { %v888_v54 = vadd.f32 %v887_v50, %v609_v39  ;;  %v959_v55 = vadd.f32 %v958_v51, %v617_v40  ;;  %2193 = vmatprep.subr.mxu0 %v1342_v45  ;;  %2228 = vmatprep.subr.mxu1 %v1374_v11  ;;  %v1251_v59 = vmax.f32 %v957_v46, 0.0  ;;  %v1249_v0 = vmax.f32 %v886_v49, 0.0  ;;  %v1397_v38 = vld [vmem:[%s3382_s3 + $0x440] sm:$0xff]  ;;  %v1412_v40 = vld [vmem:[%s3382_s3 + $0x4b8] sm:$0xff]  ;;  %v1411_v44 = vld [vmem:[%s3382_s3 + $0x4b0] sm:$0xff] }
 0x17b   :  { %2194 = vmatpush3.msra.mxu0 %v1326_v47  ;;  %2229 = vmatpush3.msra.mxu1 %v1358_v48  ;;  %v1429_v39 = vld [vmem:[%s3382_s3 + $0x540] sm:$0xff]  ;;  %v1396_v42 = vld [vmem:[%s3382_s3 + $0x438] sm:$0xff]  ;;  %v1443_v45 = vld [vmem:[%s3382_s3 + $0x5b0] sm:$0xff] }
 0x17c   :  { %v1250_v60 = vmax.f32 %v888_v54, 0.0  ;;  %v1252_v61 = vmax.f32 %v959_v55, 0.0  ;;  %2195 = vmatprep.subr.mxu0 %v1341_v52  ;;  %2230 = vmatprep.subr.mxu1 %v1373_v53  ;;  %v1395_v11 = vld [vmem:[%s3382_s3 + $0x430] sm:$0xff]  ;;  %v1410_v47 = vld [vmem:[%s3382_s3 + $0x4a8] sm:$0xff]  ;;  %v1409_v51 = vld [vmem:[%s3382_s3 + $0x4a0] sm:$0xff] }
 0x17d   :  { %2196 = vmatpush3.msra.mxu0 %v1325_v57  ;;  %2231 = vmatpush3.msra.mxu1 %v1357_v58  ;;  %v1427_v46 = vld [vmem:[%s3382_s3 + $0x530] sm:$0xff]  ;;  %v1442_v48 = vld [vmem:[%s3382_s3 + $0x5a8] sm:$0xff]  ;;  %v1441_v52 = vld [vmem:[%s3382_s3 + $0x5a0] sm:$0xff] }
 0x17e   :  { %1728 = vmatprep.mubr.f32.mxu0 %v1250_v60  ;;  %1798 = vmatprep.mubr.f32.mxu1 %v1252_v61  ;;  %v1394_v49 = vld [vmem:[%s3382_s3 + $0x428] sm:$0xff]  ;;  %v1393_v53 = vld [vmem:[%s3382_s3 + $0x420] sm:$0xff]  ;;  %v1408_v55 = vld [vmem:[%s3382_s3 + $0x498] sm:$0xff] }
 0x17f   :  { %1729 = vmatmul.mubr.f32.vlgmr.msra.gmra.mxu0 %v1249_v0  ;;  %1799 = vmatmul.mubr.f32.vlgmr.msra.gmra.mxu1 %v1251_v59  ;;  %v1426_v50 = vld [vmem:[%s3382_s3 + $0x528] sm:$0xff]  ;;  %v1425_v54 = vld [vmem:[%s3382_s3 + $0x520] sm:$0xff]  ;;  %v1440_v57 = vld [vmem:[%s3382_s3 + $0x598] sm:$0xff] }
 0x180   :  { %2235 = vmatprep.subr.mxu0 %v1420_v1  ;;  %2270 = vmatprep.subr.mxu1 %v1452_v2  ;;  %v1392_v58 = vld [vmem:[%s3382_s3 + $0x418] sm:$0xff]  ;;  %v1407_v60 = vld [vmem:[%s3382_s3 + $0x490] sm:$0xff]  ;;  %v1406_v2 = vld [vmem:[%s3382_s3 + $0x488] sm:$0xff] }
 0x181   :  { %2236 = vmatpush3.msra.mxu0 %v1404_v3  ;;  %2271 = vmatpush3.msra.mxu1 %v1436_v4  ;;  %v1424_v59 = vld [vmem:[%s3382_s3 + $0x518] sm:$0xff]  ;;  %v1439_v61 = vld [vmem:[%s3382_s3 + $0x590] sm:$0xff]  ;;  %v1438_v3 = vld [vmem:[%s3382_s3 + $0x588] sm:$0xff] }
 0x182   :  { %2237 = vmatprep.subr.mxu0 %v1419_v5  ;;  %2272 = vmatprep.subr.mxu1 %v1451_v9  ;;  %v1391_v0 = vld [vmem:[%s3382_s3 + $0x410] sm:$0xff]  ;;  %v1390_v4 = vld [vmem:[%s3382_s3 + $0x408] sm:$0xff]  ;;  %v1405_v9 = vld [vmem:[%s3382_s3 + $0x480] sm:$0xff] }
 0x183   :  { %2238 = vmatpush3.msra.mxu0 %v1403_v10  ;;  %2273 = vmatpush3.msra.mxu1 %v1435_v14  ;;  %v1423_v1 = vld [vmem:[%s3382_s3 + $0x510] sm:$0xff]  ;;  %v1422_v5 = vld [vmem:[%s3382_s3 + $0x508] sm:$0xff]  ;;  %v1437_v10 = vld [vmem:[%s3382_s3 + $0x580] sm:$0xff] }
 0x184   :  { %2239 = vmatprep.subr.mxu0 %v1418_v15  ;;  %2274 = vmatprep.subr.mxu1 %v1450_v17  ;;  %v1389_v14 = vld [vmem:[%s3382_s3 + $0x400] sm:$0xff]  ;;  %v1484_v17 = vld [vmem:[%s3382_s3 + $0x6f8] sm:$0xff] }
 0x185   :  { %2240 = vmatpush3.msra.mxu0 %v1402_v19  ;;  %2275 = vmatpush3.msra.mxu1 %v1434_v56  ;;  %v1421_v15 = vld [vmem:[%s3382_s3 + $0x500] sm:$0xff]  ;;  %v1516_v19 = vld [vmem:[%s3382_s3 + $0x7f8] sm:$0xff]  ;;  %v3164_v56 = vld [vmem:[#allocation6 + $0x8] sm:$0xff] }
 0x186   :  { %2241 = vmatprep.subr.mxu0 %v1417_v20  ;;  %2276 = vmatprep.subr.mxu1 %v1449_v21  ;;  %v629_v20 = vrot.slane %v3164_v56, %v596_v7  ;;  %v621_v21 = vrot.slane %v3164_v56, %v588_v6 }
 0x187   :  { %2242 = vmatpush3.msra.mxu0 %v1401_v22  ;;  %2277 = vmatpush3.msra.mxu1 %v1433_v23  ;;  %v625_v22 = vrot.slane %v3164_v56, %v592_v8  ;;  %v633_v23 = vrot.slane %v3164_v56, %v600_v16  ;;  %v1468_v8 = vld [vmem:[%s3382_s3 + $0x678] sm:$0xff] }
 0x188   :  { %2243 = vmatprep.subr.mxu0 %v1416_v24  ;;  %2278 = vmatprep.subr.mxu1 %v1448_v25  ;;  %v1500_v16 = vld [vmem:[%s3382_s3 + $0x778] sm:$0xff] }
 0x189   :  { %2244 = vmatpush3.msra.mxu0 %v1400_v26  ;;  %2279 = vmatpush3.msra.mxu1 %v1432_v28 }
 0x18a   :  { %2245 = vmatprep.subr.mxu0 %v1415_v63  ;;  %2280 = vmatprep.subr.mxu1 %v1447_v30 }
 0x18b   :  { %2246 = vmatpush3.msra.mxu0 %v1399_v12  ;;  %2281 = vmatpush3.msra.mxu1 %v1431_v33 }
 0x18c   :  { %2247 = vmatprep.subr.mxu0 %v1414_v13  ;;  %2282 = vmatprep.subr.mxu1 %v1446_v18 }
 0x18d   :  { %2248 = vmatpush3.msra.mxu0 %v1398_v34  ;;  %2283 = vmatpush3.msra.mxu1 %v1430_v35  ;;  %v1483_v34 = vld [vmem:[%s3382_s3 + $0x6f0] sm:$0xff] }
 0x18e   :  { %2249 = vmatprep.subr.mxu0 %v1413_v36  ;;  %2284 = vmatprep.subr.mxu1 %v1445_v37  ;;  %v1515_v35 = vld [vmem:[%s3382_s3 + $0x7f0] sm:$0xff] }
 0x18f   :  { %2250 = vmatpush3.msra.mxu0 %v1397_v38  ;;  %2285 = vmatpush3.msra.mxu1 %v1429_v39  ;;  %v1467_v36 = vld [vmem:[%s3382_s3 + $0x670] sm:$0xff]  ;;  %v1482_v38 = vld [vmem:[%s3382_s3 + $0x6e8] sm:$0xff] }
 0x190   :  { %2251 = vmatprep.subr.mxu0 %v1412_v40  ;;  %2286 = vmatprep.subr.mxu1 %v1444_v41  ;;  %v1499_v37 = vld [vmem:[%s3382_s3 + $0x770] sm:$0xff]  ;;  %v1514_v39 = vld [vmem:[%s3382_s3 + $0x7e8] sm:$0xff] }
 0x191   :  { %2252 = vmatpush3.msra.mxu0 %v1396_v42  ;;  %2287 = vmatpush3.msra.mxu1 %v1428_v43  ;;  %v1466_v40 = vld [vmem:[%s3382_s3 + $0x668] sm:$0xff]  ;;  %v1481_v42 = vld [vmem:[%s3382_s3 + $0x6e0] sm:$0xff] }
 0x192   :  { %2253 = vmatprep.subr.mxu0 %v1411_v44  ;;  %2288 = vmatprep.subr.mxu1 %v1443_v45  ;;  %v1498_v41 = vld [vmem:[%s3382_s3 + $0x768] sm:$0xff]  ;;  %v1513_v43 = vld [vmem:[%s3382_s3 + $0x7e0] sm:$0xff] }
 0x193   :  { %2254 = vmatpush3.msra.mxu0 %v1395_v11  ;;  %2289 = vmatpush3.msra.mxu1 %v1427_v46  ;;  %v1465_v44 = vld [vmem:[%s3382_s3 + $0x660] sm:$0xff]  ;;  %v1480_v11 = vld [vmem:[%s3382_s3 + $0x6d8] sm:$0xff] }
 0x194   :  { %2255 = vmatprep.subr.mxu0 %v1410_v47  ;;  %2290 = vmatprep.subr.mxu1 %v1442_v48  ;;  %v1497_v45 = vld [vmem:[%s3382_s3 + $0x760] sm:$0xff]  ;;  %v1512_v46 = vld [vmem:[%s3382_s3 + $0x7d8] sm:$0xff] }
 0x195   :  { %2256 = vmatpush3.msra.mxu0 %v1394_v49  ;;  %2291 = vmatpush3.msra.mxu1 %v1426_v50  ;;  %v1464_v47 = vld [vmem:[%s3382_s3 + $0x658] sm:$0xff]  ;;  %v1479_v49 = vld [vmem:[%s3382_s3 + $0x6d0] sm:$0xff] }
 0x196   :  { %2257 = vmatprep.subr.mxu0 %v1409_v51  ;;  %2292 = vmatprep.subr.mxu1 %v1441_v52  ;;  %v1496_v48 = vld [vmem:[%s3382_s3 + $0x758] sm:$0xff]  ;;  %v1511_v50 = vld [vmem:[%s3382_s3 + $0x7d0] sm:$0xff] }
 0x197   :  { %2258 = vmatpush3.msra.mxu0 %v1393_v53  ;;  %2293 = vmatpush3.msra.mxu1 %v1425_v54  ;;  %v1463_v51 = vld [vmem:[%s3382_s3 + $0x650] sm:$0xff]  ;;  %v1478_v53 = vld [vmem:[%s3382_s3 + $0x6c8] sm:$0xff] }
 0x198   :  { %2259 = vmatprep.subr.mxu0 %v1408_v55  ;;  %2294 = vmatprep.subr.mxu1 %v1440_v57  ;;  %v1495_v52 = vld [vmem:[%s3382_s3 + $0x750] sm:$0xff]  ;;  %v1510_v54 = vld [vmem:[%s3382_s3 + $0x7c8] sm:$0xff] }
 0x199   :  { %2260 = vmatpush3.msra.mxu0 %v1392_v58  ;;  %2295 = vmatpush3.msra.mxu1 %v1424_v59  ;;  %v1462_v55 = vld [vmem:[%s3382_s3 + $0x648] sm:$0xff]  ;;  %v1477_v58 = vld [vmem:[%s3382_s3 + $0x6c0] sm:$0xff] }
 0x19a   :  { %2261 = vmatprep.subr.mxu0 %v1407_v60  ;;  %2296 = vmatprep.subr.mxu1 %v1439_v61  ;;  %v1494_v57 = vld [vmem:[%s3382_s3 + $0x748] sm:$0xff]  ;;  %v1509_v59 = vld [vmem:[%s3382_s3 + $0x7c0] sm:$0xff] }
 0x19b   :  { %2262 = vmatpush3.msra.mxu0 %v1391_v0  ;;  %2297 = vmatpush3.msra.mxu1 %v1423_v1  ;;  %v1461_v60 = vld [vmem:[%s3382_s3 + $0x640] sm:$0xff]  ;;  %v1476_v0 = vld [vmem:[%s3382_s3 + $0x6b8] sm:$0xff] }
 0x19c   :  { %2263 = vmatprep.subr.mxu0 %v1406_v2  ;;  %2298 = vmatprep.subr.mxu1 %v1438_v3  ;;  %v1493_v61 = vld [vmem:[%s3382_s3 + $0x740] sm:$0xff]  ;;  %v1508_v1 = vld [vmem:[%s3382_s3 + $0x7b8] sm:$0xff] }
 0x19d   :  { %2264 = vmatpush3.msra.mxu0 %v1390_v4  ;;  %2299 = vmatpush3.msra.mxu1 %v1422_v5  ;;  %v1460_v2 = vld [vmem:[%s3382_s3 + $0x638] sm:$0xff]  ;;  %v1475_v4 = vld [vmem:[%s3382_s3 + $0x6b0] sm:$0xff] }
 0x19e   :  { %2265 = vmatprep.subr.mxu0 %v1405_v9  ;;  %2300 = vmatprep.subr.mxu1 %v1437_v10  ;;  %v1492_v3 = vld [vmem:[%s3382_s3 + $0x738] sm:$0xff]  ;;  %v1507_v5 = vld [vmem:[%s3382_s3 + $0x7b0] sm:$0xff] }
 0x19f   :  { %2266 = vmatpush3.msra.mxu0 %v1389_v14  ;;  %2301 = vmatpush3.msra.mxu1 %v1421_v15  ;;  %v1459_v9 = vld [vmem:[%s3382_s3 + $0x630] sm:$0xff]  ;;  %v1474_v14 = vld [vmem:[%s3382_s3 + $0x6a8] sm:$0xff] }
 0x1a0   :  { %2305 = vmatprep.subr.mxu0 %v1484_v17  ;;  %2340 = vmatprep.subr.mxu1 %v1516_v19  ;;  %v1491_v10 = vld [vmem:[%s3382_s3 + $0x730] sm:$0xff]  ;;  %v1506_v15 = vld [vmem:[%s3382_s3 + $0x7a8] sm:$0xff] }
 0x1a1   :  { %v1458_v17 = vld [vmem:[%s3382_s3 + $0x628] sm:$0xff] }
 0x1a2   :  { %v1490_v19 = vld [vmem:[%s3382_s3 + $0x728] sm:$0xff] }
 0x1b9   :  { %v1027_v24 = vpop.f32.mrf.mxu0  ;;  %v1098_v25 = vpop.f32.mrf.mxu1 }
 0x1ba   :  { %v1099_v26 = vadd.f32 %v1098_v25, %v629_v20  ;;  %v1028_v28 = vadd.f32 %v1027_v24, %v621_v21  ;;  %v1473_v20 = vld [vmem:[%s3382_s3 + $0x6a0] sm:$0xff]  ;;  %v1472_v24 = vld [vmem:[%s3382_s3 + $0x698] sm:$0xff] }
 0x1bb   :  { %v1029_v63 = vpop.f32.mrf.mxu0  ;;  %v1100_v30 = vpop.f32.mrf.mxu1  ;;  %v1505_v21 = vld [vmem:[%s3382_s3 + $0x7a0] sm:$0xff]  ;;  %v1504_v25 = vld [vmem:[%s3382_s3 + $0x798] sm:$0xff] }
 0x1bc   :  { %v1030_v12 = vadd.f32 %v1029_v63, %v625_v22  ;;  %v1101_v7 = vadd.f32 %v1100_v30, %v633_v23  ;;  %v1255_v33 = vmax.f32 %v1099_v26, 0.0  ;;  %v1253_v6 = vmax.f32 %v1028_v28, 0.0  ;;  %v1457_v22 = vld [vmem:[%s3382_s3 + $0x620] sm:$0xff]  ;;  %v1456_v26 = vld [vmem:[%s3382_s3 + $0x618] sm:$0xff]  ;;  %v1471_v63 = vld [vmem:[%s3382_s3 + $0x690] sm:$0xff] }
 0x1bd   :  { %v1489_v23 = vld [vmem:[%s3382_s3 + $0x720] sm:$0xff]  ;;  %v1488_v28 = vld [vmem:[%s3382_s3 + $0x718] sm:$0xff]  ;;  %v1503_v30 = vld [vmem:[%s3382_s3 + $0x790] sm:$0xff] }
 0x1be   :  { %v1254_v13 = vmax.f32 %v1030_v12, 0.0  ;;  %v1256_v18 = vmax.f32 %v1101_v7, 0.0  ;;  %v1455_v12 = vld [vmem:[%s3382_s3 + $0x610] sm:$0xff] }
 0x1bf   :  { %v1487_v7 = vld [vmem:[%s3382_s3 + $0x710] sm:$0xff] }
 0x1c0   :  { %1868 = vmatprep.mubr.f32.mxu0 %v1254_v13  ;;  %1938 = vmatprep.mubr.f32.mxu1 %v1256_v18  ;;  %v1502_v13 = vld [vmem:[%s3382_s3 + $0x788] sm:$0xff] }
 0x1c1   :  { %1869 = vmatmul.mubr.f32.vlgmr.msra.gmra.mxu0 %v1253_v6  ;;  %1939 = vmatmul.mubr.f32.vlgmr.msra.gmra.mxu1 %v1255_v33  ;;  %v1470_v33 = vld [vmem:[%s3382_s3 + $0x688] sm:$0xff] }
 0x1c2   :  { %2306 = vmatpush3.msra.mxu0 %v1468_v8  ;;  %2341 = vmatpush3.msra.mxu1 %v1500_v16  ;;  %v1454_v18 = vld [vmem:[%s3382_s3 + $0x608] sm:$0xff]  ;;  %v1469_v8 = vld [vmem:[%s3382_s3 + $0x680] sm:$0xff] }
 0x1c3   :  { %2307 = vmatprep.subr.mxu0 %v1483_v34  ;;  %2342 = vmatprep.subr.mxu1 %v1515_v35  ;;  %v1486_v6 = vld [vmem:[%s3382_s3 + $0x708] sm:$0xff]  ;;  %v1501_v16 = vld [vmem:[%s3382_s3 + $0x780] sm:$0xff] }
 0x1c4   :  { %2308 = vmatpush3.msra.mxu0 %v1467_v36  ;;  %2343 = vmatpush3.msra.mxu1 %v1499_v37  ;;  %v1453_v34 = vld [vmem:[%s3382_s3 + $0x600] sm:$0xff]  ;;  %v645_v36 = vrot.slane %v3164_v56, %v612_v27  ;;  %v637_v37 = vrot.slane %v3164_v56, %v604_v29 }
 0x1c5   :  { %2309 = vmatprep.subr.mxu0 %v1482_v38  ;;  %2344 = vmatprep.subr.mxu1 %v1514_v39  ;;  %v1485_v35 = vld [vmem:[%s3382_s3 + $0x700] sm:$0xff]  ;;  %v641_v38 = vrot.slane %v3164_v56, %v608_v31  ;;  %v649_v39 = vrot.slane %v3164_v56, %v616_v32 }
 0x1c6   :  { %2310 = vmatpush3.msra.mxu0 %v1466_v40  ;;  %2345 = vmatpush3.msra.mxu1 %v1498_v41 }
 0x1c7   :  { %2311 = vmatprep.subr.mxu0 %v1481_v42  ;;  %2346 = vmatprep.subr.mxu1 %v1513_v43 }
 0x1c8   :  { %2312 = vmatpush3.msra.mxu0 %v1465_v44  ;;  %2347 = vmatpush3.msra.mxu1 %v1497_v45 }
 0x1c9   :  { %2313 = vmatprep.subr.mxu0 %v1480_v11  ;;  %2348 = vmatprep.subr.mxu1 %v1512_v46 }
 0x1ca   :  { %2314 = vmatpush3.msra.mxu0 %v1464_v47  ;;  %2349 = vmatpush3.msra.mxu1 %v1496_v48 }
 0x1cb   :  { %2315 = vmatprep.subr.mxu0 %v1479_v49  ;;  %2350 = vmatprep.subr.mxu1 %v1511_v50  ;;  %v2094_v50 = vld [vmem:[#allocation7] ss:$0 sm:$0xff] }
 0x1cc   :  { %2316 = vmatpush3.msra.mxu0 %v1463_v51  ;;  %2351 = vmatpush3.msra.mxu1 %v1495_v52 }
 0x1cd   :  { %2317 = vmatprep.subr.mxu0 %v1478_v53  ;;  %2352 = vmatprep.subr.mxu1 %v1510_v54 }
 0x1ce   :  { %2318 = vmatpush3.msra.mxu0 %v1462_v55  ;;  %2353 = vmatpush3.msra.mxu1 %v1494_v57 }
 0x1cf   :  { %2319 = vmatprep.subr.mxu0 %v1477_v58  ;;  %2354 = vmatprep.subr.mxu1 %v1509_v59 }
 0x1d0   :  { %2320 = vmatpush3.msra.mxu0 %v1461_v60  ;;  %2355 = vmatpush3.msra.mxu1 %v1493_v61 }
 0x1d1   :  { %2321 = vmatprep.subr.mxu0 %v1476_v0  ;;  %2356 = vmatprep.subr.mxu1 %v1508_v1 }
 0x1d2   :  { %2322 = vmatpush3.msra.mxu0 %v1460_v2  ;;  %2357 = vmatpush3.msra.mxu1 %v1492_v3 }
 0x1d3   :  { %2323 = vmatprep.subr.mxu0 %v1475_v4  ;;  %2358 = vmatprep.subr.mxu1 %v1507_v5 }
 0x1d4   :  { %2324 = vmatpush3.msra.mxu0 %v1459_v9  ;;  %2359 = vmatpush3.msra.mxu1 %v1491_v10 }
 0x1d5   :  { %2325 = vmatprep.subr.mxu0 %v1474_v14  ;;  %2360 = vmatprep.subr.mxu1 %v1506_v15 }
 0x1d6   :  { %2326 = vmatpush3.msra.mxu0 %v1458_v17  ;;  %2361 = vmatpush3.msra.mxu1 %v1490_v19 }
 0x1d7   :  { %2327 = vmatprep.subr.mxu0 %v1473_v20  ;;  %2362 = vmatprep.subr.mxu1 %v1505_v21 }
 0x1d8   :  { %2328 = vmatpush3.msra.mxu0 %v1457_v22  ;;  %2363 = vmatpush3.msra.mxu1 %v1489_v23 }
 0x1d9   :  { %2329 = vmatprep.subr.mxu0 %v1472_v24  ;;  %2364 = vmatprep.subr.mxu1 %v1504_v25 }
 0x1da   :  { %2330 = vmatpush3.msra.mxu0 %v1456_v26  ;;  %2365 = vmatpush3.msra.mxu1 %v1488_v28 }
 0x1db   :  { %2331 = vmatprep.subr.mxu0 %v1471_v63  ;;  %2366 = vmatprep.subr.mxu1 %v1503_v30 }
 0x1dc   :  { %2332 = vmatpush3.msra.mxu0 %v1455_v12  ;;  %2367 = vmatpush3.msra.mxu1 %v1487_v7 }
 0x1dd   :  { %2333 = vmatprep.subr.mxu0 %v1470_v33  ;;  %2368 = vmatprep.subr.mxu1 %v1502_v13 }
 0x1de   :  { %2334 = vmatpush3.msra.mxu0 %v1454_v18  ;;  %2369 = vmatpush3.msra.mxu1 %v1486_v6 }
 0x1df   :  { %2335 = vmatprep.subr.mxu0 %v1469_v8  ;;  %2370 = vmatprep.subr.mxu1 %v1501_v16 }
 0x1e0   :  { %2336 = vmatpush3.msra.mxu0 %v1453_v34  ;;  %2371 = vmatpush3.msra.mxu1 %v1485_v35 }
 0x1fb   :  { %v1169_v40 = vpop.f32.mrf.mxu0  ;;  %v1240_v41 = vpop.f32.mrf.mxu1 }
 0x1fc   :  { %v1241_v42 = vadd.f32 %v1240_v41, %v645_v36  ;;  %v1170_v43 = vadd.f32 %v1169_v40, %v637_v37 }
 0x1fd   :  { %v1171_v44 = vpop.f32.mrf.mxu0  ;;  %v1242_v45 = vpop.f32.mrf.mxu1 }
 0x1fe   :  { %v1172_v11 = vadd.f32 %v1171_v44, %v641_v38  ;;  %v1243_v27 = vadd.f32 %v1242_v45, %v649_v39  ;;  %v1259_v46 = vmax.f32 %v1241_v42, 0.0  ;;  %v1257_v29 = vmax.f32 %v1170_v43, 0.0 }
 0x200   :  { %v1258_v47 = vmax.f32 %v1172_v11, 0.0  ;;  %v1260_v48 = vmax.f32 %v1243_v27, 0.0 }
 0x202   :  { %2008 = vmatprep.mubr.f32.mxu0 %v1258_v47  ;;  %2078 = vmatprep.mubr.f32.mxu1 %v1260_v48 }
 0x203   :  { %2009 = vmatmul.mubr.f32.vlgmr.msra.gmra.mxu0 %v1257_v29  ;;  %2079 = vmatmul.mubr.f32.vlgmr.msra.gmra.mxu1 %v1259_v46 }
 0x21d   :  { %v2127_v31 = vpop.f32.mrf.mxu0  ;;  %v2162_v49 = vpop.f32.mrf.mxu1 }
 0x21f   :  { %v2128_v62 = vpop.f32.mrf.mxu0  ;;  %v2163_v51 = vpop.f32.mrf.mxu1 }
 0x220   :  { %v2129_v56 = vadd.f32 %v2128_v62, %v2127_v31  ;;  %v2164_v57 = vadd.f32 %v2163_v51, %v2162_v49 }
 0x222   :  { %v1591_v53 = vadd.f32 %v2129_v56, %v2094_v50 }
 0x224   :  { %v1661_v59 = vadd.f32 %v2164_v57, %v1591_v53 }
 0x23f   :  { %v2197_v32 = vpop.f32.mrf.mxu0  ;;  %v2232_v54 = vpop.f32.mrf.mxu1 }
 0x241   :  { %v2198_v52 = vpop.f32.mrf.mxu0  ;;  %v2233_v60 = vpop.f32.mrf.mxu1 }
 0x242   :  { %v2199_v58 = vadd.f32 %v2198_v52, %v2197_v32  ;;  %v2234_v2 = vadd.f32 %v2233_v60, %v2232_v54 }
 0x244   :  { %v1731_v0 = vadd.f32 %v2199_v58, %v1661_v59 }
 0x246   :  { %v1801_v4 = vadd.f32 %v2234_v2, %v1731_v0 }
 0x281   :  { %v2267_v55 = vpop.f32.mrf.mxu0  ;;  %v2302_v1 = vpop.f32.mrf.mxu1 }
 0x283   :  { %v2268_v61 = vpop.f32.mrf.mxu0  ;;  %v2303_v5 = vpop.f32.mrf.mxu1 }
 0x284   :  { %v2269_v3 = vadd.f32 %v2268_v61, %v2267_v55  ;;  %v2304_v15 = vadd.f32 %v2303_v5, %v2302_v1 }
 0x286   :  { %v1871_v9 = vadd.f32 %v2269_v3, %v1801_v4 }
 0x288   :  { %v1941_v20 = vadd.f32 %v2304_v15, %v1871_v9 }
 0x2c3   :  { %v2337_v10 = vpop.f32.mrf.mxu0  ;;  %v2372_v14 = vpop.f32.mrf.mxu1 }
 0x2c5   :  { %v2338_v17 = vpop.f32.mrf.mxu0  ;;  %v2373_v19 = vpop.f32.mrf.mxu1 }
 0x2c6   :  { %v2339_v21 = vadd.f32 %v2338_v17, %v2337_v10  ;;  %v2374_v23 = vadd.f32 %v2373_v19, %v2372_v14 }
 0x2c8   :  { %v2011_v22 = vadd.f32 %v2339_v21, %v1941_v20 }
 0x2ca   :  { %v2081_v24 = vadd.f32 %v2374_v23, %v2011_v22 }
 0x2cc   :  { %2085 = vst.msk [vmem:[%s3384_s5] sm:$0x3] %vm2084_vm0, %v2081_v24 }
 0x2cd   :  { %2090 = vsyncpa [#allocation3], 1 }
 0x2ce   :  { %2091 = vsyncpa [#allocation5], 1 }
 0x2cf   :  { %2092 = vsyncpa [#allocation8], 1 }

</bundles_post_ra>
